<compile_context>
chip_gen: v7x
topology: tpu7x:2x2x1
jax: 0.10.0
libtpu: 0.0.40
codegen_flags: <defaults>
</compile_context>

<pallas_src>
import functools
import math

import jax
import jax.numpy as jnp
from jax.experimental import pallas as pl
from jax.experimental.pallas import tpu as pltpu

_LANE = 128      # pad output channels to multiples of the 128-wide lane dim
_SUBLANE = 8     # sublane alignment for the K (feature) dim
_TM_MAX = 512    # token-tile rows: ~85% of HBM roofline per the tiling sweep


def _round_up(x, m):
    return (x + m - 1) // m * m


def _conv_bn_act_kernel(p_ref, w_ref, scale_ref, bias_ref, o_ref, *, apply_gelu):
    # im2col conv tile as a single MXU matmul with f32 accumulation.
    acc = jnp.dot(p_ref[...], w_ref[...], preferred_element_type=jnp.float32)
    # Inference-mode BatchNorm folded into a per-channel affine (f32 math so
    # v5e's non-bf16 VPU/EUP stay on the fast path).
    y = acc * scale_ref[...] + bias_ref[...]
    if apply_gelu:
        # TODO(synk): PyTorch nn.GELU() defaults to the exact erf form; erf has
        # no guaranteed Mosaic lowering, so the tanh approximation is used
        # (max abs deviation ~1e-3). tanh runs on the EUP slot (cheap).
        c = math.sqrt(2.0 / math.pi)
        y = 0.5 * y * (1.0 + jnp.tanh(c * (y + 0.044715 * y * y * y)))
    o_ref[...] = y.astype(o_ref.dtype)


def _fused_conv_bn_act(patches, w, scale, bias, *, apply_gelu, out_dtype):
    """patches (M_pad, K_pad) bf16; w (K_pad, N_pad) bf16; scale/bias (1, N_pad) f32."""
    M_pad, K_pad = patches.shape
    N_pad = w.shape[1]

    tm = min(_TM_MAX, M_pad)
    assert M_pad % tm == 0 and tm % _SUBLANE == 0
    grid = (M_pad // tm,)

    out_itemsize = jax.dtypes.canonicalize_dtype(out_dtype).itemsize
    # Double-buffered patch/out tiles + resident weights/scale/bias, plus headroom.
    vmem_need = (2 * tm * K_pad * patches.dtype.itemsize
                 + 2 * tm * N_pad * out_itemsize
                 + K_pad * N_pad * w.dtype.itemsize
                 + 4 * N_pad * 4)
    vmem_limit = int(min(max(2 * vmem_need, 8 * 2**20), 48 * 2**20))

    cost = pl.CostEstimate(
        flops=2 * M_pad * K_pad * N_pad,
        transcendentals=M_pad * N_pad if apply_gelu else 0,
        bytes_accessed=(patches.size * patches.dtype.itemsize
                        + w.size * w.dtype.itemsize
                        + 2 * N_pad * 4
                        + M_pad * N_pad * out_itemsize),
    )

    kernel = functools.partial(_conv_bn_act_kernel, apply_gelu=apply_gelu)
    return pl.pallas_call(
        kernel,
        out_shape=jax.ShapeDtypeStruct((M_pad, N_pad), out_dtype),
        grid=grid,
        in_specs=[
            pl.BlockSpec((tm, K_pad), lambda i: (i, 0)),     # streamed token tiles
            pl.BlockSpec((K_pad, N_pad), lambda i: (0, 0)),  # weights stay resident
            pl.BlockSpec((1, N_pad), lambda i: (0, 0)),      # BN scale (resident)
            pl.BlockSpec((1, N_pad), lambda i: (0, 0)),      # BN bias (resident)
        ],
        out_specs=pl.BlockSpec((tm, N_pad), lambda i: (i, 0)),
        compiler_params=pltpu.CompilerParams(
            dimension_semantics=("parallel",),   # megacore sharding on v7x
            vmem_limit_bytes=vmem_limit,
        ),
        cost_estimate=cost,
    )(patches, w, scale, bias)


def _im2col_s2_p1(x_nhwc, c_true):
    """3x3 / stride-2 / pad-1 patch extraction (JAX glue, fused by XLA).

    The channel slice (dropping the lane-padding channels of the previous
    layer) is fused into the same gather, so padded channels never round-trip
    through the patches tensor.
    # TODO(synk): the remaining HBM round trip of this bf16 patches tensor could
    # be removed entirely by doing the 9-tap extraction in-kernel (manual DMA of
    # row slabs + 9 shifted matmuls); kept in JAX here for lowering robustness.
    """
    x = x_nhwc[..., :c_true]
    B, H, W, C = x.shape
    assert H % 2 == 0 and W % 2 == 0, "stride-2 conv stages expect even H, W"
    Hp, Wp = H // 2, W // 2
    xp = jnp.pad(x, ((0, 0), (1, 1), (1, 1), (0, 0)))
    taps = [xp[:, ky:ky + 2 * Hp:2, kx:kx + 2 * Wp:2, :]
            for ky in range(3) for kx in range(3)]
    patches = jnp.concatenate(taps, axis=-1)          # (B, Hp, Wp, 9*C)
    return patches.reshape(B * Hp * Wp, 9 * C), Hp, Wp


def _conv3x3_bn_act(x_nhwc, lp, *, apply_gelu, out_dtype):
    B = x_nhwc.shape[0]
    patches, Hp, Wp = _im2col_s2_p1(x_nhwc, lp["c_in"])
    M, K = patches.shape
    K_pad, N_pad = lp["w"].shape

    tm = min(_TM_MAX, _round_up(M, _SUBLANE))
    M_pad = _round_up(M, tm)
    patches = jnp.pad(patches.astype(jnp.bfloat16),
                      ((0, M_pad - M), (0, K_pad - K)))

    out = _fused_conv_bn_act(patches, lp["w"], lp["scale"], lp["bias"],
                             apply_gelu=apply_gelu, out_dtype=out_dtype)
    return out[:M].reshape(B, Hp, Wp, N_pad)


def init_conv_patch_embed_params(key, in_chans=3, embed_dim=768, patch_size=16):
    if patch_size == 16:
        chans = [in_chans, embed_dim // 8, embed_dim // 4, embed_dim // 2, embed_dim]
    elif patch_size == 8:
        chans = [in_chans, embed_dim // 4, embed_dim // 2, embed_dim]
    else:
        raise ValueError("patch size has to be in [8, 16]")
    eps = 1e-5
    params = []
    for i in range(len(chans) - 1):
        cin, cout = chans[i], chans[i + 1]
        key, k1, k2, k3, k4, k5 = jax.random.split(key, 6)
        # Conv weight in PyTorch layout (Cout, Cin, 3, 3), reordered to
        # (ky, kx, Cin, Cout) -> (9*Cin, Cout) to match the im2col ordering.
        w_oihw = 0.02 * jax.random.normal(k1, (cout, cin, 3, 3), jnp.float32)
        w = jnp.transpose(w_oihw, (2, 3, 1, 0)).reshape(9 * cin, cout)
        # Deterministic (inference-mode) BatchNorm parameters, folded.
        gamma = 1.0 + 0.1 * jax.random.normal(k2, (cout,), jnp.float32)
        beta = 0.1 * jax.random.normal(k3, (cout,), jnp.float32)
        rmean = 0.1 * jax.random.normal(k4, (cout,), jnp.float32)
        rvar = 1.0 + 0.5 * jax.random.uniform(k5, (cout,), jnp.float32)
        scale = gamma / jnp.sqrt(rvar + eps)
        bias = beta - rmean * scale

        k_true, n_true = 9 * cin, cout
        k_pad = _round_up(k_true, _SUBLANE)      # e.g. first layer 27 -> 32
        n_pad = _round_up(n_true, _LANE)         # lane-dense output channels
        params.append({
            "w": jnp.pad(w, ((0, k_pad - k_true), (0, n_pad - n_true))
                         ).astype(jnp.bfloat16),
            "scale": jnp.pad(scale, (0, n_pad - n_true)).reshape(1, n_pad),
            "bias": jnp.pad(bias, (0, n_pad - n_true)).reshape(1, n_pad),
            "c_in": cin,
            "c_out": n_true,
        })
    return params


def conv_patch_embed_forward(x_nchw, params):
    """Equivalent of ConvPatchEmbed.forward. Input is NCHW (PyTorch layout)."""
    x = jnp.transpose(x_nchw, (0, 2, 3, 1)).astype(jnp.bfloat16)   # -> NHWC, bf16
    n_layers = len(params)
    for i, lp in enumerate(params):
        last = i == n_layers - 1
        x = _conv3x3_bn_act(x, lp, apply_gelu=not last,
                            out_dtype=jnp.float32 if last else jnp.bfloat16)
    B, Hp, Wp, _ = x.shape
    d = params[-1]["c_out"]
    tokens = x[..., :d].reshape(B, Hp * Wp, d)   # matches .flatten(2).transpose(1, 2)
    return tokens, (Hp, Wp)


if __name__ == "__main__":
    key = jax.random.PRNGKey(0)
    kx, kp = jax.random.split(key)

    # Small config: img_size=64, patch_size=16, in_chans=3, embed_dim=32.
    B, C, H, W = 2, 3, 64, 64
    embed_dim = 32
    x = jax.random.normal(kx, (B, C, H, W), jnp.float32)

    params = init_conv_patch_embed_params(kp, in_chans=C, embed_dim=embed_dim,
                                          patch_size=16)

    fwd = jax.jit(lambda inp: conv_patch_embed_forward(inp, params))
    tokens, (Hp, Wp) = fwd(x)
    tokens = jax.block_until_ready(tokens)
    Hp, Wp = int(Hp), int(Wp)

    assert tokens.shape == (B, (H // 16) * (W // 16), embed_dim), tokens.shape
    assert (Hp, Wp) == (H // 16, W // 16)
    assert bool(jnp.all(jnp.isfinite(tokens)))
    print("KERNEL_OK")
</pallas_src>

<mosaic_0001>
module attributes {stable_mosaic.version = 11 : i64} {
  func.func @_conv_bn_act_kernel(%arg0: i32, %arg1: memref<512x32xbf16, #tpu.memory_space<vmem>>, %arg2: memref<32x128xbf16, #tpu.memory_space<vmem>>, %arg3: memref<1x128xf32, #tpu.memory_space<vmem>>, %arg4: memref<1x128xf32, #tpu.memory_space<vmem>>, %arg5: memref<512x128xbf16, #tpu.memory_space<vmem>>) attributes {dimension_semantics = [#tpu.dimension_semantics<parallel>], iteration_bounds = array<i64: 4>, scalar_prefetch = 0 : i64, scratch_operands = 0 : i64, tpu.core_type = #tpu.core_type<tc>, window_params = [{transform_indices = @transform_0, window_bounds = array<i64: 512, 32>}, {pipeline_mode = #tpu.pipeline_mode<synchronous>, transform_indices = @transform_1, window_bounds = array<i64: 32, 128>}, {pipeline_mode = #tpu.pipeline_mode<synchronous>, transform_indices = @transform_2, window_bounds = array<i64: 1, 128>}, {pipeline_mode = #tpu.pipeline_mode<synchronous>, transform_indices = @transform_3, window_bounds = array<i64: 1, 128>}, {transform_indices = @transform_4, window_bounds = array<i64: 512, 128>}]} {
    %c0 = arith.constant 0 : index
    %c0_0 = arith.constant 0 : index
    %0 = vector.load %arg1[%c0, %c0_0] : memref<512x32xbf16, #tpu.memory_space<vmem>>, vector<512x32xbf16>
    %c0_1 = arith.constant 0 : index
    %c0_2 = arith.constant 0 : index
    %1 = vector.load %arg2[%c0_1, %c0_2] : memref<32x128xbf16, #tpu.memory_space<vmem>>, vector<32x128xbf16>
    %cst = arith.constant dense<0.000000e+00> : vector<512x128xf32>
    %2 = tpu.matmul %0, %1, %cst {dimension_numbers = #tpu.dot_dimension_numbers<[1], [0], [0], [1], [0, 0, 1, 1], [], []>} : vector<512x32xbf16>, vector<32x128xbf16>, vector<512x128xf32> -> vector<512x128xf32>
    %c0_3 = arith.constant 0 : index
    %c0_4 = arith.constant 0 : index
    %3 = vector.load %arg3[%c0_3, %c0_4] : memref<1x128xf32, #tpu.memory_space<vmem>>, vector<1x128xf32>
    %4 = vector.broadcast %3 : vector<1x128xf32> to vector<512x128xf32>
    %5 = arith.mulf %2, %4 : vector<512x128xf32>
    %c0_5 = arith.constant 0 : index
    %c0_6 = arith.constant 0 : index
    %6 = vector.load %arg4[%c0_5, %c0_6] : memref<1x128xf32, #tpu.memory_space<vmem>>, vector<1x128xf32>
    %7 = vector.broadcast %6 : vector<1x128xf32> to vector<512x128xf32>
    %8 = arith.addf %5, %7 : vector<512x128xf32>
    %cst_7 = arith.constant 5.000000e-01 : f32
    %9 = vector.broadcast %cst_7 : f32 to vector<512x128xf32>
    %10 = arith.mulf %9, %8 : vector<512x128xf32>
    %cst_8 = arith.constant 4.471500e-02 : f32
    %11 = vector.broadcast %cst_8 : f32 to vector<512x128xf32>
    %12 = arith.mulf %11, %8 : vector<512x128xf32>
    %13 = arith.mulf %12, %8 : vector<512x128xf32>
    %14 = arith.mulf %13, %8 : vector<512x128xf32>
    %15 = arith.addf %8, %14 : vector<512x128xf32>
    %cst_9 = arith.constant 0.797884583 : f32
    %16 = vector.broadcast %cst_9 : f32 to vector<512x128xf32>
    %17 = arith.mulf %16, %15 : vector<512x128xf32>
    %18 = math.tanh %17 : vector<512x128xf32>
    %cst_10 = arith.constant 1.000000e+00 : f32
    %19 = vector.broadcast %cst_10 : f32 to vector<512x128xf32>
    %20 = arith.addf %19, %18 : vector<512x128xf32>
    %21 = arith.mulf %10, %20 : vector<512x128xf32>
    %22 = arith.truncf %21 : vector<512x128xf32> to vector<512x128xbf16>
    %c0_11 = arith.constant 0 : index
    %c0_12 = arith.constant 0 : index
    %23 = vector.load %arg5[%c0_11, %c0_12] : memref<512x128xbf16, #tpu.memory_space<vmem>>, vector<512x128xbf16>
    tpu.vector_store %arg5[%c0_11, %c0_12], %22 {strides = array<i32>} : memref<512x128xbf16, #tpu.memory_space<vmem>>, vector<512x128xbf16>,
    return
  }
  func.func @transform_0(%arg0: i32) -> (i32, i32) {
    %c0_i32 = arith.constant 0 : i32
    %c0_i32_0 = arith.constant 0 : i32
    return %arg0, %c0_i32 : i32, i32
  }
  func.func @transform_1(%arg0: i32) -> (i32, i32) {
    %c0_i32 = arith.constant 0 : i32
    %c0_i32_0 = arith.constant 0 : i32
    %c0_i32_1 = arith.constant 0 : i32
    return %c0_i32, %c0_i32_0 : i32, i32
  }
  func.func @transform_2(%arg0: i32) -> (i32, i32) {
    %c0_i32 = arith.constant 0 : i32
    %c0_i32_0 = arith.constant 0 : i32
    %c0_i32_1 = arith.constant 0 : i32
    return %c0_i32, %c0_i32_0 : i32, i32
  }
  func.func @transform_3(%arg0: i32) -> (i32, i32) {
    %c0_i32 = arith.constant 0 : i32
    %c0_i32_0 = arith.constant 0 : i32
    %c0_i32_1 = arith.constant 0 : i32
    return %c0_i32, %c0_i32_0 : i32, i32
  }
  func.func @transform_4(%arg0: i32) -> (i32, i32) {
    %c0_i32 = arith.constant 0 : i32
    %c0_i32_0 = arith.constant 0 : i32
    return %arg0, %c0_i32 : i32, i32
  }
}

module attributes {stable_mosaic.version = 11 : i64} {
  func.func @_conv_bn_act_kernel(%arg0: i32, %arg1: memref<512x40xbf16, #tpu.memory_space<vmem>>, %arg2: memref<40x128xbf16, #tpu.memory_space<vmem>>, %arg3: memref<1x128xf32, #tpu.memory_space<vmem>>, %arg4: memref<1x128xf32, #tpu.memory_space<vmem>>, %arg5: memref<512x128xbf16, #tpu.memory_space<vmem>>) attributes {dimension_semantics = [#tpu.dimension_semantics<parallel>], iteration_bounds = array<i64: 1>, scalar_prefetch = 0 : i64, scratch_operands = 0 : i64, tpu.core_type = #tpu.core_type<tc>, window_params = [{transform_indices = @transform_0, window_bounds = array<i64: 512, 40>}, {pipeline_mode = #tpu.pipeline_mode<synchronous>, transform_indices = @transform_1, window_bounds = array<i64: 40, 128>}, {pipeline_mode = #tpu.pipeline_mode<synchronous>, transform_indices = @transform_2, window_bounds = array<i64: 1, 128>}, {pipeline_mode = #tpu.pipeline_mode<synchronous>, transform_indices = @transform_3, window_bounds = array<i64: 1, 128>}, {transform_indices = @transform_4, window_bounds = array<i64: 512, 128>}]} {
    %c0 = arith.constant 0 : index
    %c0_0 = arith.constant 0 : index
    %0 = vector.load %arg1[%c0, %c0_0] : memref<512x40xbf16, #tpu.memory_space<vmem>>, vector<512x40xbf16>
    %c0_1 = arith.constant 0 : index
    %c0_2 = arith.constant 0 : index
    %1 = vector.load %arg2[%c0_1, %c0_2] : memref<40x128xbf16, #tpu.memory_space<vmem>>, vector<40x128xbf16>
    %cst = arith.constant dense<0.000000e+00> : vector<512x128xf32>
    %2 = tpu.matmul %0, %1, %cst {dimension_numbers = #tpu.dot_dimension_numbers<[1], [0], [0], [1], [0, 0, 1, 1], [], []>} : vector<512x40xbf16>, vector<40x128xbf16>, vector<512x128xf32> -> vector<512x128xf32>
    %c0_3 = arith.constant 0 : index
    %c0_4 = arith.constant 0 : index
    %3 = vector.load %arg3[%c0_3, %c0_4] : memref<1x128xf32, #tpu.memory_space<vmem>>, vector<1x128xf32>
    %4 = vector.broadcast %3 : vector<1x128xf32> to vector<512x128xf32>
    %5 = arith.mulf %2, %4 : vector<512x128xf32>
    %c0_5 = arith.constant 0 : index
    %c0_6 = arith.constant 0 : index
    %6 = vector.load %arg4[%c0_5, %c0_6] : memref<1x128xf32, #tpu.memory_space<vmem>>, vector<1x128xf32>
    %7 = vector.broadcast %6 : vector<1x128xf32> to vector<512x128xf32>
    %8 = arith.addf %5, %7 : vector<512x128xf32>
    %cst_7 = arith.constant 5.000000e-01 : f32
    %9 = vector.broadcast %cst_7 : f32 to vector<512x128xf32>
    %10 = arith.mulf %9, %8 : vector<512x128xf32>
    %cst_8 = arith.constant 4.471500e-02 : f32
    %11 = vector.broadcast %cst_8 : f32 to vector<512x128xf32>
    %12 = arith.mulf %11, %8 : vector<512x128xf32>
    %13 = arith.mulf %12, %8 : vector<512x128xf32>
    %14 = arith.mulf %13, %8 : vector<512x128xf32>
    %15 = arith.addf %8, %14 : vector<512x128xf32>
    %cst_9 = arith.constant 0.797884583 : f32
    %16 = vector.broadcast %cst_9 : f32 to vector<512x128xf32>
    %17 = arith.mulf %16, %15 : vector<512x128xf32>
    %18 = math.tanh %17 : vector<512x128xf32>
    %cst_10 = arith.constant 1.000000e+00 : f32
    %19 = vector.broadcast %cst_10 : f32 to vector<512x128xf32>
    %20 = arith.addf %19, %18 : vector<512x128xf32>
    %21 = arith.mulf %10, %20 : vector<512x128xf32>
    %22 = arith.truncf %21 : vector<512x128xf32> to vector<512x128xbf16>
    %c0_11 = arith.constant 0 : index
    %c0_12 = arith.constant 0 : index
    %23 = vector.load %arg5[%c0_11, %c0_12] : memref<512x128xbf16, #tpu.memory_space<vmem>>, vector<512x128xbf16>
    tpu.vector_store %arg5[%c0_11, %c0_12], %22 {strides = array<i32>} : memref<512x128xbf16, #tpu.memory_space<vmem>>, vector<512x128xbf16>,
    return
  }
  func.func @transform_0(%arg0: i32) -> (i32, i32) {
    %c0_i32 = arith.constant 0 : i32
    %c0_i32_0 = arith.constant 0 : i32
    return %arg0, %c0_i32 : i32, i32
  }
  func.func @transform_1(%arg0: i32) -> (i32, i32) {
    %c0_i32 = arith.constant 0 : i32
    %c0_i32_0 = arith.constant 0 : i32
    %c0_i32_1 = arith.constant 0 : i32
    return %c0_i32, %c0_i32_0 : i32, i32
  }
  func.func @transform_2(%arg0: i32) -> (i32, i32) {
    %c0_i32 = arith.constant 0 : i32
    %c0_i32_0 = arith.constant 0 : i32
    %c0_i32_1 = arith.constant 0 : i32
    return %c0_i32, %c0_i32_0 : i32, i32
  }
  func.func @transform_3(%arg0: i32) -> (i32, i32) {
    %c0_i32 = arith.constant 0 : i32
    %c0_i32_0 = arith.constant 0 : i32
    %c0_i32_1 = arith.constant 0 : i32
    return %c0_i32, %c0_i32_0 : i32, i32
  }
  func.func @transform_4(%arg0: i32) -> (i32, i32) {
    %c0_i32 = arith.constant 0 : i32
    %c0_i32_0 = arith.constant 0 : i32
    return %arg0, %c0_i32 : i32, i32
  }
}

module attributes {stable_mosaic.version = 11 : i64} {
  func.func @_conv_bn_act_kernel(%arg0: i32, %arg1: memref<128x72xbf16, #tpu.memory_space<vmem>>, %arg2: memref<72x128xbf16, #tpu.memory_space<vmem>>, %arg3: memref<1x128xf32, #tpu.memory_space<vmem>>, %arg4: memref<1x128xf32, #tpu.memory_space<vmem>>, %arg5: memref<128x128xbf16, #tpu.memory_space<vmem>>) attributes {dimension_semantics = [#tpu.dimension_semantics<parallel>], iteration_bounds = array<i64: 1>, scalar_prefetch = 0 : i64, scratch_operands = 0 : i64, tpu.core_type = #tpu.core_type<tc>, window_params = [{transform_indices = @transform_0, window_bounds = array<i64: 128, 72>}, {pipeline_mode = #tpu.pipeline_mode<synchronous>, transform_indices = @transform_1, window_bounds = array<i64: 72, 128>}, {pipeline_mode = #tpu.pipeline_mode<synchronous>, transform_indices = @transform_2, window_bounds = array<i64: 1, 128>}, {pipeline_mode = #tpu.pipeline_mode<synchronous>, transform_indices = @transform_3, window_bounds = array<i64: 1, 128>}, {transform_indices = @transform_4, window_bounds = array<i64: 128, 128>}]} {
    %c0 = arith.constant 0 : index
    %c0_0 = arith.constant 0 : index
    %0 = vector.load %arg1[%c0, %c0_0] : memref<128x72xbf16, #tpu.memory_space<vmem>>, vector<128x72xbf16>
    %c0_1 = arith.constant 0 : index
    %c0_2 = arith.constant 0 : index
    %1 = vector.load %arg2[%c0_1, %c0_2] : memref<72x128xbf16, #tpu.memory_space<vmem>>, vector<72x128xbf16>
    %cst = arith.constant dense<0.000000e+00> : vector<128x128xf32>
    %2 = tpu.matmul %0, %1, %cst {dimension_numbers = #tpu.dot_dimension_numbers<[1], [0], [0], [1], [0, 0, 1, 1], [], []>} : vector<128x72xbf16>, vector<72x128xbf16>, vector<128x128xf32> -> vector<128x128xf32>
    %c0_3 = arith.constant 0 : index
    %c0_4 = arith.constant 0 : index
    %3 = vector.load %arg3[%c0_3, %c0_4] : memref<1x128xf32, #tpu.memory_space<vmem>>, vector<1x128xf32>
    %4 = vector.broadcast %3 : vector<1x128xf32> to vector<128x128xf32>
    %5 = arith.mulf %2, %4 : vector<128x128xf32>
    %c0_5 = arith.constant 0 : index
    %c0_6 = arith.constant 0 : index
    %6 = vector.load %arg4[%c0_5, %c0_6] : memref<1x128xf32, #tpu.memory_space<vmem>>, vector<1x128xf32>
    %7 = vector.broadcast %6 : vector<1x128xf32> to vector<128x128xf32>
    %8 = arith.addf %5, %7 : vector<128x128xf32>
    %cst_7 = arith.constant 5.000000e-01 : f32
    %9 = vector.broadcast %cst_7 : f32 to vector<128x128xf32>
    %10 = arith.mulf %9, %8 : vector<128x128xf32>
    %cst_8 = arith.constant 4.471500e-02 : f32
    %11 = vector.broadcast %cst_8 : f32 to vector<128x128xf32>
    %12 = arith.mulf %11, %8 : vector<128x128xf32>
    %13 = arith.mulf %12, %8 : vector<128x128xf32>
    %14 = arith.mulf %13, %8 : vector<128x128xf32>
    %15 = arith.addf %8, %14 : vector<128x128xf32>
    %cst_9 = arith.constant 0.797884583 : f32
    %16 = vector.broadcast %cst_9 : f32 to vector<128x128xf32>
    %17 = arith.mulf %16, %15 : vector<128x128xf32>
    %18 = math.tanh %17 : vector<128x128xf32>
    %cst_10 = arith.constant 1.000000e+00 : f32
    %19 = vector.broadcast %cst_10 : f32 to vector<128x128xf32>
    %20 = arith.addf %19, %18 : vector<128x128xf32>
    %21 = arith.mulf %10, %20 : vector<128x128xf32>
    %22 = arith.truncf %21 : vector<128x128xf32> to vector<128x128xbf16>
    %c0_11 = arith.constant 0 : index
    %c0_12 = arith.constant 0 : index
    %23 = vector.load %arg5[%c0_11, %c0_12] : memref<128x128xbf16, #tpu.memory_space<vmem>>, vector<128x128xbf16>
    tpu.vector_store %arg5[%c0_11, %c0_12], %22 {strides = array<i32>} : memref<128x128xbf16, #tpu.memory_space<vmem>>, vector<128x128xbf16>,
    return
  }
  func.func @transform_0(%arg0: i32) -> (i32, i32) {
    %c0_i32 = arith.constant 0 : i32
    %c0_i32_0 = arith.constant 0 : i32
    return %arg0, %c0_i32 : i32, i32
  }
  func.func @transform_1(%arg0: i32) -> (i32, i32) {
    %c0_i32 = arith.constant 0 : i32
    %c0_i32_0 = arith.constant 0 : i32
    %c0_i32_1 = arith.constant 0 : i32
    return %c0_i32, %c0_i32_0 : i32, i32
  }
  func.func @transform_2(%arg0: i32) -> (i32, i32) {
    %c0_i32 = arith.constant 0 : i32
    %c0_i32_0 = arith.constant 0 : i32
    %c0_i32_1 = arith.constant 0 : i32
    return %c0_i32, %c0_i32_0 : i32, i32
  }
  func.func @transform_3(%arg0: i32) -> (i32, i32) {
    %c0_i32 = arith.constant 0 : i32
    %c0_i32_0 = arith.constant 0 : i32
    %c0_i32_1 = arith.constant 0 : i32
    return %c0_i32, %c0_i32_0 : i32, i32
  }
  func.func @transform_4(%arg0: i32) -> (i32, i32) {
    %c0_i32 = arith.constant 0 : i32
    %c0_i32_0 = arith.constant 0 : i32
    return %arg0, %c0_i32 : i32, i32
  }
}

module attributes {stable_mosaic.version = 11 : i64} {
  func.func @_conv_bn_act_kernel(%arg0: i32, %arg1: memref<32x144xbf16, #tpu.memory_space<vmem>>, %arg2: memref<144x128xbf16, #tpu.memory_space<vmem>>, %arg3: memref<1x128xf32, #tpu.memory_space<vmem>>, %arg4: memref<1x128xf32, #tpu.memory_space<vmem>>, %arg5: memref<32x128xf32, #tpu.memory_space<vmem>>) attributes {dimension_semantics = [#tpu.dimension_semantics<parallel>], iteration_bounds = array<i64: 1>, scalar_prefetch = 0 : i64, scratch_operands = 0 : i64, tpu.core_type = #tpu.core_type<tc>, window_params = [{transform_indices = @transform_0, window_bounds = array<i64: 32, 144>}, {pipeline_mode = #tpu.pipeline_mode<synchronous>, transform_indices = @transform_1, window_bounds = array<i64: 144, 128>}, {pipeline_mode = #tpu.pipeline_mode<synchronous>, transform_indices = @transform_2, window_bounds = array<i64: 1, 128>}, {pipeline_mode = #tpu.pipeline_mode<synchronous>, transform_indices = @transform_3, window_bounds = array<i64: 1, 128>}, {transform_indices = @transform_4, window_bounds = array<i64: 32, 128>}]} {
    %c0 = arith.constant 0 : index
    %c0_0 = arith.constant 0 : index
    %0 = vector.load %arg1[%c0, %c0_0] : memref<32x144xbf16, #tpu.memory_space<vmem>>, vector<32x144xbf16>
    %c0_1 = arith.constant 0 : index
    %c0_2 = arith.constant 0 : index
    %1 = vector.load %arg2[%c0_1, %c0_2] : memref<144x128xbf16, #tpu.memory_space<vmem>>, vector<144x128xbf16>
    %cst = arith.constant dense<0.000000e+00> : vector<32x128xf32>
    %2 = tpu.matmul %0, %1, %cst {dimension_numbers = #tpu.dot_dimension_numbers<[1], [0], [0], [1], [0, 0, 1, 1], [], []>} : vector<32x144xbf16>, vector<144x128xbf16>, vector<32x128xf32> -> vector<32x128xf32>
    %c0_3 = arith.constant 0 : index
    %c0_4 = arith.constant 0 : index
    %3 = vector.load %arg3[%c0_3, %c0_4] : memref<1x128xf32, #tpu.memory_space<vmem>>, vector<1x128xf32>
    %4 = vector.broadcast %3 : vector<1x128xf32> to vector<32x128xf32>
    %5 = arith.mulf %2, %4 : vector<32x128xf32>
    %c0_5 = arith.constant 0 : index
    %c0_6 = arith.constant 0 : index
    %6 = vector.load %arg4[%c0_5, %c0_6] : memref<1x128xf32, #tpu.memory_space<vmem>>, vector<1x128xf32>
    %7 = vector.broadcast %6 : vector<1x128xf32> to vector<32x128xf32>
    %8 = arith.addf %5, %7 : vector<32x128xf32>
    %c0_7 = arith.constant 0 : index
    %c0_8 = arith.constant 0 : index
    %9 = vector.load %arg5[%c0_7, %c0_8] : memref<32x128xf32, #tpu.memory_space<vmem>>, vector<32x128xf32>
    tpu.vector_store %arg5[%c0_7, %c0_8], %8 {strides = array<i32>} : memref<32x128xf32, #tpu.memory_space<vmem>>, vector<32x128xf32>,
    return
  }
  func.func @transform_0(%arg0: i32) -> (i32, i32) {
    %c0_i32 = arith.constant 0 : i32
    %c0_i32_0 = arith.constant 0 : i32
    return %arg0, %c0_i32 : i32, i32
  }
  func.func @transform_1(%arg0: i32) -> (i32, i32) {
    %c0_i32 = arith.constant 0 : i32
    %c0_i32_0 = arith.constant 0 : i32
    %c0_i32_1 = arith.constant 0 : i32
    return %c0_i32, %c0_i32_0 : i32, i32
  }
  func.func @transform_2(%arg0: i32) -> (i32, i32) {
    %c0_i32 = arith.constant 0 : i32
    %c0_i32_0 = arith.constant 0 : i32
    %c0_i32_1 = arith.constant 0 : i32
    return %c0_i32, %c0_i32_0 : i32, i32
  }
  func.func @transform_3(%arg0: i32) -> (i32, i32) {
    %c0_i32 = arith.constant 0 : i32
    %c0_i32_0 = arith.constant 0 : i32
    %c0_i32_1 = arith.constant 0 : i32
    return %c0_i32, %c0_i32_0 : i32, i32
  }
  func.func @transform_4(%arg0: i32) -> (i32, i32) {
    %c0_i32 = arith.constant 0 : i32
    %c0_i32_0 = arith.constant 0 : i32
    return %arg0, %c0_i32 : i32, i32
  }
}

</mosaic_0001>

<bundles_post_ra>
// kernel: _lambda_.4
= control target key start
LH: loop header
LB: loop body
LE: loop exit
PB: predicated region body
PF: predicated region fallthrough
CT: control target
= control target key end

     0   :  { %s2631_s15 = smov 0   ;;  %s3483_s0 = inlined_call_operand.vmem [shape: bf16[2048,32], index: 0, kind: input, shape index: {}]   ;;  %s3484_s1 = inlined_call_operand.vmem [shape: bf16[32,128], index: 1, kind: input, shape index: {}]   ;;  %s3485_s2 = inlined_call_operand.vmem [shape: f32[1,128], index: 2, kind: input, shape index: {}]   ;;  %s3486_s3 = inlined_call_operand.vmem [shape: f32[1,128], index: 3, kind: input, shape index: {}]   ;;  %s3487_s4 = inlined_call_operand.vmem [shape: bf16[2048,128], index: 4, kind: output, shape index: {}]  }
   0x1 LB: > { %s1922_s16 = sadd.s32 4294967295, %s2604_s15   ;;  %p1926_p0 = scmp.ge.s32.totalorder %s2604_s15, 1  ;;  %s2604_s15 = sphi %s2631_s15, %s14_s15  }
   0x2   : > { %p163_p1 = scmp.lt.s32.totalorder %s2604_s15, 5 }
   0x4   : > { %p164_p2 = pnand %p1926_p0, %p163_p1 }
   0x6   : > { %167 = sbr.rel (%p164_p2) target bundleno = 437 (0x1b5), region = 36 }
   0xd   : > { %v2434_v0 = vld [vmem:[%s3484_s1] sm:$0xff]   ;;  %s1927_s19 = sshll.u32 %s1922_s16, 6  ;;  %v2435_v1 = vld [vmem:[%s3484_s1 + $0x8] sm:$0xff]   ;;  %vm442_vm0 = vcmask 261120  }
   0xe   : > { %p190_p3 = scmp.lt.s32.totalorder %s1927_s19, 255  ;;  %2354 = vmatprep.subr.bf16.mxu0 %v2434_v0  ;;  %2422 = vmatprep.subr.bf16.mxu1 %v2434_v0  ;;  %v2722_v34 = vld [vmem:[%s3485_s2] ss:$0 sm:$0xff] }
   0xf   : > { %2355 = vmatpush3.bf16.msra.mxu0 %v2434_v0  ;;  %2424 = vmatpush3.bf16.msra.mxu1 %v2434_v0  ;;  %v2727_v36 = vld [vmem:[%s3486_s3] ss:$0 sm:$0xff] }
  0x10   : > { %s3505_s19 = smov (!%p190_p3, %s1927_s19), 255  ;;  %2356 = vmatprep.subr.bf16.mxu0 %v2435_v1  ;;  %2423 = vmatprep.subr.bf16.mxu1 %v2435_v1 }
  0x11   : > { %s1928_s22 = sshll.u32 %s3505_s19, 2 }
  0x12   : > { %s2653_s25 = scalar_lea.vmem %s3483_s0, %s1928_s22  ;;  %s2889_s6 = scalar_lea.vmem %s3487_s4, %s1928_s22 }
  0x13   : > { %2357 = vmatpush3.bf16.msra.mxu0 %v2435_v1  ;;  %2425 = vmatpush3.bf16.msra.mxu1 %v2435_v1  ;;  %v2436_v2 = vld [vmem:[%s2653_s25] sm:$0xff]   ;;  %v2438_v4 = vld [vmem:[%s2653_s25 + $0x8] sm:$0xff]   ;;  %v2440_v6 = vld [vmem:[%s2653_s25 + $0x10] sm:$0xff]  }
  0x14   : > { %v2437_v3 = vld [vmem:[%s2653_s25 + $0x80] sm:$0xff]   ;;  %2358 = vmatprep.mubr.msk.bf16.mxu0 %vm442_vm0, %v2436_v2  ;;  %v2439_v5 = vld [vmem:[%s2653_s25 + $0x88] sm:$0xff]   ;;  %v2441_v7 = vld [vmem:[%s2653_s25 + $0x90] sm:$0xff]  }
  0x15   : > { %2390 = vmatprep.mubr.msk.bf16.mxu1 %vm442_vm0, %v2437_v3  ;;  %v2442_v8 = vld [vmem:[%s2653_s25 + $0x18] sm:$0xff]   ;;  %v2444_v10 = vld [vmem:[%s2653_s25 + $0x20] sm:$0xff]   ;;  %v2446_v12 = vld [vmem:[%s2653_s25 + $0x28] sm:$0xff]  }
  0x16   : > { %2359 = vmatmul.mubr.msk.bf16.vlgmr.msra.gmra.mrb[0].mxu0 %vm442_vm0, %v2438_v4  ;;  %2391 = vmatmul.mubr.msk.bf16.vlgmr.msra.gmra.mrb[0].mxu1 %vm442_vm0, %v2439_v5  ;;  %v2443_v9 = vld [vmem:[%s2653_s25 + $0x98] sm:$0xff]   ;;  %v2445_v11 = vld [vmem:[%s2653_s25 + $0xa0] sm:$0xff]   ;;  %v2447_v13 = vld [vmem:[%s2653_s25 + $0xa8] sm:$0xff]  }
  0x17   : > { %2362 = vmatprep.mubr.msk.bf16.mxu0 %vm442_vm0, %v2440_v6  ;;  %2394 = vmatprep.mubr.msk.bf16.mxu1 %vm442_vm0, %v2441_v7  ;;  %v2448_v14 = vld [vmem:[%s2653_s25 + $0x30] sm:$0xff]   ;;  %v2450_v16 = vld [vmem:[%s2653_s25 + $0x38] sm:$0xff]   ;;  %v2452_v18 = vld [vmem:[%s2653_s25 + $0x40] sm:$0xff]  }
  0x18   : > { %v2449_v15 = vld [vmem:[%s2653_s25 + $0xb0] sm:$0xff]   ;;  %v2451_v17 = vld [vmem:[%s2653_s25 + $0xb8] sm:$0xff]   ;;  %v2453_v19 = vld [vmem:[%s2653_s25 + $0xc0] sm:$0xff]  }
  0x19   : > { %v2454_v20 = vld [vmem:[%s2653_s25 + $0x48] sm:$0xff]   ;;  %v2456_v22 = vld [vmem:[%s2653_s25 + $0x50] sm:$0xff]   ;;  %v2458_v24 = vld [vmem:[%s2653_s25 + $0x58] sm:$0xff]  }
  0x1a   : > { %v2455_v21 = vld [vmem:[%s2653_s25 + $0xc8] sm:$0xff]   ;;  %v2457_v23 = vld [vmem:[%s2653_s25 + $0xd0] sm:$0xff]   ;;  %v2459_v25 = vld [vmem:[%s2653_s25 + $0xd8] sm:$0xff]  }
  0x1b   : > { %v2460_v26 = vld [vmem:[%s2653_s25 + $0x60] sm:$0xff]   ;;  %v2462_v28 = vld [vmem:[%s2653_s25 + $0x68] sm:$0xff]   ;;  %v2464_v30 = vld [vmem:[%s2653_s25 + $0x70] sm:$0xff]  }
  0x1c   : > { %v2461_v27 = vld [vmem:[%s2653_s25 + $0xe0] sm:$0xff]   ;;  %v2463_v29 = vld [vmem:[%s2653_s25 + $0xe8] sm:$0xff]   ;;  %v2465_v31 = vld [vmem:[%s2653_s25 + $0xf0] sm:$0xff]  }
  0x1d   : > { %v2466_v32 = vld [vmem:[%s2653_s25 + $0x78] sm:$0xff]  }
  0x1e   : > { %2363 = vmatmul.mubr.msk.bf16.gmra.mrb[4].mxu0 %vm442_vm0, %v2442_v8  ;;  %2395 = vmatmul.mubr.msk.bf16.gmra.mrb[4].mxu1 %vm442_vm0, %v2443_v9  ;;  %v2467_v33 = vld [vmem:[%s2653_s25 + $0xf8] sm:$0xff]  }
  0x1f   : > { %2366 = vmatprep.mubr.msk.bf16.mxu0 %vm442_vm0, %v2444_v10  ;;  %2398 = vmatprep.mubr.msk.bf16.mxu1 %vm442_vm0, %v2445_v11 }
  0x26   : > { %2367 = vmatmul.mubr.msk.bf16.gmra.mrb[8].mxu0 %vm442_vm0, %v2446_v12  ;;  %2399 = vmatmul.mubr.msk.bf16.gmra.mrb[8].mxu1 %vm442_vm0, %v2447_v13 }
  0x27   : > { %2370 = vmatprep.mubr.msk.bf16.mxu0 %vm442_vm0, %v2448_v14  ;;  %2402 = vmatprep.mubr.msk.bf16.mxu1 %vm442_vm0, %v2449_v15 }
  0x2e   : > { %2371 = vmatmul.mubr.msk.bf16.gmra.mrb[12].mxu0 %vm442_vm0, %v2450_v16  ;;  %2403 = vmatmul.mubr.msk.bf16.gmra.mrb[12].mxu1 %vm442_vm0, %v2451_v17 }
  0x2f   : > { %2374 = vmatprep.mubr.msk.bf16.mxu0 %vm442_vm0, %v2452_v18  ;;  %2406 = vmatprep.mubr.msk.bf16.mxu1 %vm442_vm0, %v2453_v19 }
  0x36   : > { %2375 = vmatmul.mubr.msk.bf16.gmra.mrb[16].mxu0 %vm442_vm0, %v2454_v20  ;;  %2407 = vmatmul.mubr.msk.bf16.gmra.mrb[16].mxu1 %vm442_vm0, %v2455_v21 }
  0x37   : > { %2378 = vmatprep.mubr.msk.bf16.mxu0 %vm442_vm0, %v2456_v22  ;;  %2410 = vmatprep.mubr.msk.bf16.mxu1 %vm442_vm0, %v2457_v23 }
  0x3e   : > { %2379 = vmatmul.mubr.msk.bf16.gmra.mrb[20].mxu0 %vm442_vm0, %v2458_v24  ;;  %2411 = vmatmul.mubr.msk.bf16.gmra.mrb[20].mxu1 %vm442_vm0, %v2459_v25 }
  0x3f   : > { %2382 = vmatprep.mubr.msk.bf16.mxu0 %vm442_vm0, %v2460_v26  ;;  %2414 = vmatprep.mubr.msk.bf16.mxu1 %vm442_vm0, %v2461_v27 }
  0x46   : > { %2383 = vmatmul.mubr.msk.bf16.gmra.mrb[24].mxu0 %vm442_vm0, %v2462_v28  ;;  %2415 = vmatmul.mubr.msk.bf16.gmra.mrb[24].mxu1 %vm442_vm0, %v2463_v29 }
  0x47   : > { %2386 = vmatprep.mubr.msk.bf16.mxu0 %vm442_vm0, %v2464_v30  ;;  %2418 = vmatprep.mubr.msk.bf16.mxu1 %vm442_vm0, %v2465_v31 }
  0x4e   : > { %2387 = vmatmul.mubr.msk.bf16.gmra.mrb[28].mxu0 %vm442_vm0, %v2466_v32  ;;  %2419 = vmatmul.mubr.msk.bf16.gmra.mrb[28].mxu1 %vm442_vm0, %v2467_v33 }
  0xe9   : > { %v2360_v35 = vpop.f32.mrb[0].mxu0  ;;  %v2392_v38 = vpop.f32.mrb[0].mxu1 }
  0xea   : > { %v837_v37 = vmul.f32 %v2360_v35, %v2722_v34  ;;  %v573_v39 = vpop.f32.mrb[1].mxu0  ;;  %v869_v40 = vmul.f32 %v2392_v38, %v2722_v34  ;;  %v701_v42 = vpop.f32.mrb[1].mxu1 }
  0xeb   : > { %v835_v41 = vmul.f32 %v2722_v34, %v573_v39  ;;  %v2361_v43 = vpop.f32.mrb[2].mxu0  ;;  %v867_v45 = vmul.f32 %v2722_v34, %v701_v42  ;;  %v2393_v47 = vpop.f32.mrb[2].mxu1 }
  0xec   : > { %v2733_v44 = vadd.f32 %v2727_v36, %v837_v37  ;;  %v838_v46 = vmul.f32 %v2361_v43, %v2722_v34  ;;  %v576_v48 = vpop.f32.mrb[3].mxu0  ;;  %v2738_v49 = vadd.f32 %v2727_v36, %v869_v40  ;;  %v870_v51 = vmul.f32 %v2393_v47, %v2722_v34  ;;  %v704_v52 = vpop.f32.mrb[3].mxu1 }
  0xed   : > { %v2741_v50 = vadd.f32 %v2727_v36, %v835_v41  ;;  %v2746_v54 = vadd.f32 %v2727_v36, %v867_v45  ;;  %v836_v56 = vmul.f32 %v2722_v34, %v576_v48  ;;  %v868_v5 = vmul.f32 %v2722_v34, %v704_v52 }
  0xee   : > { %v1036_v53 = vmul.f32 0.044715, %v2733_v44  ;;  %v2749_v55 = vadd.f32 %v2727_v36, %v838_v46  ;;  %v1068_v57 = vmul.f32 0.044715, %v2738_v49  ;;  %v2760_v0 = vadd.f32 %v2727_v36, %v870_v51 }
  0xef   : > { %v1034_v58 = vmul.f32 0.044715, %v2741_v50  ;;  %v1066_v60 = vmul.f32 0.044715, %v2746_v54  ;;  %v2765_v4 = vadd.f32 %v2727_v36, %v836_v56  ;;  %v2787_v26 = vadd.f32 %v2727_v36, %v868_v5 }
  0xf0   : > { %v1100_v59 = vmul.f32 %v1036_v53, %v2733_v44  ;;  %v1132_v61 = vmul.f32 %v1068_v57, %v2738_v49  ;;  %v1037_v63 = vmul.f32 0.044715, %v2749_v55  ;;  %v1069_v15 = vmul.f32 0.044715, %v2760_v0 }
  0xf1   : > { %v1098_v62 = vmul.f32 %v1034_v58, %v2741_v50  ;;  %v2364_v1 = vpop.f32.mrb[4].mxu0  ;;  %v1130_v3 = vmul.f32 %v1066_v60, %v2746_v54  ;;  %v2396_v6 = vpop.f32.mrb[4].mxu1  ;;  %v1035_v21 = vmul.f32 0.044715, %v2765_v4  ;;  %v1067_v37 = vmul.f32 0.044715, %v2787_v26 }
  0xf2   : > { %v1164_v2 = vmul.f32 %v1100_v59, %v2733_v44  ;;  %v589_v7 = vpop.f32.mrb[5].mxu0  ;;  %v1196_v8 = vmul.f32 %v1132_v61, %v2738_v49  ;;  %v1101_v10 = vmul.f32 %v1037_v63, %v2749_v55  ;;  %v717_v11 = vpop.f32.mrb[5].mxu1  ;;  %v1133_v25 = vmul.f32 %v1069_v15, %v2760_v0 }
  0xf3   : > { %v1162_v9 = vmul.f32 %v1098_v62, %v2741_v50  ;;  %v2365_v12 = vpop.f32.mrb[6].mxu0  ;;  %v1194_v14 = vmul.f32 %v1130_v3, %v2746_v54  ;;  %v2774_v16 = vpop.f32.mrb[6].mxu1  ;;  %v1099_v30 = vmul.f32 %v1035_v21, %v2765_v4  ;;  %v841_v40 = vmul.f32 %v2364_v1, %v2722_v34 }
  0xf4   : > { %v1228_v13 = vadd.f32 %v1164_v2, %v2733_v44  ;;  %v2776_v17 = vpop.f32.mrb[7].mxu0  ;;  %v1260_v18 = vadd.f32 %v1196_v8, %v2738_v49  ;;  %v1165_v20 = vmul.f32 %v1101_v10, %v2749_v55  ;;  %v2782_v22 = vpop.f32.mrb[7].mxu1  ;;  %v1197_v32 = vmul.f32 %v1133_v25, %v2760_v0 }
  0xf5   : > { %v1226_v19 = vadd.f32 %v1162_v9, %v2741_v50  ;;  %v1258_v24 = vadd.f32 %v1194_v14, %v2746_v54  ;;  %v1163_v35 = vmul.f32 %v1099_v30, %v2765_v4  ;;  %v873_v41 = vmul.f32 %v2396_v6, %v2722_v34 }
  0xf6   : > { %v1292_v23 = vmul.f32 0.7978846, %v1228_v13  ;;  %v1324_v27 = vmul.f32 0.7978846, %v1260_v18  ;;  %v1229_v29 = vadd.f32 %v1165_v20, %v2749_v55  ;;  %v1261_v39 = vadd.f32 %v1197_v32, %v2760_v0 }
  0xf7   : > { %v1290_v28 = vmul.f32 0.7978846, %v1226_v19  ;;  %v1322_v31 = vmul.f32 0.7978846, %v1258_v24  ;;  %v1227_v45 = vadd.f32 %v1163_v35, %v2765_v4  ;;  %v1131_v46 = vmul.f32 %v1067_v37, %v2787_v26 }
  0xf8   : > { %2468 = vtanh.f32 %v1292_v23  ;;  %v1293_v33 = vmul.f32 0.7978846, %v1229_v29  ;;  %v839_v47 = vmul.f32 %v2722_v34, %v589_v7  ;;  %v1325_v52 = vmul.f32 0.7978846, %v1261_v39 }
  0xf9   : > { %2470 = vtanh.f32 %v1324_v27  ;;  %v2794_v38 = vpop.f32.mrb[8].mxu0  ;;  %v2799_v42 = vpop.f32.mrb[8].mxu1  ;;  %v2811_v53 = vadd.f32 %v2727_v36, %v841_v40  ;;  %v2814_v56 = vadd.f32 %v2727_v36, %v873_v41  ;;  %v1291_v59 = vmul.f32 0.7978846, %v1227_v45 }
  0xfa   : > { %2472 = vtanh.f32 %v1290_v28  ;;  %v2801_v43 = vpop.f32.mrb[9].mxu0  ;;  %v2806_v48 = vpop.f32.mrb[9].mxu1  ;;  %v1195_v60 = vmul.f32 %v1131_v46, %v2787_v26  ;;  %v2822_v61 = vadd.f32 %v2727_v36, %v839_v47  ;;  %v871_v62 = vmul.f32 %v2722_v34, %v717_v11 }
  0xfb   : > { %2474 = vtanh.f32 %v1322_v31  ;;  %v2808_v51 = vpop.f32.mrb[10].mxu0  ;;  %v2816_v57 = vpop.f32.mrb[10].mxu1  ;;  %v972_v1 = vmul.f32 0.5, %v2733_v44  ;;  %v1004_v2 = vmul.f32 0.5, %v2738_v49  ;;  %v1040_v3 = vmul.f32 0.044715, %v2811_v53 }
  0xfc   : > { %2476 = vtanh.f32 %v1293_v33  ;;  %v2818_v58 = vpop.f32.mrb[11].mxu0  ;;  %v2825_v63 = vpop.f32.mrb[11].mxu1  ;;  %v970_v5 = vmul.f32 0.5, %v2741_v50  ;;  %v1259_v6 = vadd.f32 %v1195_v60, %v2787_v26  ;;  %v1072_v7 = vmul.f32 0.044715, %v2814_v56 }
  0xfd   : > { %2478 = vtanh.f32 %v1325_v52  ;;  %v1104_v8 = vmul.f32 %v1040_v3, %v2811_v53  ;;  %v1038_v9 = vmul.f32 0.044715, %v2822_v61  ;;  %v2836_v10 = vadd.f32 %v2727_v36, %v871_v62 }
  0xfe   : > { %2480 = vtanh.f32 %v1291_v59  ;;  %v842_v44 = vmul.f32 %v2365_v12, %v2722_v34  ;;  %v2840_v49 = vmul.f32 0.5, %v2746_v54  ;;  %v973_v11 = vmul.f32 0.5, %v2749_v55 }
  0xff   : > { %v1323_v50 = vmul.f32 0.7978846, %v1259_v6  ;;  %v1136_v13 = vmul.f32 %v1072_v7, %v2814_v56  ;;  %v1005_v18 = vmul.f32 0.5, %v2760_v0  ;;  %v1168_v19 = vmul.f32 %v1104_v8, %v2811_v53 }
 0x100   : > { %v1102_v20 = vmul.f32 %v1038_v9, %v2822_v61  ;;  %v1070_v21 = vmul.f32 0.044715, %v2836_v10  ;;  %v2856_v25 = vadd.f32 %v2727_v36, %v842_v44  ;;  %v971_v40 = vmul.f32 0.5, %v2765_v4 }
 0x101   : > { %v2844_v14 = vpop.f32.mrb[12].mxu0  ;;  %v2850_v12 = vpop.f32.mrb[12].mxu1  ;;  %2482 = vtanh.f32 %v1323_v50  ;;  %v1200_v24 = vmul.f32 %v1136_v13, %v2814_v56  ;;  %v1232_v30 = vadd.f32 %v1168_v19, %v2811_v53  ;;  %v1003_v41 = vmul.f32 0.5, %v2787_v26 }
 0x102   : > { %v2469_v15 = vpop.eup %2468  ;;  %v2852_v54 = vpop.f32.mrb[13].mxu0  ;;  %v1166_v31 = vmul.f32 %v1102_v20, %v2822_v61  ;;  %v1134_v32 = vmul.f32 %v1070_v21, %v2836_v10  ;;  %v874_v60 = vmul.f32 %v2774_v16, %v2722_v34  ;;  %v840_v62 = vmul.f32 %v2722_v34, %v2776_v17 }
 0x103   : > { %v2471_v23 = vpop.eup %2470  ;;  %v1420_v55 = vadd.f32 1.0, %v2469_v15  ;;  %v2858_v27 = vpop.f32.mrb[13].mxu1  ;;  %v1264_v45 = vadd.f32 %v1200_v24, %v2814_v56  ;;  %v1296_v52 = vmul.f32 0.7978846, %v1232_v30  ;;  %v1041_v50 = vmul.f32 0.044715, %v2856_v25 }
 0x104   : > { %v2860_v0 = vpop.f32.mrb[14].mxu0  ;;  %v2473_v28 = vpop.eup %2472  ;;  %v1452_v29 = vadd.f32 1.0, %v2471_v23  ;;  %v1230_v59 = vadd.f32 %v1166_v31, %v2822_v61  ;;  %v1198_v26 = vmul.f32 %v1134_v32, %v2836_v10  ;;  %v2900_v24 = vadd.f32 %v2727_v36, %v840_v62 }
 0x105   : > { %v2865_v33 = vpop.f32.mrb[14].mxu1  ;;  %v2867_v35 = vpop.f32.mrb[15].mxu0  ;;  %v1418_v39 = vadd.f32 1.0, %v2473_v28  ;;  %v1484_v3 = vmul.f32 %v1420_v55, %v972_v1  ;;  %v1328_v4 = vmul.f32 0.7978846, %v1264_v45  ;;  %2484 = vtanh.f32 %v1296_v52 }
 0x106   : > { %v2475_v37 = vpop.eup %2474  ;;  %v2872_v46 = vpop.f32.mrb[15].mxu1  ;;  %v1516_v8 = vmul.f32 %v1452_v29, %v1004_v2  ;;  %v1294_v20 = vmul.f32 0.7978846, %v1230_v59  ;;  %v1262_v16 = vadd.f32 %v1198_v26, %v2836_v10  ;;  %v1105_v1 = vmul.f32 %v1041_v50, %v2856_v25 }
 0x107   : > { %v2477_v47 = vpop.eup %2476  ;;  %v1482_v9 = vmul.f32 %v1418_v39, %v970_v5  ;;  %v1450_v44 = vadd.f32 1.0, %v2475_v37  ;;  %v2893_v2 = vadd.f32 %v2727_v36, %v874_v60  ;;  %2486 = vtanh.f32 %v1328_v4 }
 0x108   : > { %v1421_v6 = vadd.f32 1.0, %v2477_v47  ;;  %v2479_v7 = vpop.eup %2478  ;;  %v1169_v32 = vmul.f32 %v1105_v1, %v2856_v25  ;;  %2488 = vtanh.f32 %v1294_v20  ;;  %v1326_v52 = vmul.f32 0.7978846, %v1262_v16 }
 0x109   : > { %v2481_v13 = vpop.eup %2480  ;;  %v1453_v19 = vadd.f32 1.0, %v2479_v7  ;;  %v2882_v21 = vpop.f32.mrb[16].mxu0  ;;  %v1514_v30 = vmul.f32 %v1450_v44, %v2840_v49  ;;  %v1073_v37 = vmul.f32 0.044715, %v2893_v2  ;;  %v1039_v59 = vmul.f32 0.044715, %v2900_v24 }
 0x10a   : > { %v1485_v15 = vmul.f32 %v1421_v6, %v973_v11  ;;  %v1419_v17 = vadd.f32 1.0, %v2481_v13  ;;  %v2895_v5 = vpop.f32.mrb[16].mxu1  ;;  %v2897_v11 = vpop.f32.mrb[17].mxu0  ;;  %v1233_v62 = vadd.f32 %v1169_v32, %v2856_v25  ;;  %v872_v4 = vmul.f32 %v2722_v34, %v2782_v22 }
 0x10b   : > { %v1517_v55 = vmul.f32 %v1453_v19, %v1005_v18  ;;  %v2902_v28 = vpop.f32.mrb[17].mxu1  ;;  %v2904_v29 = vpop.f32.mrb[18].mxu0  ;;  %v1103_v6 = vmul.f32 %v1039_v59, %v2900_v24  ;;  %v845_v26 = vmul.f32 %v2794_v38, %v2722_v34  ;;  %v877_v7 = vmul.f32 %v2799_v42, %v2722_v34 }
 0x10c   : > { %v2137_v23 = vpack.c.bf16 %v1485_v15, %v1484_v3  ;;  %v1483_v31 = vmul.f32 %v1419_v17, %v971_v40  ;;  %v2909_v39 = vpop.f32.mrb[18].mxu1  ;;  %v2911_v45 = vpop.f32.mrb[19].mxu0  ;;  %v1137_v3 = vmul.f32 %v1073_v37, %v2893_v2  ;;  %v843_v50 = vmul.f32 %v2722_v34, %v2801_v43 }
 0x10d   : > { %v2483_v18 = vpop.eup %2482  ;;  %v2217_v47 = vpack.c.bf16 %v1517_v55, %v1516_v8  ;;  %v2915_v60 = vpop.f32.mrb[19].mxu1  ;;  %v1167_v13 = vmul.f32 %v1103_v6, %v2900_v24  ;;  %v943_v15 = vadd.f32 %v2727_v36, %v872_v4  ;;  %v2934_v22 = vadd.f32 %v2727_v36, %v845_v26 }
 0x10e   : > { %2289 = vst [vmem:[%s2889_s6 + $0x8] sm:$0xff] %v2137_v23   ;;  %v2132_v49 = vpack.c.bf16 %v1483_v31, %v1482_v9  ;;  %v1451_v40 = vadd.f32 1.0, %v2483_v18  ;;  %v1297_v9 = vmul.f32 0.7978846, %v1233_v62  ;;  %v1201_v44 = vmul.f32 %v1137_v3, %v2893_v2 }
 0x10f   : > { %2305 = vst [vmem:[%s2889_s6 + $0x88] sm:$0xff] %v2217_v47   ;;  %v2939_v42 = vmul.f32 0.5, %v2811_v53  ;;  %v1231_v16 = vadd.f32 %v1167_v13, %v2900_v24  ;;  %v1071_v17 = vmul.f32 0.044715, %v943_v15  ;;  %v2948_v1 = vadd.f32 %v2727_v36, %v877_v7  ;;  %v2485_v53 = vpop.eup %2484 }
 0x110   : > { %2133 = vst [vmem:[%s2889_s6] sm:$0xff] %v2132_v49   ;;  %v1515_v8 = vmul.f32 %v1451_v40, %v1003_v41  ;;  %2490 = vtanh.f32 %v1297_v9  ;;  %v1265_v41 = vadd.f32 %v1201_v44, %v2893_v2  ;;  %v1044_v32 = vmul.f32 0.044715, %v2934_v22 }
 0x111   : > { %v2936_v38 = vpop.f32.mrb[20].mxu0  ;;  %v2942_v20 = vpop.f32.mrb[20].mxu1  ;;  %2492 = vtanh.f32 %v1326_v52  ;;  %v2958_v37 = vadd.f32 %v2727_v36, %v843_v50  ;;  %v974_v47 = vmul.f32 0.5, %v2822_v61  ;;  %v2962_v52 = vmul.f32 0.5, %v2836_v10 }
 0x112   : > { %v2212_v19 = vpack.c.bf16 %v1515_v8, %v1514_v30  ;;  %v2944_v43 = vpop.f32.mrb[21].mxu0  ;;  %v2950_v23 = vpop.f32.mrb[21].mxu1  ;;  %v1008_v30 = vmul.f32 0.5, %v2814_v56  ;;  %v1329_v31 = vmul.f32 0.7978846, %v1265_v41  ;;  %v1135_v49 = vmul.f32 %v1071_v17, %v943_v15 }
 0x113   : > { %v2952_v55 = vpop.f32.mrb[22].mxu0  ;;  %v2487_v18 = vpop.eup %2486  ;;  %v1295_v59 = vmul.f32 0.7978846, %v1231_v16  ;;  %v977_v56 = vmul.f32 0.5, %v2856_v25  ;;  %v2970_v3 = vmul.f32 0.5, %v2893_v2  ;;  %v1108_v6 = vmul.f32 %v1044_v32, %v2934_v22 }
 0x114   : > { %2304 = vst [vmem:[%s2889_s6 + $0x80] sm:$0xff] %v2212_v19   ;;  %v2964_v40 = vpop.f32.mrb[22].mxu1  ;;  %v2966_v62 = vpop.f32.mrb[23].mxu0  ;;  %2494 = vtanh.f32 %v1329_v31  ;;  %v2976_v10 = vmul.f32 0.5, %v2900_v24  ;;  %v1199_v26 = vmul.f32 %v1135_v49, %v943_v15  ;;  %v1076_v7 = vmul.f32 0.044715, %v2948_v1 }
 0x115   : > { %v2973_v4 = vpop.f32.mrb[23].mxu1  ;;  %v2489_v61 = vpop.eup %2488  ;;  %2496 = vtanh.f32 %v1295_v59  ;;  %v1424_v8 = vadd.f32 1.0, %v2485_v53  ;;  %v1456_v9 = vadd.f32 1.0, %v2487_v18  ;;  %v1172_v25 = vmul.f32 %v1108_v6, %v2934_v22 }
 0x116   : > { %v1042_v2 = vmul.f32 0.044715, %v2958_v37  ;;  %v1263_v44 = vadd.f32 %v1199_v26, %v943_v15  ;;  %v1140_v50 = vmul.f32 %v1076_v7, %v2948_v1  ;;  %v875_v13 = vmul.f32 %v2722_v34, %v2806_v48 }
 0x117   : > { %v846_v24 = vmul.f32 %v2808_v51, %v2722_v34  ;;  %v1422_v41 = vadd.f32 1.0, %v2489_v61  ;;  %v1236_v16 = vadd.f32 %v1172_v25, %v2934_v22  ;;  %v878_v53 = vmul.f32 %v2816_v57, %v2722_v34 }
 0x118   : > { %v1106_v17 = vmul.f32 %v1042_v2, %v2958_v37  ;;  %v1327_v18 = vmul.f32 0.7978846, %v1263_v44  ;;  %v1204_v48 = vmul.f32 %v1140_v50, %v2948_v1  ;;  %v2998_v59 = vadd.f32 %v2727_v36, %v875_v13 }
 0x119   : > { %v2986_v19 = vpop.f32.mrb[24].mxu0  ;;  %v2992_v31 = vpop.f32.mrb[24].mxu1  ;;  %v3001_v51 = vadd.f32 %v2727_v36, %v846_v24  ;;  %v3007_v26 = vmul.f32 0.5, %v943_v15  ;;  %v3011_v7 = vadd.f32 %v2727_v36, %v878_v53  ;;  %v844_v25 = vmul.f32 %v2722_v34, %v2818_v58 }
 0x11a   : > { %3488 = vst [vmem:[#allocation2_spill] sm:$0xff] %v2986_v19  ;;  %3489 = vst [vmem:[#allocation3_spill] sm:$0xff] %v2992_v31  ;;  %v2994_v32 = vpop.f32.mrb[25].mxu0  ;;  %v3003_v49 = vpop.f32.mrb[25].mxu1  ;;  %v1170_v57 = vmul.f32 %v1106_v17, %v2958_v37  ;;  %2498 = vtanh.f32 %v1327_v18  ;;  %v1300_v24 = vmul.f32 0.7978846, %v1236_v16  ;;  %v1488_v17 = vmul.f32 %v1424_v8, %v2939_v42 }
 0x11b   : > { %3490 = vst [vmem:[#allocation4_spill] sm:$0xff] %v2994_v32  ;;  %3491 = vst [vmem:[#allocation5_spill] sm:$0xff] %v3003_v49  ;;  %v3005_v6 = vpop.f32.mrb[26].mxu0  ;;  %v2491_v61 = vpop.eup %2490  ;;  %v1520_v49 = vmul.f32 %v1456_v9, %v1008_v30  ;;  %v1074_v32 = vmul.f32 0.044715, %v2998_v59  ;;  %v1486_v58 = vmul.f32 %v1422_v41, %v974_v47 }
 0x11c   : > { %3492 = vst [vmem:[#allocation6_spill] sm:$0xff] %v3005_v6  ;;  %v3015_v2 = vpop.f32.mrb[26].mxu1  ;;  %v3017_v44 = vpop.f32.mrb[27].mxu0  ;;  %v1425_v13 = vadd.f32 1.0, %v2491_v61  ;;  %v1268_v6 = vadd.f32 %v1204_v48, %v2948_v1  ;;  %v1234_v53 = vadd.f32 %v1170_v57, %v2958_v37  ;;  %v1077_v18 = vmul.f32 0.044715, %v3011_v7 }
 0x11d   : > { %3493 = vst [vmem:[#allocation7_spill] sm:$0xff] %v3015_v2  ;;  %3494 = vst [vmem:[#allocation8_spill] sm:$0xff] %v3017_v44  ;;  %v2493_v50 = vpop.eup %2492  ;;  %v3020_v15 = vpop.f32.mrb[27].mxu1  ;;  %v1045_v44 = vmul.f32 0.044715, %v3001_v51  ;;  %v1138_v16 = vmul.f32 %v1074_v32, %v2998_v59  ;;  %v3029_v48 = vadd.f32 %v2727_v36, %v844_v25  ;;  %2500 = vtanh.f32 %v1300_v24 }
 0x11e   : > { %v1489_v31 = vmul.f32 %v1425_v13, %v977_v56  ;;  %v1332_v2 = vmul.f32 0.7978846, %v1268_v6  ;;  %v2495_v19 = vpop.eup %2494  ;;  %v1454_v61 = vadd.f32 1.0, %v2493_v50  ;;  %v1298_v41 = vmul.f32 0.7978846, %v1234_v53 }
 0x11f   : > { %v2497_v42 = vpop.eup %2496  ;;  %v1457_v8 = vadd.f32 1.0, %v2495_v19  ;;  %v1109_v47 = vmul.f32 %v1045_v44, %v3001_v51  ;;  %v1202_v6 = vmul.f32 %v1138_v16, %v2998_v59  ;;  %v1141_v57 = vmul.f32 %v1077_v18, %v3011_v7 }
 0x120   : > { %v2147_v30 = vpack.c.bf16 %v1489_v31, %v1488_v17  ;;  %v1423_v9 = vadd.f32 1.0, %v2497_v42  ;;  %2502 = vtanh.f32 %v1332_v2  ;;  %v1043_v31 = vmul.f32 0.044715, %v3029_v48 }
 0x121   : > { %v3032_v56 = vpop.f32.mrb[28].mxu0  ;;  %v3036_v32 = vpop.f32.mrb[28].mxu1  ;;  %v1521_v25 = vmul.f32 %v1457_v8, %v2970_v3  ;;  %v1173_v19 = vmul.f32 %v1109_v47, %v3001_v51  ;;  %v1266_v17 = vadd.f32 %v1202_v6, %v2998_v59  ;;  %v1205_v53 = vmul.f32 %v1141_v57, %v3011_v7 }
 0x122   : > { %v3038_v50 = vpop.f32.mrb[29].mxu0  ;;  %2291 = vst [vmem:[%s2889_s6 + $0x18] sm:$0xff] %v2147_v30   ;;  %v3044_v44 = vpop.f32.mrb[29].mxu1  ;;  %v1487_v24 = vmul.f32 %v1423_v9, %v2976_v10  ;;  %v876_v16 = vmul.f32 %v2722_v34, %v2825_v63  ;;  %v1107_v30 = vmul.f32 %v1043_v31, %v3029_v48  ;;  %v849_v10 = vmul.f32 %v2844_v14, %v2722_v34 }
 0x123   : > { %v3046_v13 = vpop.f32.mrb[30].mxu0  ;;  %v3053_v3 = vpop.f32.mrb[30].mxu1  ;;  %v2227_v18 = vpack.c.bf16 %v1521_v25, %v1520_v49  ;;  %v1237_v42 = vadd.f32 %v1173_v19, %v3001_v51  ;;  %2504 = vtanh.f32 %v1298_v41  ;;  %v1269_v9 = vadd.f32 %v1205_v53, %v3011_v7 }
 0x124   : > { %v3055_v2 = vpop.f32.mrb[31].mxu0  ;;  %v3061_v8 = vpop.f32.mrb[31].mxu1  ;;  %v2142_v47 = vpack.c.bf16 %v1487_v24, %v1486_v58  ;;  %v947_v63 = vadd.f32 %v2727_v36, %v876_v16  ;;  %v1171_v49 = vmul.f32 %v1107_v30, %v3029_v48  ;;  %v3068_v25 = vadd.f32 %v2727_v36, %v849_v10 }
 0x125   : > { %3495 = vst [vmem:[#allocation9_spill] sm:$0xff] %v3061_v8  ;;  %v2499_v6 = vpop.eup %2498  ;;  %2307 = vst [vmem:[%s2889_s6 + $0x98] sm:$0xff] %v2227_v18   ;;  %v1301_v57 = vmul.f32 0.7978846, %v1237_v42  ;;  %v881_v19 = vmul.f32 %v2850_v12, %v2722_v34  ;;  %v980_v58 = vmul.f32 0.5, %v2934_v22  ;;  %v1012_v24 = vmul.f32 0.5, %v2948_v1 }
 0x126   : > { %2290 = vst [vmem:[%s2889_s6 + $0x10] sm:$0xff] %v2142_v47   ;;  %v1455_v14 = vadd.f32 1.0, %v2499_v6  ;;  %v1330_v41 = vmul.f32 0.7978846, %v1266_v17  ;;  %v1333_v31 = vmul.f32 0.7978846, %v1269_v9  ;;  %v1235_v53 = vadd.f32 %v1171_v49, %v3029_v48 }
 0x127   : > { %2506 = vtanh.f32 %v1301_v57  ;;  %v1075_v16 = vmul.f32 0.044715, %v947_v63  ;;  %v1518_v18 = vmul.f32 %v1454_v61, %v2962_v52  ;;  %v1048_v12 = vmul.f32 0.044715, %v3068_v25  ;;  %v2501_v30 = vpop.eup %2500 }
 0x128   : > { %v1519_v42 = vmul.f32 %v1455_v14, %v3007_v26  ;;  %2508 = vtanh.f32 %v1333_v31  ;;  %v978_v10 = vmul.f32 0.5, %v2958_v37  ;;  %v1299_v22 = vmul.f32 0.7978846, %v1235_v53 }
 0x129   : > { %v1139_v17 = vmul.f32 %v1075_v16, %v947_v63  ;;  %v3081_v47 = vadd.f32 %v2727_v36, %v881_v19  ;;  %2510 = vtanh.f32 %v1330_v41  ;;  %v1112_v9 = vmul.f32 %v1048_v12, %v3068_v25 }
 0x12a   : > { %v2222_v1 = vpack.c.bf16 %v1519_v42, %v1518_v18  ;;  %v847_v52 = vmul.f32 %v2722_v34, %v2852_v54  ;;  %v2503_v26 = vpop.eup %2502  ;;  %v3087_v61 = vmul.f32 0.5, %v2998_v59  ;;  %v981_v6 = vmul.f32 0.5, %v3001_v51 }
 0x12b   : > { %2512 = vtanh.f32 %v1299_v22  ;;  %v1203_v37 = vmul.f32 %v1139_v17, %v947_v63  ;;  %v1428_v57 = vadd.f32 1.0, %v2501_v30  ;;  %v1176_v49 = vmul.f32 %v1112_v9, %v3068_v25 }
 0x12c   : > { %2306 = vst [vmem:[%s2889_s6 + $0x90] sm:$0xff] %v2222_v1   ;;  %v1080_v19 = vmul.f32 0.044715, %v3081_v47  ;;  %v3094_v14 = vadd.f32 %v2727_v36, %v847_v52  ;;  %v1013_v41 = vmul.f32 0.5, %v3011_v7  ;;  %v879_v59 = vmul.f32 %v2722_v34, %v2858_v27 }
 0x12d   : > { %v1267_v54 = vadd.f32 %v1203_v37, %v947_v63  ;;  %v850_v51 = vmul.f32 %v2860_v0, %v2722_v34  ;;  %v2505_v31 = vpop.eup %2504  ;;  %v979_v53 = vmul.f32 0.5, %v3029_v48  ;;  %v3102_v16 = vmul.f32 0.5, %v947_v63 }
 0x12e   : > { %v1144_v18 = vmul.f32 %v1080_v19, %v3081_v47  ;;  %v1046_v42 = vmul.f32 0.044715, %v3094_v14  ;;  %v1460_v12 = vadd.f32 1.0, %v2503_v26  ;;  %v1240_v7 = vadd.f32 %v1176_v49, %v3068_v25 }
 0x12f   : > { %v1331_v30 = vmul.f32 0.7978846, %v1267_v54  ;;  %v3108_v22 = vadd.f32 %v2727_v36, %v879_v59  ;;  %v1492_v27 = vmul.f32 %v1428_v57, %v980_v58  ;;  %v3113_v48 = vadd.f32 %v2727_v36, %v850_v51 }
 0x130   : > { %v1208_v17 = vmul.f32 %v1144_v18, %v3081_v47  ;;  %v1110_v0 = vmul.f32 %v1046_v42, %v3094_v14  ;;  %v882_v9 = vmul.f32 %v2865_v33, %v2722_v34  ;;  %v848_v52 = vmul.f32 %v2722_v34, %v2867_v35 }
 0x131   : > { %v2507_v63 = vpop.eup %2506  ;;  %2514 = vtanh.f32 %v1331_v30  ;;  %v1078_v1 = vmul.f32 0.044715, %v3108_v22  ;;  %v1426_v37 = vadd.f32 1.0, %v2505_v31  ;;  %v1524_v19 = vmul.f32 %v1460_v12, %v1012_v24 }
 0x132   : > { %v2509_v26 = vpop.eup %2508  ;;  %v1429_v58 = vadd.f32 1.0, %v2507_v63  ;;  %v1272_v57 = vadd.f32 %v1208_v17, %v3081_v47  ;;  %v1174_v49 = vmul.f32 %v1110_v0, %v3094_v14  ;;  %v1304_v59 = vmul.f32 0.7978846, %v1240_v7 }
 0x133   : > { %v1461_v54 = vadd.f32 1.0, %v2509_v26  ;;  %v1142_v51 = vmul.f32 %v1078_v1, %v3108_v22  ;;  %v2511_v18 = vpop.eup %2510  ;;  %v1049_v35 = vmul.f32 0.044715, %v3113_v48  ;;  %v953_v17 = vadd.f32 %v2727_v36, %v882_v9 }
 0x134   : > { %v1493_v42 = vmul.f32 %v1429_v58, %v981_v6  ;;  %v1336_v30 = vmul.f32 0.7978846, %v1272_v57  ;;  %v1238_v33 = vadd.f32 %v1174_v49, %v3094_v14  ;;  %v3128_v24 = vadd.f32 %v2727_v36, %v848_v52 }
 0x135   : > { %v2513_v8 = vpop.eup %2512  ;;  %v1525_v31 = vmul.f32 %v1461_v54, %v1013_v41  ;;  %v1206_v63 = vmul.f32 %v1142_v51, %v3108_v22  ;;  %v1490_v12 = vmul.f32 %v1426_v37, %v978_v10  ;;  %v1458_v1 = vadd.f32 1.0, %v2511_v18 }
 0x136   : > { %v2157_v7 = vpack.c.bf16 %v1493_v42, %v1492_v27  ;;  %v1427_v0 = vadd.f32 1.0, %v2513_v8  ;;  %v1302_v6 = vmul.f32 0.7978846, %v1238_v33  ;;  %2516 = vtanh.f32 %v1304_v59 }
 0x137   : > { %v2237_v26 = vpack.c.bf16 %v1525_v31, %v1524_v19  ;;  %v1113_v58 = vmul.f32 %v1049_v35, %v3113_v48  ;;  %2518 = vtanh.f32 %v1336_v30  ;;  %v1270_v41 = vadd.f32 %v1206_v63, %v3108_v22 }
 0x138   : > { %2293 = vst [vmem:[%s2889_s6 + $0x28] sm:$0xff] %v2157_v7   ;;  %v1491_v57 = vmul.f32 %v1427_v0, %v979_v53  ;;  %v1081_v49 = vmul.f32 0.044715, %v953_v17  ;;  %2520 = vtanh.f32 %v1302_v6  ;;  %v1047_v10 = vmul.f32 0.044715, %v3128_v24 }
 0x139   : > { %2309 = vst [vmem:[%s2889_s6 + $0xa8] sm:$0xff] %v2237_v26   ;;  %v1177_v9 = vmul.f32 %v1113_v58, %v3113_v48  ;;  %v880_v8 = vmul.f32 %v2722_v34, %v2872_v46  ;;  %v853_v37 = vmul.f32 %v2882_v21, %v2722_v34  ;;  %v885_v53 = vmul.f32 %v2895_v5, %v2722_v34 }
 0x13a   : > { %v2152_v27 = vpack.c.bf16 %v1491_v57, %v1490_v12  ;;  %v1145_v52 = vmul.f32 %v1081_v49, %v953_v17  ;;  %v984_v54 = vmul.f32 0.5, %v3068_v25  ;;  %v1111_v51 = vmul.f32 %v1047_v10, %v3128_v24 }
 0x13b   : > { %v2515_v19 = vpop.eup %2514  ;;  %v1241_v59 = vadd.f32 %v1177_v9, %v3113_v48  ;;  %v951_v18 = vadd.f32 %v2727_v36, %v880_v8  ;;  %v1016_v46 = vmul.f32 0.5, %v3081_v47  ;;  %v3149_v33 = vadd.f32 %v2727_v36, %v853_v37 }
 0x13c   : > { %2292 = vst [vmem:[%s2889_s6 + $0x20] sm:$0xff] %v2152_v27   ;;  %v1459_v42 = vadd.f32 1.0, %v2515_v19  ;;  %v1209_v30 = vmul.f32 %v1145_v52, %v953_v17  ;;  %v1334_v21 = vmul.f32 0.7978846, %v1270_v41  ;;  %v1175_v5 = vmul.f32 %v1111_v51, %v3128_v24 }
 0x13d   : > { %v1305_v35 = vmul.f32 0.7978846, %v1241_v59  ;;  %v3153_v25 = vadd.f32 %v2727_v36, %v885_v53  ;;  %v1522_v31 = vmul.f32 %v1458_v1, %v3087_v61  ;;  %v1079_v7 = vmul.f32 0.044715, %v951_v18 }
 0x13e   : > { %v1523_v63 = vmul.f32 %v1459_v42, %v3102_v16  ;;  %v1273_v12 = vadd.f32 %v1209_v30, %v953_v17  ;;  %v982_v47 = vmul.f32 0.5, %v3094_v14  ;;  %v1239_v0 = vadd.f32 %v1175_v5, %v3128_v24 }
 0x13f   : > { %2522 = vtanh.f32 %v1305_v35  ;;  %v1052_v6 = vmul.f32 0.044715, %v3149_v33  ;;  %v3161_v58 = vmul.f32 0.5, %v3108_v22  ;;  %v1143_v41 = vmul.f32 %v1079_v7, %v951_v18 }
 0x140   : > { %v2232_v26 = vpack.c.bf16 %v1523_v63, %v1522_v31  ;;  %v1337_v57 = vmul.f32 0.7978846, %v1273_v12  ;;  %v2517_v49 = vpop.eup %2516  ;;  %2524 = vtanh.f32 %v1334_v21  ;;  %v1303_v61 = vmul.f32 0.7978846, %v1239_v0 }
 0x141   : > { %v1116_v16 = vmul.f32 %v1052_v6, %v3149_v33  ;;  %v1084_v1 = vmul.f32 0.044715, %v3153_v25  ;;  %v2519_v9 = vpop.eup %2518  ;;  %v1207_v14 = vmul.f32 %v1143_v41, %v951_v18  ;;  %v851_v10 = vmul.f32 %v2722_v34, %v2897_v11 }
 0x142   : > { %2308 = vst [vmem:[%s2889_s6 + $0xa0] sm:$0xff] %v2232_v26   ;;  %2526 = vtanh.f32 %v1337_v57  ;;  %v883_v22 = vmul.f32 %v2722_v34, %v2902_v28  ;;  %v2521_v8 = vpop.eup %2520  ;;  %v985_v27 = vmul.f32 0.5, %v3113_v48  ;;  %v1017_v52 = vmul.f32 0.5, %v953_v17 }
 0x143   : > { %2528 = vtanh.f32 %v1303_v61  ;;  %v1180_v37 = vmul.f32 %v1116_v16, %v3149_v33  ;;  %v1271_v53 = vadd.f32 %v1207_v14, %v951_v18  ;;  %v1148_v19 = vmul.f32 %v1084_v1, %v3153_v25 }
 0x144   : > { %v3174_v59 = vadd.f32 %v2727_v36, %v851_v10  ;;  %v3177_v51 = vadd.f32 %v2727_v36, %v883_v22  ;;  %v1432_v11 = vadd.f32 1.0, %v2517_v49  ;;  %v1464_v42 = vadd.f32 1.0, %v2519_v9 }
 0x145   : > { %v1244_v28 = vadd.f32 %v1180_v37, %v3149_v33  ;;  %v854_v48 = vmul.f32 %v2904_v29, %v2722_v34  ;;  %v1430_v17 = vadd.f32 1.0, %v2521_v8  ;;  %v1335_v30 = vmul.f32 0.7978846, %v1271_v53 }
 0x146   : > { %v1212_v21 = vmul.f32 %v1148_v19, %v3153_v25  ;;  %v886_v35 = vmul.f32 %v2909_v39, %v2722_v34  ;;  %v983_v5 = vmul.f32 0.5, %v3128_v24  ;;  %v1050_v63 = vmul.f32 0.044715, %v3174_v59 }
 0x147   : > { %v1308_v31 = vmul.f32 0.7978846, %v1244_v28  ;;  %v3188_v12 = vadd.f32 %v2727_v36, %v854_v48  ;;  %v1015_v7 = vmul.f32 0.5, %v951_v18  ;;  %2530 = vtanh.f32 %v1335_v30 }
 0x148   : > { %v1276_v0 = vadd.f32 %v1212_v21, %v3153_v25  ;;  %v1082_v29 = vmul.f32 0.044715, %v3177_v51  ;;  %v1496_v26 = vmul.f32 %v1432_v11, %v984_v54  ;;  %v1528_v57 = vmul.f32 %v1464_v42, %v1016_v46 }
 0x149   : > { %v2523_v6 = vpop.eup %2522  ;;  %v1114_v41 = vmul.f32 %v1050_v63, %v3174_v59  ;;  %v1053_v39 = vmul.f32 0.044715, %v3188_v12  ;;  %v1494_v24 = vmul.f32 %v1430_v17, %v982_v47  ;;  %v3196_v16 = vadd.f32 %v2727_v36, %v886_v35 }
 0x14a   : > { %v1433_v49 = vadd.f32 1.0, %v2523_v6  ;;  %v1146_v61 = vmul.f32 %v1082_v29, %v3177_v51  ;;  %v2525_v18 = vpop.eup %2524  ;;  %2532 = vtanh.f32 %v1308_v31  ;;  %v852_v54 = vmul.f32 %v2722_v34, %v2911_v45 }
 0x14b   : > { %v1178_v1 = vmul.f32 %v1114_v41, %v3174_v59  ;;  %v1117_v9 = vmul.f32 %v1053_v39, %v3188_v12  ;;  %v1340_v10 = vmul.f32 0.7978846, %v1276_v0  ;;  %v884_v22 = vmul.f32 %v2722_v34, %v2915_v60  ;;  %v3229_v39 = vld [vmem:[%s3485_s2] ss:$0 sm:$0xff] }
 0x14c   : > { %v2527_v46 = vpop.eup %2526  ;;  %v1497_v14 = vmul.f32 %v1433_v49, %v985_v27  ;;  %v1210_v47 = vmul.f32 %v1146_v61, %v3177_v51  ;;  %v1085_v11 = vmul.f32 0.044715, %v3196_v16  ;;  %v3210_v27 = vadd.f32 %v2727_v36, %v852_v54 }
 0x14d   : > { %v2529_v8 = vpop.eup %2528  ;;  %v1465_v37 = vadd.f32 1.0, %v2527_v46  ;;  %v1242_v53 = vadd.f32 %v1178_v1, %v3174_v59  ;;  %v1181_v19 = vmul.f32 %v1117_v9, %v3188_v12  ;;  %v1462_v60 = vadd.f32 1.0, %v2525_v18 }
 0x14e   : > { %v2167_v42 = vpack.c.bf16 %v1497_v14, %v1496_v26  ;;  %v1431_v28 = vadd.f32 1.0, %v2529_v8  ;;  %v1274_v45 = vadd.f32 %v1210_v47, %v3177_v51  ;;  %v1149_v34 = vmul.f32 %v1085_v11, %v3196_v16  ;;  %v3221_v26 = vld [vmem:[%s3486_s3] ss:$0 sm:$0xff] }
 0x14f   : > { %v1529_v48 = vmul.f32 %v1465_v37, %v1017_v52  ;;  %v1306_v17 = vmul.f32 0.7978846, %v1242_v53  ;;  %v1245_v30 = vadd.f32 %v1181_v19, %v3188_v12  ;;  %2534 = vtanh.f32 %v1340_v10 }
 0x150   : > { %2295 = vst [vmem:[%s2889_s6 + $0x38] sm:$0xff] %v2167_v42   ;;  %v1495_v21 = vmul.f32 %v1431_v28, %v983_v5  ;;  %v1051_v35 = vmul.f32 0.044715, %v3210_v27  ;;  %v1338_v63 = vmul.f32 0.7978846, %v1274_v45  ;;  %v1213_v36 = vmul.f32 %v1149_v34, %v3196_v16 }
 0x151   : > { %v2247_v31 = vpack.c.bf16 %v1529_v48, %v1528_v57  ;;  %v1309_v0 = vmul.f32 0.7978846, %v1245_v30  ;;  %v2531_v29 = vpop.eup %2530  ;;  %2536 = vtanh.f32 %v1306_v17  ;;  %v955_v5 = vadd.f32 %v3221_v26, %v884_v22 }
 0x152   : > { %v2162_v52 = vpack.c.bf16 %v1495_v21, %v1494_v24  ;;  %v1115_v6 = vmul.f32 %v1051_v35, %v3210_v27  ;;  %v1463_v41 = vadd.f32 1.0, %v2531_v29  ;;  %v1277_v57 = vadd.f32 %v1213_v36, %v3196_v16 }
 0x153   : > { %2311 = vst [vmem:[%s2889_s6 + $0xb8] sm:$0xff] %v2247_v31   ;;  %2538 = vtanh.f32 %v1309_v0  ;;  %v857_v24 = vmul.f32 %v3229_v39, %v2936_v38  ;;  %v1526_v49 = vmul.f32 %v1462_v60, %v3161_v58  ;;  %v1083_v18 = vmul.f32 0.044715, %v955_v5 }
 0x154   : > { %2294 = vst [vmem:[%s2889_s6 + $0x30] sm:$0xff] %v2162_v52   ;;  %v1179_v61 = vmul.f32 %v1115_v6, %v3210_v27  ;;  %v2533_v1 = vpop.eup %2532  ;;  %v1527_v9 = vmul.f32 %v1463_v41, %v1015_v7  ;;  %v1341_v54 = vmul.f32 0.7978846, %v1277_v57  ;;  %v889_v14 = vmul.f32 %v3229_v39, %v2942_v20 }
 0x155   : > { %v3237_v46 = vadd.f32 %v3221_v26, %v857_v24  ;;  %2540 = vtanh.f32 %v1338_v63  ;;  %v1147_v38 = vmul.f32 %v1083_v18, %v955_v5  ;;  %v855_v58 = vmul.f32 %v3229_v39, %v2944_v43 }
 0x156   : > { %v1243_v10 = vadd.f32 %v1179_v61, %v3210_v27  ;;  %v2242_v47 = vpack.c.bf16 %v1527_v9, %v1526_v49  ;;  %v988_v22 = vmul.f32 0.5, %v3149_v33  ;;  %v1020_v7 = vmul.f32 0.5, %v3153_v25 }
 0x157   : > { %2542 = vtanh.f32 %v1341_v54  ;;  %v1211_v37 = vmul.f32 %v1147_v38, %v955_v5  ;;  %v1056_v53 = vmul.f32 0.044715, %v3237_v46  ;;  %v3248_v19 = vadd.f32 %v3221_v26, %v889_v14 }
 0x158   : > { %v1307_v8 = vmul.f32 0.7978846, %v1243_v10  ;;  %2310 = vst [vmem:[%s2889_s6 + $0xb0] sm:$0xff] %v2242_v47   ;;  %v986_v20 = vmul.f32 0.5, %v3174_v59  ;;  %v3253_v11 = vadd.f32 %v3221_v26, %v855_v58  ;;  %v887_v43 = vmul.f32 %v3229_v39, %v2950_v23 }
 0x159   : > { %v858_v33 = vmul.f32 %v3229_v39, %v2952_v55  ;;  %v2535_v25 = vpop.eup %2534  ;;  %v3260_v42 = vmul.f32 0.5, %v3177_v51  ;;  %v1275_v28 = vadd.f32 %v1211_v37, %v955_v5  ;;  %v1120_v45 = vmul.f32 %v1056_v53, %v3237_v46 }
 0x15a   : > { %2544 = vtanh.f32 %v1307_v8  ;;  %v989_v48 = vmul.f32 0.5, %v3188_v12  ;;  %v1088_v59 = vmul.f32 0.044715, %v3248_v19  ;;  %v1054_v17 = vmul.f32 0.044715, %v3253_v11 }
 0x15b   : > { %v3267_v30 = vadd.f32 %v3221_v26, %v887_v43  ;;  %v2537_v23 = vpop.eup %2536  ;;  %v1436_v34 = vadd.f32 1.0, %v2533_v1  ;;  %v1339_v55 = vmul.f32 0.7978846, %v1275_v28  ;;  %v1184_v60 = vmul.f32 %v1120_v45, %v3237_v46 }
 0x15c   : > { %v3271_v51 = vadd.f32 %v3221_v26, %v858_v33  ;;  %v1021_v35 = vmul.f32 0.5, %v3196_v16  ;;  %v987_v12 = vmul.f32 0.5, %v3210_v27  ;;  %v1152_v31 = vmul.f32 %v1088_v59, %v3248_v19 }
 0x15d   : > { %v2539_v21 = vpop.eup %2538  ;;  %v1118_v63 = vmul.f32 %v1054_v17, %v3253_v11  ;;  %v1468_v0 = vadd.f32 1.0, %v2535_v25  ;;  %2546 = vtanh.f32 %v1339_v55  ;;  %v1248_v29 = vadd.f32 %v1184_v60, %v3237_v46 }
 0x15e   : > { %v1437_v36 = vadd.f32 1.0, %v2539_v21  ;;  %v1019_v52 = vmul.f32 0.5, %v955_v5  ;;  %v1216_v6 = vmul.f32 %v1152_v31, %v3248_v19  ;;  %v1086_v57 = vmul.f32 0.044715, %v3267_v30 }
 0x15f   : > { %v1182_v41 = vmul.f32 %v1118_v63, %v3253_v11  ;;  %v2541_v24 = vpop.eup %2540  ;;  %v1500_v16 = vmul.f32 %v1436_v34, %v988_v22  ;;  %v1434_v49 = vadd.f32 1.0, %v2537_v23  ;;  %v1057_v61 = vmul.f32 0.044715, %v3271_v51  ;;  %v3497_v63 = vld [vmem:[#allocation3_spill] sm:$0xff] }
 0x160   : > { %v1501_v27 = vmul.f32 %v1437_v36, %v989_v48  ;;  %v1312_v1 = vmul.f32 0.7978846, %v1248_v29  ;;  %v1280_v9 = vadd.f32 %v1216_v6, %v3248_v19  ;;  %v1150_v54 = vmul.f32 %v1086_v57, %v3267_v30 }
 0x161   : > { %v2543_v18 = vpop.eup %2542  ;;  %v890_v5 = vmul.f32 %v3229_v39, %v2964_v40  ;;  %v1532_v14 = vmul.f32 %v1468_v0, %v1020_v7  ;;  %v1121_v58 = vmul.f32 %v1057_v61, %v3271_v51  ;;  %v1466_v47 = vadd.f32 1.0, %v2541_v24 }
 0x162   : > { %v2177_v10 = vpack.c.bf16 %v1501_v27, %v1500_v16  ;;  %v1469_v38 = vadd.f32 1.0, %v2543_v18  ;;  %v1246_v22 = vadd.f32 %v1182_v41, %v3253_v11  ;;  %v1214_v8 = vmul.f32 %v1150_v54, %v3267_v30  ;;  %v3498_v18 = vld [vmem:[#allocation4_spill] sm:$0xff] }
 0x163   : > { %v3290_v37 = vadd.f32 %v3221_v26, %v890_v5  ;;  %v1185_v33 = vmul.f32 %v1121_v58, %v3271_v51  ;;  %v856_v40 = vmul.f32 %v3229_v39, %v2966_v62  ;;  %v888_v7 = vmul.f32 %v3229_v39, %v2973_v4 }
 0x164   : > { %v2545_v53 = vpop.eup %2544  ;;  %2297 = vst [vmem:[%s2889_s6 + $0x48] sm:$0xff] %v2177_v10   ;;  %v1533_v43 = vmul.f32 %v1469_v38, %v1021_v35  ;;  %v1498_v25 = vmul.f32 %v1434_v49, %v986_v20  ;;  %2548 = vtanh.f32 %v1312_v1  ;;  %v1344_v45 = vmul.f32 0.7978846, %v1280_v9  ;;  %v3496_v35 = vld [vmem:[#allocation2_spill] sm:$0xff] }
 0x165   : > { %v1435_v28 = vadd.f32 1.0, %v2545_v53  ;;  %v1278_v59 = vadd.f32 %v1214_v8, %v3267_v30  ;;  %v1249_v17 = vadd.f32 %v1185_v33, %v3271_v51  ;;  %v1089_v23 = vmul.f32 0.044715, %v3290_v37  ;;  %v3499_v53 = vld [vmem:[#allocation5_spill] sm:$0xff] }
 0x166   : > { %v2257_v48 = vpack.c.bf16 %v1533_v43, %v1532_v14  ;;  %v1310_v55 = vmul.f32 0.7978846, %v1246_v22  ;;  %v927_v60 = vadd.f32 %v3221_v26, %v856_v40  ;;  %v959_v62 = vadd.f32 %v3221_v26, %v888_v7 }
 0x167   : > { %v1499_v34 = vmul.f32 %v1435_v28, %v987_v12  ;;  %v2547_v21 = vpop.eup %2546  ;;  %v1313_v4 = vmul.f32 0.7978846, %v1249_v17  ;;  %v1153_v20 = vmul.f32 %v1089_v23, %v3290_v37  ;;  %v861_v31 = vmul.f32 %v3229_v39, %v3496_v35 }
 0x168   : > { %2313 = vst [vmem:[%s2889_s6 + $0xc8] sm:$0xff] %v2257_v48   ;;  %v893_v0 = vmul.f32 %v3229_v39, %v3497_v63  ;;  %v1530_v36 = vmul.f32 %v1466_v47, %v3260_v42  ;;  %v1467_v29 = vadd.f32 1.0, %v2547_v21  ;;  %2550 = vtanh.f32 %v1344_v45 }
 0x169   : > { %v2172_v12 = vpack.c.bf16 %v1499_v34, %v1498_v25  ;;  %v1342_v6 = vmul.f32 0.7978846, %v1278_v59  ;;  %2552 = vtanh.f32 %v1313_v4  ;;  %v1217_v41 = vmul.f32 %v1153_v20, %v3290_v37 }
 0x16a   : > { %v1055_v57 = vmul.f32 0.044715, %v927_v60  ;;  %v1531_v24 = vmul.f32 %v1467_v29, %v1019_v52  ;;  %v1087_v16 = vmul.f32 0.044715, %v959_v62  ;;  %v3313_v49 = vadd.f32 %v3221_v26, %v861_v31 }
 0x16b   : > { %2296 = vst [vmem:[%s2889_s6 + $0x40] sm:$0xff] %v2172_v12   ;;  %v3316_v27 = vadd.f32 %v3221_v26, %v893_v0  ;;  %2554 = vtanh.f32 %v1310_v55  ;;  %v1281_v42 = vadd.f32 %v1217_v41, %v3290_v37  ;;  %v859_v1 = vmul.f32 %v3229_v39, %v3498_v18 }
 0x16c   : > { %v1119_v61 = vmul.f32 %v1055_v57, %v927_v60  ;;  %v2252_v9 = vpack.c.bf16 %v1531_v24, %v1530_v36  ;;  %v992_v54 = vmul.f32 0.5, %v3237_v46  ;;  %v1024_v52 = vmul.f32 0.5, %v3248_v19  ;;  %v3501_v24 = vld [vmem:[#allocation7_spill] sm:$0xff] }
 0x16d   : > { %v1151_v5 = vmul.f32 %v1087_v16, %v959_v62  ;;  %2556 = vtanh.f32 %v1342_v6  ;;  %v1345_v14 = vmul.f32 0.7978846, %v1281_v42  ;;  %v1060_v38 = vmul.f32 0.044715, %v3313_v49 }
 0x16e   : > { %v1183_v10 = vmul.f32 %v1119_v61, %v927_v60  ;;  %v2549_v58 = vpop.eup %2548  ;;  %2312 = vst [vmem:[%s2889_s6 + $0xc0] sm:$0xff] %v2252_v9   ;;  %v1092_v22 = vmul.f32 0.044715, %v3316_v27  ;;  %v3327_v8 = vadd.f32 %v3221_v26, %v859_v1  ;;  %v891_v43 = vmul.f32 %v3229_v39, %v3499_v53  ;;  %v3502_v1 = vld [vmem:[#allocation8_spill] sm:$0xff] }
 0x16f   : > { %v1215_v47 = vmul.f32 %v1151_v5, %v959_v62  ;;  %v3332_v46 = vmul.f32 0.5, %v3253_v11  ;;  %2558 = vtanh.f32 %v1345_v14  ;;  %v1124_v33 = vmul.f32 %v1060_v38, %v3313_v49 }
 0x170   : > { %v1247_v19 = vadd.f32 %v1183_v10, %v927_v60  ;;  %v3336_v40 = vmul.f32 0.5, %v3267_v30  ;;  %v993_v7 = vmul.f32 0.5, %v3271_v51  ;;  %v1156_v28 = vmul.f32 %v1092_v22, %v3316_v27 }
 0x171   : > { %v1279_v25 = vadd.f32 %v1215_v47, %v959_v62  ;;  %v1440_v45 = vadd.f32 1.0, %v2549_v58  ;;  %v1188_v59 = vmul.f32 %v1124_v33, %v3313_v49  ;;  %v1058_v17 = vmul.f32 0.044715, %v3327_v8 }
 0x172   : > { %v1311_v48 = vmul.f32 0.7978846, %v1247_v19  ;;  %v2551_v11 = vpop.eup %2550  ;;  %v1025_v23 = vmul.f32 0.5, %v3290_v37  ;;  %v1220_v55 = vmul.f32 %v1156_v28, %v3316_v27  ;;  %v3345_v30 = vadd.f32 %v3221_v26, %v891_v43 }
 0x173   : > { %v1343_v34 = vmul.f32 0.7978846, %v1279_v25  ;;  %v2553_v21 = vpop.eup %2552  ;;  %v991_v51 = vmul.f32 0.5, %v927_v60  ;;  %v1252_v4 = vadd.f32 %v1188_v59, %v3313_v49  ;;  %v1122_v20 = vmul.f32 %v1058_v17, %v3327_v8  ;;  %v3500_v60 = vld [vmem:[#allocation6_spill] sm:$0xff] }
 0x174   : > { %2560 = vtanh.f32 %v1311_v48  ;;  %v1441_v35 = vadd.f32 1.0, %v2553_v21  ;;  %v1023_v31 = vmul.f32 0.5, %v959_v62  ;;  %v1284_v63 = vadd.f32 %v1220_v55, %v3316_v27 }
 0x175   : > { %2562 = vtanh.f32 %v1343_v34  ;;  %v2555_v0 = vpop.eup %2554  ;;  %v1504_v37 = vmul.f32 %v1440_v45, %v992_v54  ;;  %v1472_v36 = vadd.f32 1.0, %v2551_v11  ;;  %v1186_v12 = vmul.f32 %v1122_v20, %v3327_v8 }
 0x176   : > { %v1090_v29 = vmul.f32 0.044715, %v3345_v30  ;;  %v1505_v6 = vmul.f32 %v1441_v35, %v993_v7  ;;  %v1316_v41 = vmul.f32 0.7978846, %v1252_v4  ;;  %v862_v57 = vmul.f32 %v3229_v39, %v3500_v60 }
 0x177   : > { %v894_v16 = vmul.f32 %v3229_v39, %v3501_v24  ;;  %v2557_v62 = vpop.eup %2556  ;;  %v1348_v42 = vmul.f32 0.7978846, %v1284_v63  ;;  %v1250_v61 = vadd.f32 %v1186_v12, %v3327_v8  ;;  %v860_v9 = vmul.f32 %v3229_v39, %v3502_v1 }
 0x178   : > { %v1154_v18 = vmul.f32 %v1090_v29, %v3345_v30  ;;  %v1438_v54 = vadd.f32 1.0, %v2555_v0  ;;  %v2187_v5 = vpack.c.bf16 %v1505_v6, %v1504_v37  ;;  %v3361_v14 = vadd.f32 %v3221_v26, %v862_v57 }
 0x179   : > { %v3364_v10 = vadd.f32 %v3221_v26, %v894_v16  ;;  %v2559_v38 = vpop.eup %2558  ;;  %v1314_v58 = vmul.f32 0.7978846, %v1250_v61  ;;  %v3368_v22 = vadd.f32 %v3221_v26, %v860_v9  ;;  %v892_v53 = vmul.f32 %v3229_v39, %v3020_v15 }
 0x17a   : > { %v1218_v47 = vmul.f32 %v1154_v18, %v3345_v30  ;;  %v1536_v43 = vmul.f32 %v1472_v36, %v1024_v52  ;;  %2299 = vst [vmem:[%s2889_s6 + $0x58] sm:$0xff] %v2187_v5   ;;  %v1473_v19 = vadd.f32 1.0, %v2559_v38  ;;  %2564 = vtanh.f32 %v1316_v41 }
 0x17b   : > { %v1061_v33 = vmul.f32 0.044715, %v3361_v14  ;;  %v1470_v7 = vadd.f32 1.0, %v2557_v62  ;;  %2566 = vtanh.f32 %v1348_v42  ;;  %v1093_v28 = vmul.f32 0.044715, %v3364_v10 }
 0x17c   : > { %v1282_v25 = vadd.f32 %v1218_v47, %v3345_v30  ;;  %v1537_v45 = vmul.f32 %v1473_v19, %v1025_v23  ;;  %v1059_v59 = vmul.f32 0.044715, %v3368_v22  ;;  %v3379_v15 = vadd.f32 %v3221_v26, %v892_v53 }
 0x17d   : > { %v1125_v48 = vmul.f32 %v1061_v33, %v3361_v14  ;;  %2568 = vtanh.f32 %v1314_v58  ;;  %v1157_v17 = vmul.f32 %v1093_v28, %v3364_v10  ;;  %v865_v11 = vmul.f32 %v3229_v39, %v3032_v56 }
 0x17e   : > { %v2561_v52 = vpop.eup %2560  ;;  %v897_v34 = vmul.f32 %v3229_v39, %v3036_v32  ;;  %v2267_v23 = vpack.c.bf16 %v1537_v45, %v1536_v43  ;;  %v1123_v20 = vmul.f32 %v1059_v59, %v3368_v22  ;;  %v1502_v35 = vmul.f32 %v1438_v54, %v3332_v46 }
 0x17f   : > { %v2563_v55 = vpop.eup %2562  ;;  %v1439_v21 = vadd.f32 1.0, %v2561_v52  ;;  %v1189_v4 = vmul.f32 %v1125_v48, %v3361_v14  ;;  %v1346_v0 = vmul.f32 0.7978846, %v1282_v25  ;;  %v1221_v37 = vmul.f32 %v1157_v17, %v3364_v10 }
 0x180   : > { %v1471_v63 = vadd.f32 1.0, %v2563_v55  ;;  %2315 = vst [vmem:[%s2889_s6 + $0xd8] sm:$0xff] %v2267_v23   ;;  %v1187_v32 = vmul.f32 %v1123_v20, %v3368_v22  ;;  %v1091_v12 = vmul.f32 0.044715, %v3379_v15  ;;  %v1534_v29 = vmul.f32 %v1470_v7, %v3336_v40 }
 0x181   : > { %v1503_v36 = vmul.f32 %v1439_v21, %v991_v51  ;;  %v1253_v56 = vadd.f32 %v1189_v4, %v3361_v14  ;;  %v1285_v41 = vadd.f32 %v1221_v37, %v3364_v10  ;;  %v3397_v46 = vadd.f32 %v3221_v26, %v865_v11 }
 0x182   : > { %v1535_v6 = vmul.f32 %v1471_v63, %v1023_v31  ;;  %v1251_v51 = vadd.f32 %v1187_v32, %v3368_v22  ;;  %v3401_v24 = vadd.f32 %v3221_v26, %v897_v34  ;;  %2570 = vtanh.f32 %v1346_v0 }
 0x183   : > { %v2182_v60 = vpack.c.bf16 %v1503_v36, %v1502_v35  ;;  %v1317_v57 = vmul.f32 0.7978846, %v1253_v56  ;;  %v1349_v62 = vmul.f32 0.7978846, %v1285_v41  ;;  %v1155_v42 = vmul.f32 %v1091_v12, %v3379_v15 }
 0x184   : > { %v2262_v16 = vpack.c.bf16 %v1535_v6, %v1534_v29  ;;  %v2565_v40 = vpop.eup %2564  ;;  %v1315_v31 = vmul.f32 0.7978846, %v1251_v51  ;;  %v1064_v1 = vmul.f32 0.044715, %v3397_v46  ;;  %v996_v9 = vmul.f32 0.5, %v3313_v49 }
 0x185   : > { %2298 = vst [vmem:[%s2889_s6 + $0x50] sm:$0xff] %v2182_v60   ;;  %2572 = vtanh.f32 %v1317_v57  ;;  %v2567_v61 = vpop.eup %2566  ;;  %v1219_v18 = vmul.f32 %v1155_v42, %v3379_v15  ;;  %v1028_v54 = vmul.f32 0.5, %v3316_v27  ;;  %v1096_v5 = vmul.f32 0.044715, %v3401_v24 }
 0x186   : > { %2314 = vst [vmem:[%s2889_s6 + $0xd0] sm:$0xff] %v2262_v16   ;;  %2574 = vtanh.f32 %v1349_v62  ;;  %v1128_v47 = vmul.f32 %v1064_v1, %v3397_v46  ;;  %v863_v53 = vmul.f32 %v3229_v39, %v3038_v50  ;;  %v895_v43 = vmul.f32 %v3229_v39, %v3044_v44 }
 0x187   : > { %2576 = vtanh.f32 %v1315_v31  ;;  %v2569_v38 = vpop.eup %2568  ;;  %v1283_v58 = vadd.f32 %v1219_v18, %v3379_v15  ;;  %v1444_v19 = vadd.f32 1.0, %v2565_v40  ;;  %v1160_v33 = vmul.f32 %v1096_v5, %v3401_v24 }
 0x188   : > { %v866_v49 = vmul.f32 %v3229_v39, %v3046_v13  ;;  %v898_v27 = vmul.f32 %v3229_v39, %v3053_v3  ;;  %v1192_v25 = vmul.f32 %v1128_v47, %v3397_v46  ;;  %v3424_v28 = vadd.f32 %v3221_v26, %v863_v53 }
 0x189   : > { %v1347_v7 = vmul.f32 0.7978846, %v1283_v58  ;;  %v3427_v50 = vadd.f32 %v3221_v26, %v895_v43  ;;  %v1476_v45 = vadd.f32 1.0, %v2567_v61  ;;  %v1224_v44 = vmul.f32 %v1160_v33, %v3401_v24  ;;  %v3503_v43 = vld [vmem:[#allocation9_spill] sm:$0xff] }
 0x18a   : > { %v3431_v48 = vadd.f32 %v3221_v26, %v866_v49  ;;  %v3434_v13 = vadd.f32 %v3221_v26, %v898_v27  ;;  %v1442_v59 = vadd.f32 1.0, %v2569_v38  ;;  %v1256_v3 = vadd.f32 %v1192_v25, %v3397_v46 }
 0x18b   : > { %2578 = vtanh.f32 %v1347_v7  ;;  %v1062_v52 = vmul.f32 0.044715, %v3424_v28  ;;  %v994_v17 = vmul.f32 0.5, %v3327_v8  ;;  %v997_v11 = vmul.f32 0.5, %v3361_v14 }
 0x18c   : > { %v1288_v34 = vadd.f32 %v1224_v44, %v3401_v24  ;;  %v1094_v55 = vmul.f32 0.044715, %v3427_v50  ;;  %v2571_v23 = vpop.eup %2570  ;;  %v1029_v21 = vmul.f32 0.5, %v3364_v10  ;;  %v995_v4 = vmul.f32 0.5, %v3368_v22 }
 0x18d   : > { %v1126_v20 = vmul.f32 %v1062_v52, %v3424_v28  ;;  %v1065_v35 = vmul.f32 0.044715, %v3431_v48  ;;  %v1508_v0 = vmul.f32 %v1444_v19, %v996_v9  ;;  %v1540_v37 = vmul.f32 %v1476_v45, %v1028_v54 }
 0x18e   : > { %v1320_v36 = vmul.f32 0.7978846, %v1256_v3  ;;  %v1097_v8 = vmul.f32 0.044715, %v3434_v13  ;;  %v1506_v56 = vmul.f32 %v1442_v59, %v994_v17  ;;  %v1158_v12 = vmul.f32 %v1094_v55, %v3427_v50 }
 0x18f   : > { %v2573_v63 = vpop.eup %2572  ;;  %v1129_v29 = vmul.f32 %v1065_v35, %v3431_v48  ;;  %v1474_v6 = vadd.f32 1.0, %v2571_v23  ;;  %v1352_v41 = vmul.f32 0.7978846, %v1288_v34  ;;  %v1190_v16 = vmul.f32 %v1126_v20, %v3424_v28 }
 0x190   : > { %v2575_v14 = vpop.eup %2574  ;;  %v1445_v32 = vadd.f32 1.0, %v2573_v63  ;;  %v1161_v60 = vmul.f32 %v1097_v8, %v3434_v13  ;;  %2580 = vtanh.f32 %v1320_v36  ;;  %v864_v31 = vmul.f32 %v3229_v39, %v3055_v2 }
 0x191   : > { %v2577_v10 = vpop.eup %2576  ;;  %v1477_v22 = vadd.f32 1.0, %v2575_v14  ;;  %v1193_v62 = vmul.f32 %v1129_v29, %v3431_v48  ;;  %v1222_v1 = vmul.f32 %v1158_v12, %v3427_v50  ;;  %2582 = vtanh.f32 %v1352_v41 }
 0x192   : > { %v1509_v57 = vmul.f32 %v1445_v32, %v997_v11  ;;  %v1443_v51 = vadd.f32 1.0, %v2577_v10  ;;  %v1225_v40 = vmul.f32 %v1161_v60, %v3434_v13  ;;  %v935_v38 = vadd.f32 %v3221_v26, %v864_v31 }
 0x193   : > { %v1541_v42 = vmul.f32 %v1477_v22, %v1029_v21  ;;  %v1257_v9 = vadd.f32 %v1193_v62, %v3431_v48  ;;  %v1254_v53 = vadd.f32 %v1190_v16, %v3424_v28  ;;  %v896_v19 = vmul.f32 %v3229_v39, %v3503_v43 }
 0x194   : > { %v2197_v61 = vpack.c.bf16 %v1509_v57, %v1508_v0  ;;  %v1507_v18 = vmul.f32 %v1443_v51, %v995_v4  ;;  %v1289_v5 = vadd.f32 %v1225_v40, %v3434_v13  ;;  %v1026_v33 = vmul.f32 0.5, %v3345_v30 }
 0x195   : > { %v2277_v54 = vpack.c.bf16 %v1541_v42, %v1540_v37  ;;  %v2579_v58 = vpop.eup %2578  ;;  %v1321_v2 = vmul.f32 0.7978846, %v1257_v9  ;;  %v1027_v49 = vmul.f32 0.5, %v3379_v15  ;;  %v1286_v25 = vadd.f32 %v1222_v1, %v3427_v50 }
 0x196   : > { %2301 = vst [vmem:[%s2889_s6 + $0x68] sm:$0xff] %v2197_v61   ;;  %v2192_v47 = vpack.c.bf16 %v1507_v18, %v1506_v56  ;;  %v1475_v27 = vadd.f32 1.0, %v2579_v58  ;;  %v1353_v7 = vmul.f32 0.7978846, %v1289_v5  ;;  %v1063_v45 = vmul.f32 0.044715, %v935_v38 }
 0x197   : > { %2317 = vst [vmem:[%s2889_s6 + $0xe8] sm:$0xff] %v2277_v54   ;;  %2584 = vtanh.f32 %v1321_v2  ;;  %v967_v44 = vadd.f32 %v3221_v26, %v896_v19  ;;  %v1538_v59 = vmul.f32 %v1474_v6, %v1026_v33  ;;  %v1318_v52 = vmul.f32 0.7978846, %v1254_v53 }
 0x198   : > { %2300 = vst [vmem:[%s2889_s6 + $0x60] sm:$0xff] %v2192_v47   ;;  %v1539_v3 = vmul.f32 %v1475_v27, %v1027_v49  ;;  %2586 = vtanh.f32 %v1353_v7  ;;  %v1127_v39 = vmul.f32 %v1063_v45, %v935_v38  ;;  %v1350_v11 = vmul.f32 0.7978846, %v1286_v25 }
 0x199   : > { %v1095_v17 = vmul.f32 0.044715, %v967_v44  ;;  %2588 = vtanh.f32 %v1318_v52  ;;  %v1000_v8 = vmul.f32 0.5, %v3397_v46  ;;  %v1001_v14 = vmul.f32 0.5, %v3431_v48 }
 0x19a   : > { %v2272_v30 = vpack.c.bf16 %v1539_v3, %v1538_v59  ;;  %v1191_v34 = vmul.f32 %v1127_v39, %v935_v38  ;;  %v2581_v55 = vpop.eup %2580  ;;  %2590 = vtanh.f32 %v1350_v11  ;;  %v1032_v32 = vmul.f32 0.5, %v3401_v24 }
 0x19b   : > { %v1159_v15 = vmul.f32 %v1095_v17, %v967_v44  ;;  %v2583_v4 = vpop.eup %2582  ;;  %v1448_v26 = vadd.f32 1.0, %v2581_v55  ;;  %v1033_v12 = vmul.f32 0.5, %v3434_v13  ;;  %v998_v24 = vmul.f32 0.5, %v3424_v28 }
 0x19c   : > { %2316 = vst [vmem:[%s2889_s6 + $0xe0] sm:$0xff] %v2272_v30   ;;  %v1255_v23 = vadd.f32 %v1191_v34, %v935_v38  ;;  %v1480_v0 = vadd.f32 1.0, %v2583_v4  ;;  %v999_v13 = vmul.f32 0.5, %v935_v38  ;;  %v1030_v31 = vmul.f32 0.5, %v3427_v50 }
 0x19d   : > { %v1223_v21 = vmul.f32 %v1159_v15, %v967_v44  ;;  %v1512_v10 = vmul.f32 %v1448_v26, %v1000_v8  ;;  %v1031_v1 = vmul.f32 0.5, %v967_v44 }
 0x19e   : > { %v1319_v20 = vmul.f32 0.7978846, %v1255_v23  ;;  %v1544_v22 = vmul.f32 %v1480_v0, %v1032_v32 }
 0x19f   : > { %v1287_v35 = vadd.f32 %v1223_v21, %v967_v44 }
 0x1a0   : > { %2592 = vtanh.f32 %v1319_v20 }
 0x1a1   : > { %v2585_v63 = vpop.eup %2584  ;;  %v1351_v37 = vmul.f32 0.7978846, %v1287_v35 }
 0x1a2   : > { %v2587_v36 = vpop.eup %2586  ;;  %v1449_v56 = vadd.f32 1.0, %v2585_v63 }
 0x1a3   : > { %v1481_v29 = vadd.f32 1.0, %v2587_v36  ;;  %2594 = vtanh.f32 %v1351_v37  ;;  %v2589_v57 = vpop.eup %2588 }
 0x1a4   : > { %v1513_v6 = vmul.f32 %v1449_v56, %v1001_v14  ;;  %v2591_v16 = vpop.eup %2590  ;;  %v1446_v46 = vadd.f32 1.0, %v2589_v57 }
 0x1a5   : > { %v1545_v41 = vmul.f32 %v1481_v29, %v1033_v12  ;;  %v1478_v62 = vadd.f32 1.0, %v2591_v16 }
 0x1a6   : > { %v2207_v60 = vpack.c.bf16 %v1513_v6, %v1512_v10  ;;  %v1510_v61 = vmul.f32 %v1446_v46, %v998_v24 }
 0x1a7   : > { %v2287_v51 = vpack.c.bf16 %v1545_v41, %v1544_v22  ;;  %v1542_v54 = vmul.f32 %v1478_v62, %v1030_v31 }
 0x1a8   : > { %2303 = vst [vmem:[%s2889_s6 + $0x78] sm:$0xff] %v2207_v60  }
 0x1a9   : > { %2319 = vst [vmem:[%s2889_s6 + $0xf8] sm:$0xff] %v2287_v51  }
 0x1aa   : > { %v2593_v48 = vpop.eup %2592 }
 0x1ab   : > { %v1447_v42 = vadd.f32 1.0, %v2593_v48 }
 0x1ad   : > { %v2595_v40 = vpop.eup %2594  ;;  %v1511_v18 = vmul.f32 %v1447_v42, %v999_v13 }
 0x1ae   : > { %v1479_v9 = vadd.f32 1.0, %v2595_v40 }
 0x1af   : > { %v2202_v5 = vpack.c.bf16 %v1511_v18, %v1510_v61 }
 0x1b0   : > { %v1543_v58 = vmul.f32 %v1479_v9, %v1031_v1 }
 0x1b1   : > { %2302 = vst [vmem:[%s2889_s6 + $0x70] sm:$0xff] %v2202_v5  }
 0x1b2   : > { %v2282_v47 = vpack.c.bf16 %v1543_v58, %v1542_v54 }
 0x1b4   : > { %2318 = vst [vmem:[%s2889_s6 + $0xf0] sm:$0xff] %v2282_v47  }
 0x1b5 PF: > { %s14_s15 = sadd.s32 1, %s2604_s15  }
 0x1b6   : > { %p11_p4 = scmp.ge.s32.totalorder %s14_s15, 6  }
 0x1b8   :  { %13 = sbr.rel (!%p11_p4) target bundleno = 1 (0x1), region = 66 }

// kernel: _lambda_.5
= control target key start
LH: loop header
LB: loop body
LE: loop exit
PB: predicated region body
PF: predicated region fallthrough
CT: control target
= control target key end

     0   :  { %vm262_vm0 = vcmask 326656   ;;  %vm359_vm1 = vcmask 1043456   ;;  %s3332_s1 = inlined_call_operand.vmem [shape: bf16[40,128], index: 1, kind: input, shape index: {}]   ;;  %s3333_s0 = inlined_call_operand.vmem [shape: bf16[512,40], index: 0, kind: input, shape index: {}]   ;;  %s3334_s2 = inlined_call_operand.vmem [shape: f32[1,128], index: 2, kind: input, shape index: {}]   ;;  %s3335_s3 = inlined_call_operand.vmem [shape: f32[1,128], index: 3, kind: input, shape index: {}]   ;;  %s3336_s4 = inlined_call_operand.vmem [shape: bf16[512,128], index: 4, kind: output, shape index: {}]  }
   0x1   :  { %v2195_v0 = vld [vmem:[%s3332_s1] sm:$0xff]   ;;  %v2196_v1 = vld [vmem:[%s3332_s1 + $0x8] sm:$0xff]   ;;  %v2197_v2 = vld [vmem:[%s3332_s1 + $0x10] ss:$0 sps:$4 sm:$0xff]  }
   0x2   :  { %2117 = vmatprep.subr.bf16.mxu0 %v2195_v0  ;;  %2187 = vmatprep.subr.bf16.mxu1 %v2195_v0  ;;  %v2198_v3 = vld [vmem:[%s3333_s0] sm:$0xff]   ;;  %v361_v5 = vsel %vm359_vm1, %v2197_v2, 0  ;;  %v2200_v6 = vld [vmem:[%s3333_s0 + $0x8] sm:$0xff]   ;;  %v2202_v8 = vld [vmem:[%s3333_s0 + $0x10] sm:$0xff]  }
   0x3   :  { %2118 = vmatpush3.bf16.msra.mxu0 %v2195_v0  ;;  %2190 = vmatpush3.bf16.msra.mxu1 %v2195_v0  ;;  %v2199_v4 = vld [vmem:[%s3333_s0 + $0x80] sm:$0xff]   ;;  %v2201_v7 = vld [vmem:[%s3333_s0 + $0x88] sm:$0xff]   ;;  %v2203_v9 = vld [vmem:[%s3333_s0 + $0x90] sm:$0xff]  }
   0x4   :  { %2119 = vmatprep.subr.bf16.mxu0 %v2196_v1  ;;  %2188 = vmatprep.subr.bf16.mxu1 %v2196_v1  ;;  %v2204_v10 = vld [vmem:[%s3333_s0 + $0x18] sm:$0xff]   ;;  %v2206_v12 = vld [vmem:[%s3333_s0 + $0x20] sm:$0xff]   ;;  %v2208_v14 = vld [vmem:[%s3333_s0 + $0x28] sm:$0xff]  }
   0x5   :  { %2123 = vmatprep.mubr.msk.bf16.mxu0 %vm262_vm0, %v2198_v3  ;;  %2155 = vmatprep.mubr.msk.bf16.mxu1 %vm262_vm0, %v2199_v4  ;;  %v2205_v11 = vld [vmem:[%s3333_s0 + $0x98] sm:$0xff]   ;;  %v2207_v13 = vld [vmem:[%s3333_s0 + $0xa0] sm:$0xff]   ;;  %v2209_v15 = vld [vmem:[%s3333_s0 + $0xa8] sm:$0xff]  }
   0x6   :  { %v2210_v16 = vld [vmem:[%s3333_s0 + $0x30] sm:$0xff]   ;;  %v2212_v18 = vld [vmem:[%s3333_s0 + $0x38] sm:$0xff]   ;;  %v2214_v20 = vld [vmem:[%s3333_s0 + $0x40] sm:$0xff]  }
   0x7   :  { %2120 = vmatpush3.bf16.msra.mxu0 %v2196_v1  ;;  %2191 = vmatpush3.bf16.msra.mxu1 %v2196_v1  ;;  %v2211_v17 = vld [vmem:[%s3333_s0 + $0xb0] sm:$0xff]   ;;  %v2213_v19 = vld [vmem:[%s3333_s0 + $0xb8] sm:$0xff]   ;;  %v2215_v21 = vld [vmem:[%s3333_s0 + $0xc0] sm:$0xff]  }
   0x8   :  { %2193 = vmatprep.subr.msk.bf16.mxu0 %vm359_vm1, %v2197_v2  ;;  %2194 = vmatprep.subr.msk.bf16.mxu1 %vm359_vm1, %v2197_v2  ;;  %v2216_v22 = vld [vmem:[%s3333_s0 + $0x48] sm:$0xff]   ;;  %v2218_v24 = vld [vmem:[%s3333_s0 + $0x50] sm:$0xff]   ;;  %v2220_v26 = vld [vmem:[%s3333_s0 + $0x58] sm:$0xff]  }
   0x9   :  { %v2217_v23 = vld [vmem:[%s3333_s0 + $0xc8] sm:$0xff]   ;;  %v2219_v25 = vld [vmem:[%s3333_s0 + $0xd0] sm:$0xff]   ;;  %v2221_v27 = vld [vmem:[%s3333_s0 + $0xd8] sm:$0xff]  }
   0xa   :  { %v2222_v28 = vld [vmem:[%s3333_s0 + $0x60] sm:$0xff]   ;;  %v2224_v30 = vld [vmem:[%s3333_s0 + $0x68] sm:$0xff]   ;;  %v2226_v32 = vld [vmem:[%s3333_s0 + $0x70] sm:$0xff]  }
   0xb   :  { %2122 = vmatpush3.bf16.msra.mxu0 %v361_v5  ;;  %2192 = vmatpush3.bf16.msra.mxu1 %v361_v5  ;;  %v2223_v29 = vld [vmem:[%s3333_s0 + $0xe0] sm:$0xff]   ;;  %v2225_v31 = vld [vmem:[%s3333_s0 + $0xe8] sm:$0xff]   ;;  %v2227_v33 = vld [vmem:[%s3333_s0 + $0xf0] sm:$0xff]  }
   0xc   :  { %v2228_v34 = vld [vmem:[%s3333_s0 + $0x78] sm:$0xff]   ;;  %v2525_v36 = vld [vmem:[%s3334_s2] ss:$0 sm:$0xff] }
   0xd   :  { %v2229_v35 = vld [vmem:[%s3333_s0 + $0xf8] sm:$0xff]   ;;  %v2530_v38 = vld [vmem:[%s3335_s3] ss:$0 sm:$0xff] }
   0xe   :  { %2124 = vmatmul.mubr.msk.bf16.vlgmr.msra.gmra.mrb[0].mxu0 %vm262_vm0, %v2200_v6  ;;  %2156 = vmatmul.mubr.msk.bf16.vlgmr.msra.gmra.mrb[0].mxu1 %vm262_vm0, %v2201_v7 }
   0xf   :  { %2127 = vmatprep.mubr.msk.bf16.mxu0 %vm262_vm0, %v2202_v8  ;;  %2159 = vmatprep.mubr.msk.bf16.mxu1 %vm262_vm0, %v2203_v9 }
  0x16   :  { %2128 = vmatmul.mubr.msk.bf16.gmra.mrb[4].mxu0 %vm262_vm0, %v2204_v10  ;;  %2160 = vmatmul.mubr.msk.bf16.gmra.mrb[4].mxu1 %vm262_vm0, %v2205_v11 }
  0x17   :  { %2131 = vmatprep.mubr.msk.bf16.mxu0 %vm262_vm0, %v2206_v12  ;;  %2163 = vmatprep.mubr.msk.bf16.mxu1 %vm262_vm0, %v2207_v13 }
  0x1e   :  { %2132 = vmatmul.mubr.msk.bf16.gmra.mrb[8].mxu0 %vm262_vm0, %v2208_v14  ;;  %2164 = vmatmul.mubr.msk.bf16.gmra.mrb[8].mxu1 %vm262_vm0, %v2209_v15 }
  0x1f   :  { %2135 = vmatprep.mubr.msk.bf16.mxu0 %vm262_vm0, %v2210_v16  ;;  %2167 = vmatprep.mubr.msk.bf16.mxu1 %vm262_vm0, %v2211_v17 }
  0x26   :  { %2136 = vmatmul.mubr.msk.bf16.gmra.mrb[12].mxu0 %vm262_vm0, %v2212_v18  ;;  %2168 = vmatmul.mubr.msk.bf16.gmra.mrb[12].mxu1 %vm262_vm0, %v2213_v19 }
  0x27   :  { %2139 = vmatprep.mubr.msk.bf16.mxu0 %vm262_vm0, %v2214_v20  ;;  %2171 = vmatprep.mubr.msk.bf16.mxu1 %vm262_vm0, %v2215_v21 }
  0x2e   :  { %2140 = vmatmul.mubr.msk.bf16.gmra.mrb[16].mxu0 %vm262_vm0, %v2216_v22  ;;  %2172 = vmatmul.mubr.msk.bf16.gmra.mrb[16].mxu1 %vm262_vm0, %v2217_v23 }
  0x2f   :  { %2143 = vmatprep.mubr.msk.bf16.mxu0 %vm262_vm0, %v2218_v24  ;;  %2175 = vmatprep.mubr.msk.bf16.mxu1 %vm262_vm0, %v2219_v25 }
  0x36   :  { %2144 = vmatmul.mubr.msk.bf16.gmra.mrb[20].mxu0 %vm262_vm0, %v2220_v26  ;;  %2176 = vmatmul.mubr.msk.bf16.gmra.mrb[20].mxu1 %vm262_vm0, %v2221_v27 }
  0x37   :  { %2147 = vmatprep.mubr.msk.bf16.mxu0 %vm262_vm0, %v2222_v28  ;;  %2179 = vmatprep.mubr.msk.bf16.mxu1 %vm262_vm0, %v2223_v29 }
  0x3e   :  { %2148 = vmatmul.mubr.msk.bf16.gmra.mrb[24].mxu0 %vm262_vm0, %v2224_v30  ;;  %2180 = vmatmul.mubr.msk.bf16.gmra.mrb[24].mxu1 %vm262_vm0, %v2225_v31 }
  0x3f   :  { %2151 = vmatprep.mubr.msk.bf16.mxu0 %vm262_vm0, %v2226_v32  ;;  %2183 = vmatprep.mubr.msk.bf16.mxu1 %vm262_vm0, %v2227_v33 }
  0x46   :  { %2152 = vmatmul.mubr.msk.bf16.gmra.mrb[28].mxu0 %vm262_vm0, %v2228_v34  ;;  %2184 = vmatmul.mubr.msk.bf16.gmra.mrb[28].mxu1 %vm262_vm0, %v2229_v35 }
  0xe1   :  { %v2125_v37 = vpop.f32.mrb[0].mxu0  ;;  %v2157_v39 = vpop.f32.mrb[0].mxu1 }
  0xe2   :  { %v661_v40 = vmul.f32 %v2125_v37, %v2525_v36  ;;  %v693_v41 = vmul.f32 %v2157_v39, %v2525_v36  ;;  %v397_v42 = vpop.f32.mrb[1].mxu0  ;;  %v525_v43 = vpop.f32.mrb[1].mxu1 }
  0xe3   :  { %v659_v44 = vmul.f32 %v2525_v36, %v397_v42  ;;  %v691_v45 = vmul.f32 %v2525_v36, %v525_v43  ;;  %v2126_v46 = vpop.f32.mrb[2].mxu0  ;;  %v2158_v47 = vpop.f32.mrb[2].mxu1 }
  0xe4   :  { %v732_v48 = vadd.f32 %v2530_v38, %v661_v40  ;;  %v2538_v49 = vadd.f32 %v2530_v38, %v693_v41  ;;  %v662_v50 = vmul.f32 %v2126_v46, %v2525_v36  ;;  %v694_v51 = vmul.f32 %v2158_v47, %v2525_v36  ;;  %v400_v52 = vpop.f32.mrb[3].mxu0  ;;  %v528_v53 = vpop.f32.mrb[3].mxu1 }
  0xe5   :  { %v2543_v54 = vadd.f32 %v2530_v38, %v659_v44  ;;  %v2546_v55 = vadd.f32 %v2530_v38, %v691_v45  ;;  %v660_v56 = vmul.f32 %v2525_v36, %v400_v52  ;;  %v692_v61 = vmul.f32 %v2525_v36, %v528_v53 }
  0xe6   :  { %v860_v57 = vmul.f32 0.044715, %v732_v48  ;;  %v892_v58 = vmul.f32 0.044715, %v2538_v49  ;;  %v2555_v0 = vadd.f32 %v2530_v38, %v662_v50  ;;  %v2558_v1 = vadd.f32 %v2530_v38, %v694_v51 }
  0xe7   :  { %v858_v59 = vmul.f32 0.044715, %v2543_v54  ;;  %v890_v60 = vmul.f32 0.044715, %v2546_v55  ;;  %v2563_v4 = vadd.f32 %v2530_v38, %v660_v56  ;;  %v2575_v20 = vadd.f32 %v2530_v38, %v692_v61 }
  0xe8   :  { %v924_v62 = vmul.f32 %v860_v57, %v732_v48  ;;  %v956_v63 = vmul.f32 %v892_v58, %v2538_v49  ;;  %v861_v9 = vmul.f32 0.044715, %v2555_v0  ;;  %v893_v14 = vmul.f32 0.044715, %v2558_v1 }
  0xe9   :  { %v922_v2 = vmul.f32 %v858_v59, %v2543_v54  ;;  %v954_v3 = vmul.f32 %v890_v60, %v2546_v55  ;;  %v2129_v5 = vpop.f32.mrb[4].mxu0  ;;  %v2161_v6 = vpop.f32.mrb[4].mxu1  ;;  %v859_v26 = vmul.f32 0.044715, %v2563_v4  ;;  %v2585_v27 = vmul.f32 0.5, %v732_v48 }
  0xea   :  { %v988_v7 = vmul.f32 %v924_v62, %v732_v48  ;;  %v1020_v8 = vmul.f32 %v956_v63, %v2538_v49  ;;  %v413_v10 = vpop.f32.mrb[5].mxu0  ;;  %v541_v11 = vpop.f32.mrb[5].mxu1  ;;  %v925_v19 = vmul.f32 %v861_v9, %v2555_v0  ;;  %v957_v25 = vmul.f32 %v893_v14, %v2558_v1 }
  0xeb   :  { %v986_v12 = vmul.f32 %v922_v2, %v2543_v54  ;;  %v1018_v13 = vmul.f32 %v954_v3, %v2546_v55  ;;  %v2130_v15 = vpop.f32.mrb[6].mxu0  ;;  %v2570_v16 = vpop.f32.mrb[6].mxu1  ;;  %v923_v34 = vmul.f32 %v859_v26, %v2563_v4  ;;  %v891_v37 = vmul.f32 0.044715, %v2575_v20 }
  0xec   :  { %v1052_v17 = vadd.f32 %v988_v7, %v732_v48  ;;  %v1084_v18 = vadd.f32 %v1020_v8, %v2538_v49  ;;  %v2577_v21 = vpop.f32.mrb[7].mxu0  ;;  %v2579_v22 = vpop.f32.mrb[7].mxu1  ;;  %v989_v30 = vmul.f32 %v925_v19, %v2555_v0  ;;  %v1021_v33 = vmul.f32 %v957_v25, %v2558_v1 }
  0xed   :  { %v1050_v23 = vadd.f32 %v986_v12, %v2543_v54  ;;  %v1082_v24 = vadd.f32 %v1018_v13, %v2546_v55  ;;  %v665_v39 = vmul.f32 %v2129_v5, %v2525_v36  ;;  %v987_v41 = vmul.f32 %v923_v34, %v2563_v4 }
  0xee   :  { %v1116_v28 = vmul.f32 0.7978846, %v1052_v17  ;;  %v1148_v29 = vmul.f32 0.7978846, %v1084_v18  ;;  %v1053_v35 = vadd.f32 %v989_v30, %v2555_v0  ;;  %v1085_v40 = vadd.f32 %v1021_v33, %v2558_v1 }
  0xef   :  { %v1114_v31 = vmul.f32 0.7978846, %v1050_v23  ;;  %v1146_v32 = vmul.f32 0.7978846, %v1082_v24  ;;  %v697_v42 = vmul.f32 %v2161_v6, %v2525_v36  ;;  %v955_v46 = vmul.f32 %v891_v37, %v2575_v20 }
  0xf0   :  { %2230 = vtanh.f32 %v1116_v28  ;;  %v1117_v45 = vmul.f32 0.7978846, %v1053_v35  ;;  %v736_v47 = vadd.f32 %v2530_v38, %v665_v39  ;;  %v1149_v51 = vmul.f32 0.7978846, %v1085_v40 }
  0xf1   :  { %2232 = vtanh.f32 %v1148_v29  ;;  %v2596_v43 = vpop.f32.mrb[8].mxu0  ;;  %v2598_v44 = vpop.f32.mrb[8].mxu1  ;;  %v1051_v52 = vadd.f32 %v987_v41, %v2563_v4  ;;  %v2608_v53 = vadd.f32 %v2530_v38, %v697_v42  ;;  %v828_v58 = vmul.f32 0.5, %v2538_v49 }
  0xf2   :  { %2234 = vtanh.f32 %v1114_v31  ;;  %v2602_v48 = vpop.f32.mrb[9].mxu0  ;;  %v2604_v50 = vpop.f32.mrb[9].mxu1  ;;  %v1019_v59 = vmul.f32 %v955_v46, %v2575_v20  ;;  %v864_v60 = vmul.f32 0.044715, %v736_v47  ;;  %v2621_v63 = vmul.f32 0.5, %v2543_v54 }
  0xf3   :  { %2236 = vtanh.f32 %v1146_v32  ;;  %v2610_v56 = vpop.f32.mrb[10].mxu0  ;;  %v2612_v57 = vpop.f32.mrb[10].mxu1  ;;  %v1115_v2 = vmul.f32 0.7978846, %v1051_v52  ;;  %v896_v3 = vmul.f32 0.044715, %v2608_v53  ;;  %v663_v49 = vmul.f32 %v2525_v36, %v413_v10 }
  0xf4   :  { %2238 = vtanh.f32 %v1117_v45  ;;  %v2616_v61 = vpop.f32.mrb[11].mxu0  ;;  %v2618_v62 = vpop.f32.mrb[11].mxu1  ;;  %v1083_v5 = vadd.f32 %v1019_v59, %v2575_v20  ;;  %v928_v6 = vmul.f32 %v864_v60, %v736_v47  ;;  %v695_v7 = vmul.f32 %v2525_v36, %v541_v11 }
  0xf5   :  { %2240 = vtanh.f32 %v1149_v51  ;;  %v2628_v8 = vmul.f32 0.5, %v2546_v55  ;;  %v960_v9 = vmul.f32 %v896_v3, %v2608_v53  ;;  %v666_v54 = vmul.f32 %v2130_v15, %v2525_v36 }
  0xf6   :  { %2242 = vtanh.f32 %v1115_v2  ;;  %v1147_v12 = vmul.f32 0.7978846, %v1083_v5  ;;  %v992_v13 = vmul.f32 %v928_v6, %v736_v47  ;;  %v2633_v14 = vadd.f32 %v2530_v38, %v663_v49 }
  0xf7   :  { %v2636_v17 = vadd.f32 %v2530_v38, %v695_v7  ;;  %v797_v10 = vmul.f32 0.5, %v2555_v0  ;;  %v829_v11 = vmul.f32 0.5, %v2558_v1  ;;  %v1024_v55 = vmul.f32 %v960_v9, %v2608_v53 }
  0xf8   :  { %v698_v18 = vmul.f32 %v2570_v16, %v2525_v36  ;;  %v795_v24 = vmul.f32 0.5, %v2563_v4  ;;  %2244 = vtanh.f32 %v1147_v12  ;;  %v1056_v25 = vadd.f32 %v992_v13, %v736_v47 }
  0xf9   :  { %v2643_v19 = vpop.f32.mrb[12].mxu0  ;;  %v2645_v15 = vpop.f32.mrb[12].mxu1  ;;  %v862_v26 = vmul.f32 0.044715, %v2633_v14  ;;  %v2654_v30 = vmul.f32 0.5, %v2575_v20  ;;  %v1088_v16 = vadd.f32 %v1024_v55, %v2608_v53  ;;  %v2664_v39 = vadd.f32 %v2530_v38, %v666_v54 }
  0xfa   :  { %v2231_v23 = vpop.eup %2230  ;;  %v2649_v28 = vpop.f32.mrb[13].mxu0  ;;  %v894_v31 = vmul.f32 0.044715, %v2636_v17  ;;  %v1120_v35 = vmul.f32 0.7978846, %v1056_v25  ;;  %v2670_v42 = vmul.f32 0.5, %v736_v47  ;;  %v2674_v51 = vadd.f32 %v2530_v38, %v698_v18 }
  0xfb   :  { %v2651_v0 = vpop.f32.mrb[13].mxu1  ;;  %v2233_v1 = vpop.eup %2232  ;;  %v1244_v29 = vadd.f32 1.0, %v2231_v23  ;;  %v926_v37 = vmul.f32 %v862_v26, %v2633_v14  ;;  %v1152_v45 = vmul.f32 0.7978846, %v1088_v16  ;;  %v664_v3 = vmul.f32 %v2525_v36, %v2577_v21 }
  0xfc   :  { %v2658_v32 = vpop.f32.mrb[14].mxu0  ;;  %v2660_v4 = vpop.f32.mrb[14].mxu1  ;;  %v1276_v34 = vadd.f32 1.0, %v2233_v1  ;;  %v958_v46 = vmul.f32 %v894_v31, %v2636_v17  ;;  %2246 = vtanh.f32 %v1120_v35  ;;  %v865_v12 = vmul.f32 0.044715, %v2664_v39 }
  0xfd   :  { %v2235_v33 = vpop.eup %2234  ;;  %v2666_v40 = vpop.f32.mrb[15].mxu0  ;;  %v1308_v59 = vmul.f32 %v1244_v29, %v2585_v27  ;;  %v990_v2 = vmul.f32 %v926_v37, %v2633_v14  ;;  %2248 = vtanh.f32 %v1152_v45  ;;  %v897_v18 = vmul.f32 0.044715, %v2674_v51 }
  0xfe   :  { %v2668_v20 = vpop.f32.mrb[15].mxu1  ;;  %v2237_v41 = vpop.eup %2236  ;;  %v1242_v60 = vadd.f32 1.0, %v2235_v33  ;;  %v1340_v6 = vmul.f32 %v1276_v34, %v828_v58  ;;  %v1022_v7 = vmul.f32 %v958_v46, %v2636_v17  ;;  %v929_v1 = vmul.f32 %v865_v12, %v2664_v39 }
  0xff   :  { %v2239_v52 = vpop.eup %2238  ;;  %v1274_v49 = vadd.f32 1.0, %v2237_v41  ;;  %v1054_v54 = vadd.f32 %v990_v2, %v2633_v14  ;;  %v961_v33 = vmul.f32 %v897_v18, %v2674_v51  ;;  %v2696_v34 = vadd.f32 %v2530_v38, %v664_v3 }
 0x100   :  { %v2241_v5 = vpop.eup %2240  ;;  %v1245_v47 = vadd.f32 1.0, %v2239_v52  ;;  %v1086_v55 = vadd.f32 %v1022_v7, %v2636_v17  ;;  %v1306_v41 = vmul.f32 %v1242_v60, %v2621_v63  ;;  %v993_v52 = vmul.f32 %v929_v1, %v2664_v39 }
 0x101   :  { %v1277_v9 = vadd.f32 1.0, %v2241_v5  ;;  %v2243_v13 = vpop.eup %2242  ;;  %v2685_v21 = vpop.f32.mrb[16].mxu0  ;;  %v1118_v26 = vmul.f32 0.7978846, %v1054_v54  ;;  %v1338_v5 = vmul.f32 %v1274_v49, %v2628_v8  ;;  %v863_v60 = vmul.f32 0.044715, %v2696_v34 }
 0x102   :  { %v1309_v27 = vmul.f32 %v1245_v47, %v797_v10  ;;  %v2687_v58 = vpop.f32.mrb[16].mxu1  ;;  %v1243_v25 = vadd.f32 1.0, %v2243_v13  ;;  %v2690_v29 = vpop.f32.mrb[17].mxu0  ;;  %v1150_v10 = vmul.f32 0.7978846, %v1086_v55  ;;  %v1025_v47 = vmul.f32 %v961_v33, %v2674_v51 }
 0x103   :  { %v1341_v23 = vmul.f32 %v1277_v9, %v829_v11  ;;  %v2692_v16 = vpop.f32.mrb[17].mxu1  ;;  %v2698_v35 = vpop.f32.mrb[18].mxu0  ;;  %2250 = vtanh.f32 %v1118_v26  ;;  %v696_v8 = vmul.f32 %v2525_v36, %v2579_v22  ;;  %v669_v7 = vmul.f32 %v2596_v43, %v2525_v36 }
 0x104   :  { %v1899_v31 = vpack.c.bf16 %v1309_v27, %v1308_v59  ;;  %v2700_v37 = vpop.f32.mrb[18].mxu1  ;;  %v2245_v11 = vpop.eup %2244  ;;  %v1307_v46 = vmul.f32 %v1243_v25, %v795_v24  ;;  %v1057_v24 = vadd.f32 %v993_v52, %v2664_v39  ;;  %2252 = vtanh.f32 %v1150_v10 }
 0x105   :  { %v1979_v45 = vpack.c.bf16 %v1341_v23, %v1340_v6  ;;  %v2704_v2 = vpop.f32.mrb[19].mxu0  ;;  %v2706_v59 = vpop.f32.mrb[19].mxu1  ;;  %v1275_v3 = vadd.f32 1.0, %v2245_v11  ;;  %v1089_v49 = vadd.f32 %v1025_v47, %v2674_v51  ;;  %v927_v54 = vmul.f32 %v863_v60, %v2696_v34 }
 0x106   :  { %2051 = vst [vmem:[%s3336_s4 + $0x8] sm:$0xff] %v1899_v31   ;;  %v1894_v63 = vpack.c.bf16 %v1307_v46, %v1306_v41  ;;  %v1121_v9 = vmul.f32 0.7978846, %v1057_v24  ;;  %v767_v12 = vadd.f32 %v2530_v38, %v696_v8  ;;  %v701_v22 = vmul.f32 %v2598_v44, %v2525_v36  ;;  %v2247_v23 = vpop.eup %2246 }
 0x107   :  { %2067 = vst [vmem:[%s3336_s4 + $0x88] sm:$0xff] %v1979_v45   ;;  %v1339_v6 = vmul.f32 %v1275_v3, %v2654_v30  ;;  %v1153_v30 = vmul.f32 0.7978846, %v1089_v49  ;;  %v740_v27 = vadd.f32 %v2530_v38, %v669_v7  ;;  %v667_v55 = vmul.f32 %v2525_v36, %v2602_v48  ;;  %v2249_v10 = vpop.eup %2248 }
 0x108   :  { %1895 = vst [vmem:[%s3336_s4] sm:$0xff] %v1894_v63   ;;  %v832_v25 = vmul.f32 0.5, %v2608_v53  ;;  %v2740_v26 = vmul.f32 0.5, %v2633_v14  ;;  %2254 = vtanh.f32 %v1121_v9  ;;  %v991_v44 = vmul.f32 %v927_v54, %v2696_v34 }
 0x109   :  { %v1974_v13 = vpack.c.bf16 %v1339_v6, %v1338_v5  ;;  %v2734_v43 = vpop.f32.mrb[20].mxu0  ;;  %v2736_v18 = vpop.f32.mrb[20].mxu1  ;;  %v2751_v48 = vmul.f32 0.5, %v2636_v17  ;;  %v2754_v53 = vmul.f32 0.5, %v2664_v39  ;;  %2256 = vtanh.f32 %v1153_v30 }
 0x10a   :  { %v2743_v1 = vpop.f32.mrb[21].mxu0  ;;  %v2745_v31 = vpop.f32.mrb[21].mxu1  ;;  %v895_v14 = vmul.f32 0.044715, %v767_v12  ;;  %v833_v41 = vmul.f32 0.5, %v2674_v51  ;;  %v1055_v45 = vadd.f32 %v991_v44, %v2696_v34  ;;  %v2763_v52 = vadd.f32 %v2530_v38, %v701_v22 }
 0x10b   :  { %2066 = vst [vmem:[%s3336_s4 + $0x80] sm:$0xff] %v1974_v13   ;;  %v2756_v33 = vpop.f32.mrb[22].mxu0  ;;  %v2758_v11 = vpop.f32.mrb[22].mxu1  ;;  %v868_v46 = vmul.f32 0.044715, %v740_v27  ;;  %v1248_v39 = vadd.f32 1.0, %v2247_v23  ;;  %v2770_v47 = vadd.f32 %v2530_v38, %v667_v55  ;;  %v699_v63 = vmul.f32 %v2525_v36, %v2604_v50 }
 0x10c   :  { %v2765_v5 = vpop.f32.mrb[23].mxu0  ;;  %v2767_v17 = vpop.f32.mrb[23].mxu1  ;;  %v959_v3 = vmul.f32 %v895_v14, %v767_v12  ;;  %v1119_v24 = vmul.f32 0.7978846, %v1055_v45  ;;  %v900_v60 = vmul.f32 0.044715, %v2763_v52  ;;  %v670_v8 = vmul.f32 %v2610_v56, %v2525_v36 }
 0x10d   :  { %v932_v51 = vmul.f32 %v868_v46, %v740_v27  ;;  %v2251_v6 = vpop.eup %2250  ;;  %v1280_v49 = vadd.f32 1.0, %v2249_v10  ;;  %v2778_v7 = vmul.f32 0.5, %v2696_v34  ;;  %v866_v54 = vmul.f32 0.044715, %v2770_v47 }
 0x10e   :  { %v1023_v9 = vmul.f32 %v959_v3, %v767_v12  ;;  %2258 = vtanh.f32 %v1119_v24  ;;  %v2781_v22 = vmul.f32 0.5, %v767_v12  ;;  %v964_v50 = vmul.f32 %v900_v60, %v2763_v52  ;;  %v2253_v30 = vpop.eup %2252 }
 0x10f   :  { %v996_v13 = vmul.f32 %v932_v51, %v740_v27  ;;  %v1312_v55 = vmul.f32 %v1248_v39, %v2670_v42  ;;  %v930_v56 = vmul.f32 %v866_v54, %v2770_v47  ;;  %v2787_v44 = vadd.f32 %v2530_v38, %v699_v63 }
 0x110   :  { %v1087_v23 = vadd.f32 %v1023_v9, %v767_v12  ;;  %v2793_v14 = vmul.f32 0.5, %v740_v27  ;;  %v1028_v46 = vmul.f32 %v964_v50, %v2763_v52  ;;  %v2797_v3 = vadd.f32 %v2530_v38, %v670_v8 }
 0x111   :  { %v2789_v34 = vpop.f32.mrb[24].mxu0  ;;  %v2791_v10 = vpop.f32.mrb[24].mxu1  ;;  %v1060_v45 = vadd.f32 %v996_v13, %v740_v27  ;;  %v1344_v12 = vmul.f32 %v1280_v49, %v832_v25  ;;  %v994_v63 = vmul.f32 %v930_v56, %v2770_v47  ;;  %v898_v51 = vmul.f32 0.044715, %v2787_v44 }
 0x112   :  { %3337 = vst [vmem:[#allocation2_spill] sm:$0xff] %v2789_v34  ;;  %3338 = vst [vmem:[#allocation3_spill] sm:$0xff] %v2791_v10  ;;  %v2799_v24 = vpop.f32.mrb[25].mxu0  ;;  %v2801_v42 = vpop.f32.mrb[25].mxu1  ;;  %v1151_v39 = vmul.f32 0.7978846, %v1087_v23  ;;  %v1092_v13 = vadd.f32 %v1028_v46, %v2763_v52 }
 0x113   :  { %3339 = vst [vmem:[#allocation4_spill] sm:$0xff] %v2799_v24  ;;  %3340 = vst [vmem:[#allocation5_spill] sm:$0xff] %v2801_v42  ;;  %v2805_v60 = vpop.f32.mrb[26].mxu0  ;;  %v2255_v9 = vpop.eup %2254  ;;  %v1246_v54 = vadd.f32 1.0, %v2251_v6  ;;  %v1124_v27 = vmul.f32 0.7978846, %v1060_v45  ;;  %v1058_v25 = vadd.f32 %v994_v63, %v2770_v47  ;;  %v962_v49 = vmul.f32 %v898_v51, %v2787_v44 }
 0x114   :  { %3341 = vst [vmem:[#allocation6_spill] sm:$0xff] %v2805_v60  ;;  %v869_v8 = vmul.f32 0.044715, %v2797_v3  ;;  %v2809_v50 = vpop.f32.mrb[26].mxu1  ;;  %v2257_v24 = vpop.eup %2256  ;;  %v1249_v10 = vadd.f32 1.0, %v2255_v9  ;;  %2260 = vtanh.f32 %v1151_v39  ;;  %v1278_v60 = vadd.f32 1.0, %v2253_v30 }
 0x115   :  { %3342 = vst [vmem:[#allocation7_spill] sm:$0xff] %v2809_v50  ;;  %v2813_v23 = vpop.f32.mrb[27].mxu0  ;;  %v2815_v56 = vpop.f32.mrb[27].mxu1  ;;  %v1281_v6 = vadd.f32 1.0, %v2257_v24  ;;  %v1156_v45 = vmul.f32 0.7978846, %v1092_v13  ;;  %v1026_v50 = vmul.f32 %v962_v49, %v2787_v44  ;;  %v702_v39 = vmul.f32 %v2612_v57, %v2525_v36 }
 0x116   :  { %v933_v46 = vmul.f32 %v869_v8, %v2797_v3  ;;  %v1313_v42 = vmul.f32 %v1249_v10, %v2754_v53  ;;  %v1122_v34 = vmul.f32 0.7978846, %v1058_v25  ;;  %2262 = vtanh.f32 %v1124_v27 }
 0x117   :  { %v1345_v63 = vmul.f32 %v1281_v6, %v833_v41  ;;  %v668_v9 = vmul.f32 %v2525_v36, %v2616_v61  ;;  %2264 = vtanh.f32 %v1156_v45  ;;  %v1090_v24 = vadd.f32 %v1026_v50, %v2787_v44 }
 0x118   :  { %v997_v51 = vmul.f32 %v933_v46, %v2797_v3  ;;  %v1909_v30 = vpack.c.bf16 %v1313_v42, %v1312_v55  ;;  %v773_v13 = vadd.f32 %v2530_v38, %v702_v39  ;;  %v2259_v8 = vpop.eup %2258  ;;  %v700_v27 = vmul.f32 %v2525_v36, %v2618_v62 }
 0x119   :  { %v2827_v53 = vpop.f32.mrb[28].mxu0  ;;  %v2829_v10 = vpop.f32.mrb[28].mxu1  ;;  %v1989_v25 = vpack.c.bf16 %v1345_v63, %v1344_v12  ;;  %v739_v41 = vadd.f32 %v2530_v38, %v668_v9  ;;  %v1247_v42 = vadd.f32 1.0, %v2259_v8  ;;  %2266 = vtanh.f32 %v1122_v34 }
 0x11a   :  { %v1061_v57 = vadd.f32 %v997_v51, %v2797_v3  ;;  %v2835_v61 = vpop.f32.mrb[29].mxu0  ;;  %v2837_v55 = vpop.f32.mrb[29].mxu1  ;;  %2053 = vst [vmem:[%s3336_s4 + $0x18] sm:$0xff] %v1909_v30   ;;  %v1154_v50 = vmul.f32 0.7978846, %v1090_v24  ;;  %v1310_v12 = vmul.f32 %v1246_v54, %v2740_v26  ;;  %v771_v45 = vadd.f32 %v2530_v38, %v700_v27 }
 0x11b   :  { %v901_v49 = vmul.f32 0.044715, %v773_v13  ;;  %2069 = vst [vmem:[%s3336_s4 + $0x98] sm:$0xff] %v1989_v25   ;;  %v867_v62 = vmul.f32 0.044715, %v739_v41  ;;  %v2847_v46 = vpop.f32.mrb[30].mxu0  ;;  %v1311_v39 = vmul.f32 %v1247_v42, %v2778_v7  ;;  %v673_v34 = vmul.f32 %v2643_v19, %v2525_v36 }
 0x11c   :  { %v1125_v6 = vmul.f32 0.7978846, %v1061_v57  ;;  %2268 = vtanh.f32 %v1154_v50  ;;  %v2852_v51 = vpop.f32.mrb[30].mxu1  ;;  %v2854_v26 = vpop.f32.mrb[31].mxu0  ;;  %v2857_v54 = vmul.f32 0.5, %v2763_v52  ;;  %v705_v19 = vmul.f32 %v2645_v15, %v2525_v36 }
 0x11d   :  { %v965_v63 = vmul.f32 %v901_v49, %v773_v13  ;;  %v931_v9 = vmul.f32 %v867_v62, %v739_v41  ;;  %v899_v30 = vmul.f32 0.044715, %v771_v45  ;;  %v2859_v24 = vpop.f32.mrb[31].mxu1  ;;  %v1904_v25 = vpack.c.bf16 %v1311_v39, %v1310_v12 }
 0x11e   :  { %2270 = vtanh.f32 %v1125_v6  ;;  %3343 = vst [vmem:[#allocation8_spill] sm:$0xff] %v2859_v24  ;;  %v2261_v8 = vpop.eup %2260  ;;  %v2862_v57 = vadd.f32 %v2530_v38, %v673_v34  ;;  %v802_v42 = vmul.f32 0.5, %v2770_v47  ;;  %v1342_v49 = vmul.f32 %v1278_v60, %v2751_v48 }
 0x11f   :  { %v1029_v7 = vmul.f32 %v965_v63, %v773_v13  ;;  %v1279_v27 = vadd.f32 1.0, %v2261_v8  ;;  %v995_v50 = vmul.f32 %v931_v9, %v739_v41  ;;  %v963_v52 = vmul.f32 %v899_v30, %v771_v45  ;;  %2052 = vst [vmem:[%s3336_s4 + $0x10] sm:$0xff] %v1904_v25  }
 0x120   :  { %v834_v12 = vmul.f32 0.5, %v2787_v44  ;;  %v872_v62 = vmul.f32 0.044715, %v2862_v57  ;;  %v2263_v39 = vpop.eup %2262  ;;  %v2875_v47 = vadd.f32 %v2530_v38, %v705_v19  ;;  %v805_v48 = vmul.f32 0.5, %v2797_v3 }
 0x121   :  { %v1093_v6 = vadd.f32 %v1029_v7, %v773_v13  ;;  %v1343_v63 = vmul.f32 %v1279_v27, %v2781_v22  ;;  %v1059_v15 = vadd.f32 %v995_v50, %v739_v41  ;;  %v1027_v34 = vmul.f32 %v963_v52, %v771_v45  ;;  %v2265_v9 = vpop.eup %2264 }
 0x122   :  { %v936_v30 = vmul.f32 %v872_v62, %v2862_v57  ;;  %v671_v44 = vmul.f32 %v2525_v36, %v2649_v28  ;;  %v2881_v25 = vmul.f32 0.5, %v773_v13  ;;  %v1252_v27 = vadd.f32 1.0, %v2263_v39 }
 0x123   :  { %v1157_v60 = vmul.f32 0.7978846, %v1093_v6  ;;  %v1984_v8 = vpack.c.bf16 %v1343_v63, %v1342_v49  ;;  %v1123_v7 = vmul.f32 0.7978846, %v1059_v15  ;;  %v1091_v24 = vadd.f32 %v1027_v34, %v771_v45  ;;  %v2267_v22 = vpop.eup %2266 }
 0x124   :  { %v803_v50 = vmul.f32 0.5, %v739_v41  ;;  %v1000_v19 = vmul.f32 %v936_v30, %v2862_v57  ;;  %v1284_v3 = vadd.f32 1.0, %v2265_v9  ;;  %v904_v28 = vmul.f32 0.044715, %v2875_v47 }
 0x125   :  { %2272 = vtanh.f32 %v1157_v60  ;;  %2068 = vst [vmem:[%s3336_s4 + $0x90] sm:$0xff] %v1984_v8   ;;  %v1155_v52 = vmul.f32 0.7978846, %v1091_v24  ;;  %v2890_v6 = vadd.f32 %v2530_v38, %v671_v44  ;;  %v703_v41 = vmul.f32 %v2525_v36, %v2651_v0 }
 0x126   :  { %2274 = vtanh.f32 %v1123_v7  ;;  %v2269_v49 = vpop.eup %2268  ;;  %v1064_v13 = vadd.f32 %v1000_v19, %v2862_v57  ;;  %v674_v62 = vmul.f32 %v2658_v32, %v2525_v36  ;;  %v1250_v63 = vadd.f32 1.0, %v2267_v22 }
 0x127   :  { %2276 = vtanh.f32 %v1155_v52  ;;  %v968_v15 = vmul.f32 %v904_v28, %v2875_v47  ;;  %v706_v24 = vmul.f32 %v2660_v4, %v2525_v36  ;;  %v1282_v34 = vadd.f32 1.0, %v2269_v49 }
 0x128   :  { %v2271_v39 = vpop.eup %2270  ;;  %v835_v60 = vmul.f32 0.5, %v771_v45  ;;  %v870_v30 = vmul.f32 0.044715, %v2890_v6  ;;  %v1316_v44 = vmul.f32 %v1252_v27, %v2793_v14  ;;  %v2903_v8 = vadd.f32 %v2530_v38, %v703_v41 }
 0x129   :  { %v1253_v9 = vadd.f32 1.0, %v2271_v39  ;;  %v1032_v0 = vmul.f32 %v968_v15, %v2875_v47  ;;  %v2906_v32 = vadd.f32 %v2530_v38, %v674_v62  ;;  %v1128_v22 = vmul.f32 0.7978846, %v1064_v13 }
 0x12a   :  { %v934_v19 = vmul.f32 %v870_v30, %v2890_v6  ;;  %v2910_v4 = vadd.f32 %v2530_v38, %v706_v24  ;;  %v1348_v45 = vmul.f32 %v1284_v3, %v2857_v54  ;;  %v1314_v52 = vmul.f32 %v1250_v63, %v802_v42 }
 0x12b   :  { %v1317_v7 = vmul.f32 %v1253_v9, %v805_v48  ;;  %v1096_v14 = vadd.f32 %v1032_v0, %v2875_v47  ;;  %v902_v27 = vmul.f32 0.044715, %v2903_v8  ;;  %v1346_v28 = vmul.f32 %v1282_v34, %v834_v12 }
 0x12c   :  { %v998_v41 = vmul.f32 %v934_v19, %v2890_v6  ;;  %v873_v62 = vmul.f32 0.044715, %v2906_v32  ;;  %v905_v39 = vmul.f32 0.044715, %v2910_v4  ;;  %v672_v15 = vmul.f32 %v2525_v36, %v2666_v40 }
 0x12d   :  { %v1919_v49 = vpack.c.bf16 %v1317_v7, %v1316_v44  ;;  %v1160_v48 = vmul.f32 0.7978846, %v1096_v14  ;;  %v966_v13 = vmul.f32 %v902_v27, %v2903_v8  ;;  %2278 = vtanh.f32 %v1128_v22 }
 0x12e   :  { %v1062_v42 = vadd.f32 %v998_v41, %v2890_v6  ;;  %v937_v12 = vmul.f32 %v873_v62, %v2906_v32  ;;  %v704_v3 = vmul.f32 %v2525_v36, %v2668_v20  ;;  %v969_v9 = vmul.f32 %v905_v39, %v2910_v4 }
 0x12f   :  { %v2273_v54 = vpop.eup %2272  ;;  %2055 = vst [vmem:[%s3336_s4 + $0x28] sm:$0xff] %v1919_v49   ;;  %v1030_v34 = vmul.f32 %v966_v13, %v2903_v8  ;;  %v677_v40 = vmul.f32 %v2685_v21, %v2525_v36  ;;  %v743_v7 = vadd.f32 %v2530_v38, %v672_v15  ;;  %2280 = vtanh.f32 %v1160_v48 }
 0x130   :  { %v2275_v63 = vpop.eup %2274  ;;  %v1285_v24 = vadd.f32 1.0, %v2273_v54  ;;  %v1126_v44 = vmul.f32 0.7978846, %v1062_v42  ;;  %v1001_v0 = vmul.f32 %v937_v12, %v2906_v32  ;;  %v1033_v14 = vmul.f32 %v969_v9, %v2910_v4 }
 0x131   :  { %v1251_v30 = vadd.f32 1.0, %v2275_v63  ;;  %v2277_v22 = vpop.eup %2276  ;;  %v1094_v20 = vadd.f32 %v1030_v34, %v2903_v8  ;;  %v775_v21 = vadd.f32 %v2530_v38, %v704_v3  ;;  %v709_v63 = vmul.f32 %v2687_v58, %v2525_v36 }
 0x132   :  { %v1349_v19 = vmul.f32 %v1285_v24, %v2881_v25  ;;  %v1283_v49 = vadd.f32 1.0, %v2277_v22  ;;  %v1065_v41 = vadd.f32 %v1001_v0, %v2906_v32  ;;  %2282 = vtanh.f32 %v1126_v44 }
 0x133   :  { %v1315_v27 = vmul.f32 %v1251_v30, %v803_v50  ;;  %v1158_v13 = vmul.f32 0.7978846, %v1094_v20  ;;  %v1097_v39 = vadd.f32 %v1033_v14, %v2910_v4  ;;  %v871_v25 = vmul.f32 0.044715, %v743_v7 }
 0x134   :  { %v1999_v62 = vpack.c.bf16 %v1349_v19, %v1348_v45  ;;  %v1347_v54 = vmul.f32 %v1283_v49, %v835_v60  ;;  %v1129_v42 = vmul.f32 0.7978846, %v1065_v41  ;;  %v808_v50 = vmul.f32 0.5, %v2862_v57 }
 0x135   :  { %v1914_v15 = vpack.c.bf16 %v1315_v27, %v1314_v52  ;;  %2284 = vtanh.f32 %v1158_v13  ;;  %v1161_v48 = vmul.f32 0.7978846, %v1097_v39  ;;  %v935_v12 = vmul.f32 %v871_v25, %v743_v7 }
 0x136   :  { %2071 = vst [vmem:[%s3336_s4 + $0xa8] sm:$0xff] %v1999_v62   ;;  %v1994_v45 = vpack.c.bf16 %v1347_v54, %v1346_v28  ;;  %2286 = vtanh.f32 %v1129_v42  ;;  %v903_v3 = vmul.f32 0.044715, %v775_v21  ;;  %v840_v60 = vmul.f32 0.5, %v2875_v47 }
 0x137   :  { %2054 = vst [vmem:[%s3336_s4 + $0x20] sm:$0xff] %v1914_v15   ;;  %2288 = vtanh.f32 %v1161_v48  ;;  %v2949_v52 = vadd.f32 %v2530_v38, %v677_v40  ;;  %v2279_v57 = vpop.eup %2278  ;;  %v999_v24 = vmul.f32 %v935_v12, %v743_v7  ;;  %v675_v28 = vmul.f32 %v2525_v36, %v2690_v29 }
 0x138   :  { %2070 = vst [vmem:[%s3336_s4 + $0xa0] sm:$0xff] %v1994_v45   ;;  %v967_v34 = vmul.f32 %v903_v3, %v775_v21  ;;  %v707_v47 = vmul.f32 %v2525_v36, %v2692_v16  ;;  %v2961_v9 = vmul.f32 0.5, %v2890_v6  ;;  %v2964_v40 = vmul.f32 0.5, %v2903_v8 }
 0x139   :  { %v876_v58 = vmul.f32 0.044715, %v2949_v52  ;;  %v2968_v30 = vadd.f32 %v2530_v38, %v709_v63  ;;  %v809_v44 = vmul.f32 0.5, %v2906_v32  ;;  %v1063_v0 = vadd.f32 %v999_v24, %v743_v7  ;;  %v2281_v19 = vpop.eup %2280 }
 0x13a   :  { %v1031_v22 = vmul.f32 %v967_v34, %v775_v21  ;;  %v2972_v29 = vadd.f32 %v2530_v38, %v675_v28  ;;  %v841_v16 = vmul.f32 0.5, %v2910_v4  ;;  %v2978_v20 = vadd.f32 %v2530_v38, %v707_v47 }
 0x13b   :  { %v940_v6 = vmul.f32 %v876_v58, %v2949_v52  ;;  %v908_v8 = vmul.f32 0.044715, %v2968_v30  ;;  %v1256_v14 = vadd.f32 1.0, %v2279_v57  ;;  %v1127_v27 = vmul.f32 0.7978846, %v1063_v0 }
 0x13c   :  { %v1095_v49 = vadd.f32 %v1031_v22, %v775_v21  ;;  %v678_v32 = vmul.f32 %v2698_v35, %v2525_v36  ;;  %v2283_v41 = vpop.eup %2282  ;;  %v2982_v62 = vmul.f32 0.5, %v743_v7  ;;  %v874_v39 = vmul.f32 0.044715, %v2972_v29 }
 0x13d   :  { %v1004_v13 = vmul.f32 %v940_v6, %v2949_v52  ;;  %v972_v4 = vmul.f32 %v908_v8, %v2968_v30  ;;  %v1288_v15 = vadd.f32 1.0, %v2281_v19  ;;  %2290 = vtanh.f32 %v1127_v27 }
 0x13e   :  { %v1159_v54 = vmul.f32 0.7978846, %v1095_v49  ;;  %v906_v42 = vmul.f32 0.044715, %v2978_v20  ;;  %v2988_v48 = vmul.f32 0.5, %v775_v21  ;;  %v938_v7 = vmul.f32 %v874_v39, %v2972_v29 }
 0x13f   :  { %v2285_v25 = vpop.eup %2284  ;;  %v1068_v45 = vadd.f32 %v1004_v13, %v2949_v52  ;;  %v1036_v35 = vmul.f32 %v972_v4, %v2968_v30  ;;  %v1320_v3 = vmul.f32 %v1256_v14, %v808_v50  ;;  %v2995_v57 = vadd.f32 %v2530_v38, %v678_v32 }
 0x140   :  { %v2287_v12 = vpop.eup %2286  ;;  %2292 = vtanh.f32 %v1159_v54  ;;  %v970_v63 = vmul.f32 %v906_v42, %v2978_v20  ;;  %v1002_v47 = vmul.f32 %v938_v7, %v2972_v29  ;;  %v1352_v58 = vmul.f32 %v1288_v15, %v840_v60 }
 0x141   :  { %v2289_v24 = vpop.eup %2288  ;;  %v1257_v34 = vadd.f32 1.0, %v2287_v12  ;;  %v1132_v28 = vmul.f32 0.7978846, %v1068_v45  ;;  %v1100_v21 = vadd.f32 %v1036_v35, %v2968_v30  ;;  %v1254_v0 = vadd.f32 1.0, %v2283_v41 }
 0x142   :  { %v1289_v22 = vadd.f32 1.0, %v2289_v24  ;;  %v1034_v19 = vmul.f32 %v970_v63, %v2978_v20  ;;  %v1286_v6 = vadd.f32 1.0, %v2285_v25  ;;  %v1066_v14 = vadd.f32 %v1002_v47, %v2972_v29 }
 0x143   :  { %v1321_v50 = vmul.f32 %v1257_v34, %v809_v44  ;;  %v1164_v8 = vmul.f32 0.7978846, %v1100_v21  ;;  %v877_v32 = vmul.f32 0.044715, %v2995_v57  ;;  %v710_v13 = vmul.f32 %v2700_v37, %v2525_v36  ;;  %v3040_v21 = vld [vmem:[%s3334_s2] ss:$0 sm:$0xff] }
 0x144   :  { %v1353_v27 = vmul.f32 %v1289_v22, %v841_v16  ;;  %v1098_v49 = vadd.f32 %v1034_v19, %v2978_v20  ;;  %2294 = vtanh.f32 %v1132_v28  ;;  %v1130_v60 = vmul.f32 0.7978846, %v1066_v14 }
 0x145   :  { %v1929_v4 = vpack.c.bf16 %v1321_v50, %v1320_v3  ;;  %v676_v41 = vmul.f32 %v2525_v36, %v2704_v2  ;;  %2296 = vtanh.f32 %v1164_v8  ;;  %v941_v44 = vmul.f32 %v877_v32, %v2995_v57 }
 0x146   :  { %v2009_v39 = vpack.c.bf16 %v1353_v27, %v1352_v58  ;;  %v781_v15 = vadd.f32 %v2530_v38, %v710_v13  ;;  %v3013_v16 = vmul.f32 0.5, %v2949_v52  ;;  %v708_v54 = vmul.f32 %v2525_v36, %v2706_v59  ;;  %v3028_v59 = vld [vmem:[%s3335_s3] ss:$0 sm:$0xff] }
 0x147   :  { %2057 = vst [vmem:[%s3336_s4 + $0x38] sm:$0xff] %v1929_v4   ;;  %v747_v37 = vadd.f32 %v2530_v38, %v676_v41  ;;  %v681_v2 = vmul.f32 %v2734_v43, %v2525_v36  ;;  %v2291_v42 = vpop.eup %2290  ;;  %2298 = vtanh.f32 %v1130_v60  ;;  %v1162_v25 = vmul.f32 0.7978846, %v1098_v49 }
 0x148   :  { %2073 = vst [vmem:[%s3336_s4 + $0xb8] sm:$0xff] %v2009_v39   ;;  %v1005_v45 = vmul.f32 %v941_v44, %v2995_v57  ;;  %v909_v35 = vmul.f32 0.044715, %v781_v15  ;;  %v1318_v52 = vmul.f32 %v1254_v0, %v2961_v9  ;;  %v1255_v7 = vadd.f32 1.0, %v2291_v42 }
 0x149   :  { %v875_v38 = vmul.f32 0.044715, %v747_v37  ;;  %v779_v36 = vadd.f32 %v3028_v59, %v708_v54  ;;  %v1350_v12 = vmul.f32 %v1286_v6, %v2964_v40  ;;  %v3034_v24 = vadd.f32 %v3028_v59, %v681_v2 }
 0x14a   :  { %v2293_v43 = vpop.eup %2292  ;;  %v1069_v3 = vadd.f32 %v1005_v45, %v2995_v57  ;;  %v973_v63 = vmul.f32 %v909_v35, %v781_v15  ;;  %v1319_v9 = vmul.f32 %v1255_v7, %v2982_v62  ;;  %v713_v47 = vmul.f32 %v3040_v21, %v2736_v18 }
 0x14b   :  { %v1287_v34 = vadd.f32 1.0, %v2293_v43  ;;  %v939_v28 = vmul.f32 %v875_v38, %v747_v37  ;;  %2300 = vtanh.f32 %v1162_v25  ;;  %v907_v0 = vmul.f32 0.044715, %v779_v36 }
 0x14c   :  { %v1133_v40 = vmul.f32 0.7978846, %v1069_v3  ;;  %v1037_v58 = vmul.f32 %v973_v63, %v781_v15  ;;  %v1924_v22 = vpack.c.bf16 %v1319_v9, %v1318_v52  ;;  %v880_v62 = vmul.f32 0.044715, %v3034_v24 }
 0x14d   :  { %v1351_v19 = vmul.f32 %v1287_v34, %v2988_v48  ;;  %v1003_v6 = vmul.f32 %v939_v28, %v747_v37  ;;  %v844_v50 = vmul.f32 0.5, %v2968_v30  ;;  %v971_v14 = vmul.f32 %v907_v0, %v779_v36 }
 0x14e   :  { %2302 = vtanh.f32 %v1133_v40  ;;  %v1101_v8 = vadd.f32 %v1037_v58, %v781_v15  ;;  %v2295_v27 = vpop.eup %2294  ;;  %2056 = vst [vmem:[%s3336_s4 + $0x30] sm:$0xff] %v1924_v22   ;;  %v944_v32 = vmul.f32 %v880_v62, %v3034_v24  ;;  %v3052_v13 = vadd.f32 %v3028_v59, %v713_v47 }
 0x14f   :  { %v2004_v18 = vpack.c.bf16 %v1351_v19, %v1350_v12  ;;  %v1067_v49 = vadd.f32 %v1003_v6, %v747_v37  ;;  %v2297_v48 = vpop.eup %2296  ;;  %v810_v4 = vmul.f32 0.5, %v2972_v29  ;;  %v3056_v30 = vmul.f32 0.5, %v2978_v20 }
 0x150   :  { %v1165_v60 = vmul.f32 0.7978846, %v1101_v8  ;;  %v1035_v41 = vmul.f32 %v971_v14, %v779_v36  ;;  %v813_v39 = vmul.f32 0.5, %v2995_v57  ;;  %v1008_v54 = vmul.f32 %v944_v32, %v3034_v24 }
 0x151   :  { %2072 = vst [vmem:[%s3336_s4 + $0xb0] sm:$0xff] %v2004_v18   ;;  %v1131_v44 = vmul.f32 0.7978846, %v1067_v49  ;;  %v912_v2 = vmul.f32 0.044715, %v3052_v13  ;;  %v2299_v42 = vpop.eup %2298  ;;  %v845_v25 = vmul.f32 0.5, %v781_v15  ;;  %v679_v57 = vmul.f32 %v3040_v21, %v2743_v1 }
 0x152   :  { %2304 = vtanh.f32 %v1165_v60  ;;  %v811_v29 = vmul.f32 0.5, %v747_v37  ;;  %v1099_v45 = vadd.f32 %v1035_v41, %v779_v36  ;;  %v1260_v20 = vadd.f32 1.0, %v2295_v27 }
 0x153   :  { %v1292_v35 = vadd.f32 1.0, %v2297_v48  ;;  %2306 = vtanh.f32 %v1131_v44  ;;  %v976_v52 = vmul.f32 %v912_v2, %v3052_v13  ;;  %v1072_v38 = vadd.f32 %v1008_v54, %v3034_v24 }
 0x154   :  { %v1163_v7 = vmul.f32 0.7978846, %v1099_v45  ;;  %v711_v43 = vmul.f32 %v3040_v21, %v2745_v31  ;;  %v1258_v12 = vadd.f32 1.0, %v2299_v42  ;;  %v843_v3 = vmul.f32 0.5, %v779_v36 }
 0x155   :  { %v1040_v15 = vmul.f32 %v976_v52, %v3052_v13  ;;  %v682_v37 = vmul.f32 %v3040_v21, %v2756_v33  ;;  %v2301_v63 = vpop.eup %2300  ;;  %v3074_v9 = vadd.f32 %v3028_v59, %v679_v57  ;;  %v714_v1 = vmul.f32 %v3040_v21, %v2758_v11 }
 0x156   :  { %2308 = vtanh.f32 %v1163_v7  ;;  %v3077_v34 = vadd.f32 %v3028_v59, %v711_v43  ;;  %v1324_v31 = vmul.f32 %v1260_v20, %v3013_v16  ;;  %v680_v33 = vmul.f32 %v3040_v21, %v2765_v5 }
 0x157   :  { %v1104_v36 = vadd.f32 %v1040_v15, %v3052_v13  ;;  %v3084_v28 = vadd.f32 %v3028_v59, %v682_v37  ;;  %v1356_v40 = vmul.f32 %v1292_v35, %v844_v50  ;;  %v1136_v58 = vmul.f32 0.7978846, %v1072_v38 }
 0x158   :  { %v2303_v47 = vpop.eup %2302  ;;  %v878_v0 = vmul.f32 0.044715, %v3074_v9  ;;  %v910_v22 = vmul.f32 0.044715, %v3077_v34  ;;  %v1290_v19 = vadd.f32 1.0, %v2301_v63  ;;  %v1322_v62 = vmul.f32 %v1258_v12, %v810_v4 }
 0x159   :  { %v1261_v6 = vadd.f32 1.0, %v2303_v47  ;;  %v1168_v11 = vmul.f32 0.7978846, %v1104_v36  ;;  %v881_v16 = vmul.f32 0.044715, %v3084_v28  ;;  %v3094_v27 = vadd.f32 %v3028_v59, %v714_v1 }
 0x15a   :  { %v942_v8 = vmul.f32 %v878_v0, %v3074_v9  ;;  %v974_v14 = vmul.f32 %v910_v22, %v3077_v34  ;;  %v3098_v18 = vadd.f32 %v3028_v59, %v680_v33  ;;  %v712_v49 = vmul.f32 %v3040_v21, %v2767_v17 }
 0x15b   :  { %v1325_v5 = vmul.f32 %v1261_v6, %v813_v39  ;;  %v945_v50 = vmul.f32 %v881_v16, %v3084_v28  ;;  %2310 = vtanh.f32 %v1136_v58  ;;  %v913_v60 = vmul.f32 0.044715, %v3094_v27  ;;  %v3345_v6 = vld [vmem:[#allocation3_spill] sm:$0xff] }
 0x15c   :  { %v2305_v32 = vpop.eup %2304  ;;  %v1006_v48 = vmul.f32 %v942_v8, %v3074_v9  ;;  %v1038_v4 = vmul.f32 %v974_v14, %v3077_v34  ;;  %2312 = vtanh.f32 %v1168_v11  ;;  %v879_v52 = vmul.f32 0.044715, %v3098_v18  ;;  %v3346_v8 = vld [vmem:[#allocation4_spill] sm:$0xff] }
 0x15d   :  { %v2307_v41 = vpop.eup %2306  ;;  %v1939_v44 = vpack.c.bf16 %v1325_v5, %v1324_v31  ;;  %v1293_v54 = vadd.f32 1.0, %v2305_v32  ;;  %v1009_v39 = vmul.f32 %v945_v50, %v3084_v28  ;;  %v977_v17 = vmul.f32 %v913_v60, %v3094_v27 }
 0x15e   :  { %v1259_v2 = vadd.f32 1.0, %v2307_v41  ;;  %v1070_v42 = vadd.f32 %v1006_v48, %v3074_v9  ;;  %v1102_v45 = vadd.f32 %v1038_v4, %v3077_v34  ;;  %v3115_v7 = vadd.f32 %v3028_v59, %v712_v49  ;;  %v3347_v48 = vld [vmem:[#allocation5_spill] sm:$0xff] }
 0x15f   :  { %2059 = vst [vmem:[%s3336_s4 + $0x48] sm:$0xff] %v1939_v44   ;;  %v1357_v20 = vmul.f32 %v1293_v54, %v845_v25  ;;  %v1073_v35 = vadd.f32 %v1009_v39, %v3084_v28  ;;  %v1041_v15 = vmul.f32 %v977_v17, %v3094_v27  ;;  %v943_v31 = vmul.f32 %v879_v52, %v3098_v18 }
 0x160   :  { %v2309_v38 = vpop.eup %2308  ;;  %v1323_v57 = vmul.f32 %v1259_v2, %v811_v29  ;;  %v1134_v43 = vmul.f32 0.7978846, %v1070_v42  ;;  %v1166_v12 = vmul.f32 0.7978846, %v1102_v45  ;;  %v1354_v33 = vmul.f32 %v1290_v19, %v3056_v30  ;;  %v3344_v30 = vld [vmem:[#allocation2_spill] sm:$0xff] }
 0x161   :  { %v2019_v37 = vpack.c.bf16 %v1357_v20, %v1356_v40  ;;  %v1291_v63 = vadd.f32 1.0, %v2309_v38  ;;  %v1137_v1 = vmul.f32 0.7978846, %v1073_v35  ;;  %v1105_v25 = vadd.f32 %v1041_v15, %v3094_v27  ;;  %v3348_v2 = vld [vmem:[#allocation6_spill] sm:$0xff] }
 0x162   :  { %v1934_v36 = vpack.c.bf16 %v1323_v57, %v1322_v62  ;;  %2314 = vtanh.f32 %v1134_v43  ;;  %v1007_v47 = vmul.f32 %v943_v31, %v3098_v18  ;;  %v911_v58 = vmul.f32 0.044715, %v3115_v7 }
 0x163   :  { %2075 = vst [vmem:[%s3336_s4 + $0xc8] sm:$0xff] %v2019_v37   ;;  %v1355_v29 = vmul.f32 %v1291_v63, %v843_v3  ;;  %2316 = vtanh.f32 %v1166_v12  ;;  %v1169_v40 = vmul.f32 0.7978846, %v1105_v25  ;;  %v685_v19 = vmul.f32 %v3040_v21, %v3344_v30  ;;  %v3349_v25 = vld [vmem:[#allocation7_spill] sm:$0xff] }
 0x164   :  { %2058 = vst [vmem:[%s3336_s4 + $0x40] sm:$0xff] %v1934_v36   ;;  %2318 = vtanh.f32 %v1137_v1  ;;  %v1071_v22 = vadd.f32 %v1007_v47, %v3098_v18  ;;  %v717_v3 = vmul.f32 %v3040_v21, %v3345_v6  ;;  %v816_v16 = vmul.f32 0.5, %v3034_v24 }
 0x165   :  { %v2014_v0 = vpack.c.bf16 %v1355_v29, %v1354_v33  ;;  %v2311_v11 = vpop.eup %2310  ;;  %2320 = vtanh.f32 %v1169_v40  ;;  %v975_v62 = vmul.f32 %v911_v58, %v3115_v7  ;;  %v683_v14 = vmul.f32 %v3040_v21, %v3346_v8 }
 0x166   :  { %v2313_v5 = vpop.eup %2312  ;;  %v1135_v50 = vmul.f32 0.7978846, %v1071_v22  ;;  %v3142_v49 = vadd.f32 %v3028_v59, %v685_v19  ;;  %v3145_v32 = vadd.f32 %v3028_v59, %v717_v3  ;;  %v715_v24 = vmul.f32 %v3040_v21, %v3347_v48 }
 0x167   :  { %2074 = vst [vmem:[%s3336_s4 + $0xc0] sm:$0xff] %v2014_v0   ;;  %v848_v4 = vmul.f32 0.5, %v3052_v13  ;;  %v814_v60 = vmul.f32 0.5, %v3074_v9  ;;  %v1039_v41 = vmul.f32 %v975_v62, %v3115_v7  ;;  %v3153_v44 = vadd.f32 %v3028_v59, %v683_v14 }
 0x168   :  { %v3156_v54 = vmul.f32 0.5, %v3077_v34  ;;  %2322 = vtanh.f32 %v1135_v50  ;;  %v884_v39 = vmul.f32 0.044715, %v3142_v49  ;;  %v686_v42 = vmul.f32 %v3040_v21, %v3348_v2 }
 0x169   :  { %v817_v45 = vmul.f32 0.5, %v3084_v28  ;;  %v1103_v13 = vadd.f32 %v1039_v41, %v3115_v7  ;;  %v916_v9 = vmul.f32 0.044715, %v3145_v32  ;;  %v882_v17 = vmul.f32 0.044715, %v3153_v44 }
 0x16a   :  { %v849_v20 = vmul.f32 0.5, %v3094_v27  ;;  %v815_v35 = vmul.f32 0.5, %v3098_v18  ;;  %v948_v34 = vmul.f32 %v884_v39, %v3142_v49  ;;  %v3169_v52 = vadd.f32 %v3028_v59, %v715_v24 }
 0x16b   :  { %v1264_v57 = vadd.f32 1.0, %v2311_v11  ;;  %v1167_v43 = vmul.f32 0.7978846, %v1103_v13  ;;  %v980_v28 = vmul.f32 %v916_v9, %v3145_v32  ;;  %v946_v12 = vmul.f32 %v882_v17, %v3153_v44 }
 0x16c   :  { %v2315_v38 = vpop.eup %2314  ;;  %v1296_v37 = vadd.f32 1.0, %v2313_v5  ;;  %v1012_v63 = vmul.f32 %v948_v34, %v3142_v49  ;;  %v914_v27 = vmul.f32 0.044715, %v3169_v52  ;;  %v3176_v18 = vadd.f32 %v3028_v59, %v686_v42 }
 0x16d   :  { %v2317_v15 = vpop.eup %2316  ;;  %2324 = vtanh.f32 %v1167_v43  ;;  %v1044_v31 = vmul.f32 %v980_v28, %v3145_v32  ;;  %v1010_v36 = vmul.f32 %v946_v12, %v3153_v44  ;;  %v718_v33 = vmul.f32 %v3040_v21, %v3349_v25 }
 0x16e   :  { %v2319_v1 = vpop.eup %2318  ;;  %v847_v47 = vmul.f32 0.5, %v3115_v7  ;;  %v1076_v40 = vadd.f32 %v1012_v63, %v3142_v49  ;;  %v978_v58 = vmul.f32 %v914_v27, %v3169_v52  ;;  %v1328_v22 = vmul.f32 %v1264_v57, %v816_v16 }
 0x16f   :  { %v1265_v29 = vadd.f32 1.0, %v2319_v1  ;;  %v2321_v0 = vpop.eup %2320  ;;  %v1262_v30 = vadd.f32 1.0, %v2315_v38  ;;  %v1108_v19 = vadd.f32 %v1044_v31, %v3145_v32  ;;  %v1074_v6 = vadd.f32 %v1010_v36, %v3153_v44 }
 0x170   :  { %v1297_v11 = vadd.f32 1.0, %v2321_v0  ;;  %v1140_v62 = vmul.f32 0.7978846, %v1076_v40  ;;  %v1042_v8 = vmul.f32 %v978_v58, %v3169_v52  ;;  %v1360_v14 = vmul.f32 %v1296_v37, %v848_v4 }
 0x171   :  { %v1329_v3 = vmul.f32 %v1265_v29, %v817_v45  ;;  %v885_v5 = vmul.f32 0.044715, %v3176_v18  ;;  %v3190_v7 = vadd.f32 %v3028_v59, %v718_v33  ;;  %v684_v50 = vmul.f32 %v3040_v21, %v2813_v23 }
 0x172   :  { %v2323_v16 = vpop.eup %2322  ;;  %v1294_v48 = vadd.f32 1.0, %v2317_v15  ;;  %v1361_v41 = vmul.f32 %v1297_v11, %v849_v20  ;;  %v1172_v39 = vmul.f32 0.7978846, %v1108_v19  ;;  %v1326_v2 = vmul.f32 %v1262_v30, %v814_v60 }
 0x173   :  { %v1949_v24 = vpack.c.bf16 %v1329_v3, %v1328_v22  ;;  %v1263_v42 = vadd.f32 1.0, %v2323_v16  ;;  %v1138_v45 = vmul.f32 0.7978846, %v1074_v6  ;;  %v949_v13 = vmul.f32 %v885_v5, %v3176_v18 }
 0x174   :  { %v2029_v4 = vpack.c.bf16 %v1361_v41, %v1360_v14  ;;  %2326 = vtanh.f32 %v1140_v62  ;;  %v1106_v9 = vadd.f32 %v1042_v8, %v3169_v52  ;;  %v917_v23 = vmul.f32 0.044715, %v3190_v7 }
 0x175   :  { %2061 = vst [vmem:[%s3336_s4 + $0x58] sm:$0xff] %v1949_v24   ;;  %v1327_v17 = vmul.f32 %v1263_v42, %v815_v35  ;;  %v1013_v34 = vmul.f32 %v949_v13, %v3176_v18  ;;  %v755_v20 = vadd.f32 %v3028_v59, %v684_v50  ;;  %v716_v60 = vmul.f32 %v3040_v21, %v2815_v56 }
 0x176   :  { %2077 = vst [vmem:[%s3336_s4 + $0xd8] sm:$0xff] %v2029_v4   ;;  %2328 = vtanh.f32 %v1172_v39  ;;  %v981_v38 = vmul.f32 %v917_v23, %v3190_v7  ;;  %v689_v57 = vmul.f32 %v3040_v21, %v2827_v53  ;;  %v721_v35 = vmul.f32 %v3040_v21, %v2829_v10 }
 0x177   :  { %v2325_v43 = vpop.eup %2324  ;;  %v1944_v28 = vpack.c.bf16 %v1327_v17, %v1326_v2  ;;  %2330 = vtanh.f32 %v1138_v45  ;;  %v1077_v12 = vadd.f32 %v1013_v34, %v3176_v18  ;;  %v883_v15 = vmul.f32 0.044715, %v755_v20 }
 0x178   :  { %v1295_v56 = vadd.f32 1.0, %v2325_v43  ;;  %v1045_v37 = vmul.f32 %v981_v38, %v3190_v7  ;;  %v787_v63 = vadd.f32 %v3028_v59, %v716_v60  ;;  %v3216_v27 = vadd.f32 %v3028_v59, %v689_v57 }
 0x179   :  { %v1358_v1 = vmul.f32 %v1294_v48, %v3156_v54  ;;  %2060 = vst [vmem:[%s3336_s4 + $0x50] sm:$0xff] %v1944_v28   ;;  %v1141_v53 = vmul.f32 0.7978846, %v1077_v12  ;;  %v947_v10 = vmul.f32 %v883_v15, %v755_v20  ;;  %v3223_v31 = vadd.f32 %v3028_v59, %v721_v35 }
 0x17a   :  { %v1359_v36 = vmul.f32 %v1295_v56, %v847_v47  ;;  %v1109_v25 = vadd.f32 %v1045_v37, %v3190_v7  ;;  %v915_v33 = vmul.f32 0.044715, %v787_v63  ;;  %v687_v29 = vmul.f32 %v3040_v21, %v2835_v61 }
 0x17b   :  { %v1170_v40 = vmul.f32 0.7978846, %v1106_v9  ;;  %2332 = vtanh.f32 %v1141_v53  ;;  %v1011_v58 = vmul.f32 %v947_v10, %v755_v20  ;;  %v888_v54 = vmul.f32 0.044715, %v3216_v27 }
 0x17c   :  { %v2024_v0 = vpack.c.bf16 %v1359_v36, %v1358_v1  ;;  %v1173_v22 = vmul.f32 0.7978846, %v1109_v25  ;;  %v979_v30 = vmul.f32 %v915_v33, %v787_v63  ;;  %v820_v19 = vmul.f32 0.5, %v3142_v49 }
 0x17d   :  { %v1075_v6 = vadd.f32 %v1011_v58, %v755_v20  ;;  %v920_v3 = vmul.f32 0.044715, %v3223_v31  ;;  %v952_v11 = vmul.f32 %v888_v54, %v3216_v27  ;;  %v3236_v62 = vadd.f32 %v3028_v59, %v687_v29  ;;  %v3350_v54 = vld [vmem:[#allocation8_spill] sm:$0xff] }
 0x17e   :  { %v2327_v47 = vpop.eup %2326  ;;  %2076 = vst [vmem:[%s3336_s4 + $0xd0] sm:$0xff] %v2024_v0   ;;  %2334 = vtanh.f32 %v1173_v22  ;;  %v1043_v61 = vmul.f32 %v979_v30, %v787_v63  ;;  %v852_v8 = vmul.f32 0.5, %v3145_v32  ;;  %v818_v14 = vmul.f32 0.5, %v3153_v44 }
 0x17f   :  { %2336 = vtanh.f32 %v1170_v40  ;;  %v1139_v49 = vmul.f32 0.7978846, %v1075_v6  ;;  %v3241_v50 = vmul.f32 0.5, %v3169_v52  ;;  %v821_v16 = vmul.f32 0.5, %v3176_v18 }
 0x180   :  { %v2329_v5 = vpop.eup %2328  ;;  %v1107_v48 = vadd.f32 %v1043_v61, %v787_v63  ;;  %v984_v24 = vmul.f32 %v920_v3, %v3223_v31  ;;  %v1268_v39 = vadd.f32 1.0, %v2327_v47  ;;  %v853_v2 = vmul.f32 0.5, %v3190_v7 }
 0x181   :  { %v2331_v41 = vpop.eup %2330  ;;  %v819_v42 = vmul.f32 0.5, %v755_v20  ;;  %2338 = vtanh.f32 %v1139_v49  ;;  %v1016_v44 = vmul.f32 %v952_v11, %v3216_v27  ;;  %v886_v45 = vmul.f32 0.044715, %v3236_v62 }
 0x182   :  { %v1171_v32 = vmul.f32 0.7978846, %v1107_v48  ;;  %v719_v52 = vmul.f32 %v3040_v21, %v2837_v55  ;;  %v1300_v13 = vadd.f32 1.0, %v2329_v5  ;;  %v1048_v18 = vmul.f32 %v984_v24, %v3223_v31 }
 0x183   :  { %v690_v4 = vmul.f32 %v3040_v21, %v2847_v46  ;;  %v722_v9 = vmul.f32 %v3040_v21, %v2852_v51  ;;  %v1266_v7 = vadd.f32 1.0, %v2331_v41  ;;  %v950_v23 = vmul.f32 %v886_v45, %v3236_v62 }
 0x184   :  { %2340 = vtanh.f32 %v1171_v32  ;;  %v3257_v17 = vadd.f32 %v3028_v59, %v719_v52  ;;  %v851_v20 = vmul.f32 0.5, %v787_v63  ;;  %v688_v46 = vmul.f32 %v3040_v21, %v2854_v26 }
 0x185   :  { %v2333_v34 = vpop.eup %2332  ;;  %v3260_v55 = vadd.f32 %v3028_v59, %v690_v4  ;;  %v3263_v60 = vadd.f32 %v3028_v59, %v722_v9  ;;  %v1332_v38 = vmul.f32 %v1268_v39, %v820_v19  ;;  %v1080_v57 = vadd.f32 %v1016_v44, %v3216_v27 }
 0x186   :  { %v1269_v51 = vadd.f32 1.0, %v2333_v34  ;;  %v1014_v35 = vmul.f32 %v950_v23, %v3236_v62  ;;  %v1364_v43 = vmul.f32 %v1300_v13, %v852_v8  ;;  %v1112_v28 = vadd.f32 %v1048_v18, %v3223_v31 }
 0x187   :  { %v918_v12 = vmul.f32 0.044715, %v3257_v17  ;;  %v889_v15 = vmul.f32 0.044715, %v3260_v55  ;;  %v1330_v37 = vmul.f32 %v1266_v7, %v818_v14  ;;  %v921_v26 = vmul.f32 0.044715, %v3263_v60 }
 0x188   :  { %v2335_v56 = vpop.eup %2334  ;;  %v1333_v63 = vmul.f32 %v1269_v51, %v821_v16  ;;  %v1078_v1 = vadd.f32 %v1014_v35, %v3236_v62  ;;  %v3277_v33 = vadd.f32 %v3028_v59, %v688_v46  ;;  %v1144_v40 = vmul.f32 0.7978846, %v1080_v57 }
 0x189   :  { %v2337_v53 = vpop.eup %2336  ;;  %v1301_v10 = vadd.f32 1.0, %v2335_v56  ;;  %v982_v36 = vmul.f32 %v918_v12, %v3257_v17  ;;  %v953_v25 = vmul.f32 %v889_v15, %v3260_v55  ;;  %v985_v58 = vmul.f32 %v921_v26, %v3263_v60 }
 0x18a   :  { %v1959_v29 = vpack.c.bf16 %v1333_v63, %v1332_v38  ;;  %v720_v0 = vmul.f32 %v3040_v21, %v3350_v54  ;;  %v1176_v19 = vmul.f32 0.7978846, %v1112_v28  ;;  %v1298_v47 = vadd.f32 1.0, %v2337_v53 }
 0x18b   :  { %v2339_v22 = vpop.eup %2338  ;;  %v1365_v30 = vmul.f32 %v1301_v10, %v853_v2  ;;  %v1046_v6 = vmul.f32 %v982_v36, %v3257_v17  ;;  %v1017_v3 = vmul.f32 %v953_v25, %v3260_v55  ;;  %v1049_v11 = vmul.f32 %v985_v58, %v3263_v60 }
 0x18c   :  { %2063 = vst [vmem:[%s3336_s4 + $0x68] sm:$0xff] %v1959_v29   ;;  %v1267_v61 = vadd.f32 1.0, %v2339_v22  ;;  %v887_v8 = vmul.f32 0.044715, %v3277_v33  ;;  %v1142_v49 = vmul.f32 0.7978846, %v1078_v1  ;;  %v3291_v5 = vadd.f32 %v3028_v59, %v720_v0 }
 0x18d   :  { %v2039_v14 = vpack.c.bf16 %v1365_v30, %v1364_v43  ;;  %v1081_v21 = vadd.f32 %v1017_v3, %v3260_v55  ;;  %2342 = vtanh.f32 %v1144_v40  ;;  %v1113_v24 = vadd.f32 %v1049_v11, %v3263_v60 }
 0x18e   :  { %v2341_v16 = vpop.eup %2340  ;;  %v1331_v48 = vmul.f32 %v1267_v61, %v819_v42  ;;  %v951_v41 = vmul.f32 %v887_v8, %v3277_v33  ;;  %2344 = vtanh.f32 %v1176_v19  ;;  %v1110_v2 = vadd.f32 %v1046_v6, %v3257_v17 }
 0x18f   :  { %2079 = vst [vmem:[%s3336_s4 + $0xe8] sm:$0xff] %v2039_v14   ;;  %v1299_v39 = vadd.f32 1.0, %v2341_v16  ;;  %v1145_v32 = vmul.f32 0.7978846, %v1081_v21  ;;  %v1177_v45 = vmul.f32 0.7978846, %v1113_v24  ;;  %v1362_v42 = vmul.f32 %v1298_v47, %v3241_v50 }
 0x190   :  { %v1954_v44 = vpack.c.bf16 %v1331_v48, %v1330_v37  ;;  %v1015_v59 = vmul.f32 %v951_v41, %v3277_v33  ;;  %2346 = vtanh.f32 %v1142_v49  ;;  %v919_v13 = vmul.f32 0.044715, %v3291_v5 }
 0x191   :  { %v1363_v52 = vmul.f32 %v1299_v39, %v851_v20  ;;  %2348 = vtanh.f32 %v1145_v32  ;;  %v1174_v9 = vmul.f32 0.7978846, %v1110_v2  ;;  %v824_v12 = vmul.f32 0.5, %v3216_v27 }
 0x192   :  { %2062 = vst [vmem:[%s3336_s4 + $0x60] sm:$0xff] %v1954_v44   ;;  %v1079_v18 = vadd.f32 %v1015_v59, %v3277_v33  ;;  %2350 = vtanh.f32 %v1177_v45  ;;  %v983_v7 = vmul.f32 %v919_v13, %v3291_v5  ;;  %v825_v15 = vmul.f32 0.5, %v3260_v55 }
 0x193   :  { %v2034_v4 = vpack.c.bf16 %v1363_v52, %v1362_v42  ;;  %v856_v37 = vmul.f32 0.5, %v3223_v31  ;;  %v857_v63 = vmul.f32 0.5, %v3263_v60  ;;  %v822_v58 = vmul.f32 0.5, %v3236_v62 }
 0x194   :  { %v1143_v23 = vmul.f32 0.7978846, %v1079_v18  ;;  %v1047_v50 = vmul.f32 %v983_v7, %v3291_v5  ;;  %v823_v27 = vmul.f32 0.5, %v3277_v33  ;;  %v854_v62 = vmul.f32 0.5, %v3257_v17 }
 0x195   :  { %2078 = vst [vmem:[%s3336_s4 + $0xe0] sm:$0xff] %v2034_v4   ;;  %v855_v6 = vmul.f32 0.5, %v3291_v5 }
 0x196   :  { %2352 = vtanh.f32 %v1143_v23  ;;  %v1111_v34 = vadd.f32 %v1047_v50, %v3291_v5 }
 0x197   :  { %2354 = vtanh.f32 %v1174_v9  ;;  %v2343_v20 = vpop.eup %2342 }
 0x198   :  { %v2345_v46 = vpop.eup %2344  ;;  %v1175_v38 = vmul.f32 0.7978846, %v1111_v34  ;;  %v1272_v57 = vadd.f32 1.0, %v2343_v20 }
 0x199   :  { %v1304_v43 = vadd.f32 1.0, %v2345_v46 }
 0x19a   :  { %v2347_v51 = vpop.eup %2346  ;;  %2356 = vtanh.f32 %v1175_v38  ;;  %v1336_v26 = vmul.f32 %v1272_v57, %v824_v12 }
 0x19b   :  { %v2349_v35 = vpop.eup %2348  ;;  %v1270_v53 = vadd.f32 1.0, %v2347_v51  ;;  %v1368_v25 = vmul.f32 %v1304_v43, %v856_v37 }
 0x19c   :  { %v2351_v28 = vpop.eup %2350  ;;  %v1273_v56 = vadd.f32 1.0, %v2349_v35 }
 0x19d   :  { %v1305_v1 = vadd.f32 1.0, %v2351_v28  ;;  %v1334_v22 = vmul.f32 %v1270_v53, %v822_v58 }
 0x19e   :  { %v1337_v10 = vmul.f32 %v1273_v56, %v825_v15 }
 0x19f   :  { %v1369_v29 = vmul.f32 %v1305_v1, %v857_v63 }
 0x1a0   :  { %v2353_v36 = vpop.eup %2352  ;;  %v1969_v54 = vpack.c.bf16 %v1337_v10, %v1336_v26 }
 0x1a1   :  { %v2355_v40 = vpop.eup %2354  ;;  %v1271_v0 = vadd.f32 1.0, %v2353_v36  ;;  %v2049_v55 = vpack.c.bf16 %v1369_v29, %v1368_v25 }
 0x1a2   :  { %2065 = vst [vmem:[%s3336_s4 + $0x78] sm:$0xff] %v1969_v54   ;;  %v1302_v60 = vadd.f32 1.0, %v2355_v40 }
 0x1a3   :  { %v1335_v31 = vmul.f32 %v1271_v0, %v823_v27  ;;  %2081 = vst [vmem:[%s3336_s4 + $0xf8] sm:$0xff] %v2049_v55  }
 0x1a4   :  { %v2357_v30 = vpop.eup %2356  ;;  %v1366_v3 = vmul.f32 %v1302_v60, %v854_v62 }
 0x1a5   :  { %v1964_v19 = vpack.c.bf16 %v1335_v31, %v1334_v22  ;;  %v1303_v33 = vadd.f32 1.0, %v2357_v30 }
 0x1a7   :  { %2064 = vst [vmem:[%s3336_s4 + $0x70] sm:$0xff] %v1964_v19   ;;  %v1367_v47 = vmul.f32 %v1303_v33, %v855_v6 }
 0x1a9   :  { %v2044_v61 = vpack.c.bf16 %v1367_v47, %v1366_v3 }
 0x1ab   :  { %2080 = vst [vmem:[%s3336_s4 + $0xf0] sm:$0xff] %v2044_v61  }

// kernel: _lambda_.6
= control target key start
LH: loop header
LB: loop body
LE: loop exit
PB: predicated region body
PF: predicated region fallthrough
CT: control target
= control target key end

     0   :  { %vm110_vm0 = vcmask 588800   ;;  %vm135_vm1 = vcmask 1043456   ;;  %s957_s1 = inlined_call_operand.vmem [shape: bf16[72,128], index: 1, kind: input, shape index: {}]   ;;  %s958_s0 = inlined_call_operand.vmem [shape: bf16[128,72], index: 0, kind: input, shape index: {}]   ;;  %s959_s2 = inlined_call_operand.vmem [shape: f32[1,128], index: 2, kind: input, shape index: {}]   ;;  %s960_s3 = inlined_call_operand.vmem [shape: f32[1,128], index: 3, kind: input, shape index: {}]   ;;  %s961_s4 = inlined_call_operand.vmem [shape: bf16[128,128], index: 4, kind: output, shape index: {}]  }
   0x1   :  { %v663_v0 = vld [vmem:[%s957_s1] sm:$0xff]   ;;  %v664_v1 = vld [vmem:[%s957_s1 + $0x8] sm:$0xff]   ;;  %v665_v2 = vld [vmem:[%s957_s1 + $0x10] sm:$0xff]  }
   0x2   :  { %625 = vmatprep.subr.bf16.mxu0 %v663_v0  ;;  %651 = vmatprep.subr.bf16.mxu1 %v663_v0  ;;  %v668_v3 = vld [vmem:[%s958_s0] sm:$0xff]   ;;  %v666_v5 = vld [vmem:[%s957_s1 + $0x18] sm:$0xff]   ;;  %v670_v8 = vld [vmem:[%s958_s0 + $0x8] sm:$0xff]  }
   0x3   :  { %626 = vmatpush3.bf16.msra.mxu0 %v663_v0  ;;  %656 = vmatpush3.bf16.msra.mxu1 %v663_v0  ;;  %v669_v4 = vld [vmem:[%s958_s0 + $0x20] sm:$0xff]   ;;  %v671_v9 = vld [vmem:[%s958_s0 + $0x28] sm:$0xff]   ;;  %v672_v10 = vld [vmem:[%s958_s0 + $0x10] sm:$0xff]  }
   0x4   :  { %627 = vmatprep.subr.bf16.mxu0 %v664_v1  ;;  %652 = vmatprep.subr.bf16.mxu1 %v664_v1  ;;  %v667_v6 = vld [vmem:[%s957_s1 + $0x20] ss:$0 sps:$4 sm:$0xff]   ;;  %v673_v11 = vld [vmem:[%s958_s0 + $0x30] sm:$0xff]   ;;  %v674_v12 = vld [vmem:[%s958_s0 + $0x18] sm:$0xff]  }
   0x5   :  { %635 = vmatprep.mubr.msk.bf16.mxu0 %vm110_vm0, %v668_v3  ;;  %643 = vmatprep.mubr.msk.bf16.mxu1 %vm110_vm0, %v669_v4  ;;  %v137_v7 = vsel %vm135_vm1, %v667_v6, 0  ;;  %v675_v13 = vld [vmem:[%s958_s0 + $0x38] sm:$0xff]   ;;  %v783_v14 = vld [vmem:[%s959_s2] ss:$0 sm:$0xff] }
   0x6   :  { %v788_v16 = vld [vmem:[%s960_s3] ss:$0 sm:$0xff] }
   0x7   :  { %628 = vmatpush3.bf16.msra.mxu0 %v664_v1  ;;  %657 = vmatpush3.bf16.msra.mxu1 %v664_v1 }
   0x8   :  { %629 = vmatprep.subr.bf16.mxu0 %v665_v2  ;;  %653 = vmatprep.subr.bf16.mxu1 %v665_v2 }
   0xb   :  { %630 = vmatpush3.bf16.msra.mxu0 %v665_v2  ;;  %658 = vmatpush3.bf16.msra.mxu1 %v665_v2 }
   0xc   :  { %631 = vmatprep.subr.bf16.mxu0 %v666_v5  ;;  %654 = vmatprep.subr.bf16.mxu1 %v666_v5 }
   0xf   :  { %632 = vmatpush3.bf16.msra.mxu0 %v666_v5  ;;  %659 = vmatpush3.bf16.msra.mxu1 %v666_v5 }
  0x10   :  { %661 = vmatprep.subr.msk.bf16.mxu0 %vm135_vm1, %v667_v6  ;;  %662 = vmatprep.subr.msk.bf16.mxu1 %vm135_vm1, %v667_v6 }
  0x13   :  { %634 = vmatpush3.bf16.msra.mxu0 %v137_v7  ;;  %660 = vmatpush3.bf16.msra.mxu1 %v137_v7 }
  0x16   :  { %636 = vmatmul.mubr.msk.bf16.vlgmr.msra.gmra.mrb[0].mxu0 %vm110_vm0, %v670_v8  ;;  %644 = vmatmul.mubr.msk.bf16.vlgmr.msra.gmra.mrb[0].mxu1 %vm110_vm0, %v671_v9 }
  0x17   :  { %639 = vmatprep.mubr.msk.bf16.mxu0 %vm110_vm0, %v672_v10  ;;  %647 = vmatprep.mubr.msk.bf16.mxu1 %vm110_vm0, %v673_v11 }
  0x1e   :  { %640 = vmatmul.mubr.msk.bf16.gmra.mrb[4].mxu0 %vm110_vm0, %v674_v12  ;;  %648 = vmatmul.mubr.msk.bf16.gmra.mrb[4].mxu1 %vm110_vm0, %v675_v13 }
  0xe9   :  { %v637_v15 = vpop.f32.mrb[0].mxu0  ;;  %v645_v17 = vpop.f32.mrb[0].mxu1 }
  0xea   :  { %v245_v18 = vmul.f32 %v637_v15, %v783_v14  ;;  %v253_v19 = vmul.f32 %v645_v17, %v783_v14  ;;  %v173_v20 = vpop.f32.mrb[1].mxu0  ;;  %v205_v21 = vpop.f32.mrb[1].mxu1 }
  0xeb   :  { %v243_v22 = vmul.f32 %v783_v14, %v173_v20  ;;  %v251_v23 = vmul.f32 %v783_v14, %v205_v21  ;;  %v638_v24 = vpop.f32.mrb[2].mxu0  ;;  %v646_v25 = vpop.f32.mrb[2].mxu1 }
  0xec   :  { %v795_v26 = vadd.f32 %v788_v16, %v245_v18  ;;  %v798_v27 = vadd.f32 %v788_v16, %v253_v19  ;;  %v246_v28 = vmul.f32 %v638_v24, %v783_v14  ;;  %v254_v29 = vmul.f32 %v646_v25, %v783_v14  ;;  %v176_v30 = vpop.f32.mrb[3].mxu0  ;;  %v208_v31 = vpop.f32.mrb[3].mxu1 }
  0xed   :  { %v803_v32 = vadd.f32 %v788_v16, %v243_v22  ;;  %v806_v33 = vadd.f32 %v788_v16, %v251_v23  ;;  %v244_v34 = vmul.f32 %v783_v14, %v176_v30  ;;  %v252_v39 = vmul.f32 %v783_v14, %v208_v31 }
  0xee   :  { %v300_v35 = vmul.f32 0.044715, %v795_v26  ;;  %v308_v36 = vmul.f32 0.044715, %v798_v27  ;;  %v817_v42 = vadd.f32 %v788_v16, %v246_v28  ;;  %v820_v43 = vadd.f32 %v788_v16, %v254_v29 }
  0xef   :  { %v298_v37 = vmul.f32 0.044715, %v803_v32  ;;  %v306_v38 = vmul.f32 0.044715, %v806_v33  ;;  %v825_v46 = vadd.f32 %v788_v16, %v244_v34  ;;  %v837_v62 = vadd.f32 %v788_v16, %v252_v39 }
  0xf0   :  { %v316_v40 = vmul.f32 %v300_v35, %v795_v26  ;;  %v324_v41 = vmul.f32 %v308_v36, %v798_v27  ;;  %v301_v51 = vmul.f32 0.044715, %v817_v42  ;;  %v309_v56 = vmul.f32 0.044715, %v820_v43 }
  0xf1   :  { %v314_v44 = vmul.f32 %v298_v37, %v803_v32  ;;  %v322_v45 = vmul.f32 %v306_v38, %v806_v33  ;;  %v641_v47 = vpop.f32.mrb[4].mxu0  ;;  %v649_v48 = vpop.f32.mrb[4].mxu1  ;;  %v299_v4 = vmul.f32 0.044715, %v825_v46  ;;  %v307_v13 = vmul.f32 0.044715, %v837_v62 }
  0xf2   :  { %v332_v49 = vmul.f32 %v316_v40, %v795_v26  ;;  %v340_v50 = vmul.f32 %v324_v41, %v798_v27  ;;  %v189_v52 = vpop.f32.mrb[5].mxu0  ;;  %v221_v53 = vpop.f32.mrb[5].mxu1  ;;  %v317_v61 = vmul.f32 %v301_v51, %v817_v42  ;;  %v325_v3 = vmul.f32 %v309_v56, %v820_v43 }
  0xf3   :  { %v330_v54 = vmul.f32 %v314_v44, %v803_v32  ;;  %v338_v55 = vmul.f32 %v322_v45, %v806_v33  ;;  %v642_v57 = vpop.f32.mrb[6].mxu0  ;;  %v650_v58 = vpop.f32.mrb[6].mxu1  ;;  %v315_v11 = vmul.f32 %v299_v4, %v825_v46  ;;  %v249_v15 = vmul.f32 %v641_v47, %v783_v14 }
  0xf4   :  { %v348_v59 = vadd.f32 %v332_v49, %v795_v26  ;;  %v356_v60 = vadd.f32 %v340_v50, %v798_v27  ;;  %v839_v63 = vpop.f32.mrb[7].mxu0  ;;  %v841_v0 = vpop.f32.mrb[7].mxu1  ;;  %v333_v7 = vmul.f32 %v317_v61, %v817_v42  ;;  %v341_v10 = vmul.f32 %v325_v3, %v820_v43 }
  0xf5   :  { %v346_v1 = vadd.f32 %v330_v54, %v803_v32  ;;  %v354_v2 = vadd.f32 %v338_v55, %v806_v33  ;;  %v331_v18 = vmul.f32 %v315_v11, %v825_v46  ;;  %v257_v19 = vmul.f32 %v649_v48, %v783_v14 }
  0xf6   :  { %v364_v5 = vmul.f32 0.7978846, %v348_v59  ;;  %v372_v6 = vmul.f32 0.7978846, %v356_v60  ;;  %v349_v12 = vadd.f32 %v333_v7, %v817_v42  ;;  %v357_v17 = vadd.f32 %v341_v10, %v820_v43 }
  0xf7   :  { %v362_v8 = vmul.f32 0.7978846, %v346_v1  ;;  %v370_v9 = vmul.f32 0.7978846, %v354_v2  ;;  %v323_v21 = vmul.f32 %v307_v13, %v837_v62  ;;  %v858_v22 = vadd.f32 %v788_v16, %v249_v15 }
  0xf8   :  { %676 = vtanh.f32 %v364_v5  ;;  %v365_v20 = vmul.f32 0.7978846, %v349_v12  ;;  %v373_v23 = vmul.f32 0.7978846, %v357_v17  ;;  %v347_v24 = vadd.f32 %v331_v18, %v825_v46 }
  0xf9   :  { %678 = vtanh.f32 %v372_v6  ;;  %v862_v25 = vadd.f32 %v788_v16, %v257_v19  ;;  %v339_v28 = vmul.f32 %v323_v21, %v837_v62  ;;  %v304_v29 = vmul.f32 0.044715, %v858_v22 }
  0xfa   :  { %680 = vtanh.f32 %v362_v8  ;;  %v363_v30 = vmul.f32 0.7978846, %v347_v24  ;;  %v247_v36 = vmul.f32 %v783_v14, %v189_v52  ;;  %v255_v37 = vmul.f32 %v783_v14, %v221_v53 }
  0xfb   :  { %682 = vtanh.f32 %v370_v9  ;;  %v312_v31 = vmul.f32 0.044715, %v862_v25  ;;  %v355_v34 = vadd.f32 %v339_v28, %v837_v62  ;;  %v320_v35 = vmul.f32 %v304_v29, %v858_v22 }
  0xfc   :  { %684 = vtanh.f32 %v365_v20  ;;  %v874_v41 = vadd.f32 %v788_v16, %v247_v36  ;;  %v250_v44 = vmul.f32 %v642_v57, %v783_v14  ;;  %v879_v47 = vadd.f32 %v788_v16, %v255_v37 }
  0xfd   :  { %686 = vtanh.f32 %v373_v23  ;;  %v328_v38 = vmul.f32 %v312_v31, %v862_v25  ;;  %v371_v39 = vmul.f32 0.7978846, %v355_v34  ;;  %v336_v40 = vmul.f32 %v320_v35, %v858_v22 }
  0xfe   :  { %688 = vtanh.f32 %v363_v30  ;;  %v258_v48 = vmul.f32 %v650_v58, %v783_v14  ;;  %v284_v50 = vmul.f32 0.5, %v795_v26  ;;  %v302_v51 = vmul.f32 0.044715, %v874_v41 }
  0xff   :  { %v344_v45 = vmul.f32 %v328_v38, %v862_v25  ;;  %690 = vtanh.f32 %v371_v39  ;;  %v292_v54 = vmul.f32 0.5, %v798_v27  ;;  %v282_v55 = vmul.f32 0.5, %v803_v32 }
 0x100   :  { %v352_v56 = vadd.f32 %v336_v40, %v858_v22  ;;  %v290_v59 = vmul.f32 0.5, %v806_v33  ;;  %v318_v58 = vmul.f32 %v302_v51, %v874_v41  ;;  %v891_v26 = vadd.f32 %v788_v16, %v250_v44 }
 0x101   :  { %v360_v60 = vadd.f32 %v344_v45, %v862_v25  ;;  %v285_v2 = vmul.f32 0.5, %v817_v42  ;;  %v310_v27 = vmul.f32 0.044715, %v879_v47  ;;  %v896_v32 = vadd.f32 %v788_v16, %v258_v48 }
 0x102   :  { %v677_v49 = vpop.eup %676  ;;  %v293_v4 = vmul.f32 0.5, %v820_v43  ;;  %v283_v33 = vmul.f32 0.5, %v825_v46  ;;  %v291_v5 = vmul.f32 0.5, %v837_v62  ;;  %v248_v6 = vmul.f32 %v783_v14, %v839_v63 }
 0x103   :  { %v679_v52 = vpop.eup %678  ;;  %v396_v53 = vadd.f32 1.0, %v677_v49  ;;  %v368_v42 = vmul.f32 0.7978846, %v352_v56  ;;  %v376_v12 = vmul.f32 0.7978846, %v360_v60  ;;  %v334_v13 = vmul.f32 %v318_v58, %v874_v41 }
 0x104   :  { %v681_v57 = vpop.eup %680  ;;  %v404_v1 = vadd.f32 1.0, %v679_v52  ;;  %v305_v15 = vmul.f32 0.044715, %v891_v26  ;;  %v326_v46 = vmul.f32 %v310_v27, %v879_v47  ;;  %v313_v62 = vmul.f32 0.044715, %v896_v32 }
 0x105   :  { %v683_v61 = vpop.eup %682  ;;  %v412_v8 = vmul.f32 %v396_v53, %v284_v50  ;;  %v394_v9 = vadd.f32 1.0, %v681_v57  ;;  %v910_v29 = vadd.f32 %v788_v16, %v248_v6  ;;  %v350_v35 = vadd.f32 %v334_v13, %v874_v41 }
 0x106   :  { %v685_v3 = vpop.eup %684  ;;  %v420_v43 = vmul.f32 %v404_v1, %v292_v54  ;;  %v402_v19 = vadd.f32 1.0, %v683_v61  ;;  %v321_v21 = vmul.f32 %v305_v15, %v891_v26  ;;  %v329_v28 = vmul.f32 %v313_v62, %v896_v32 }
 0x107   :  { %v687_v7 = vpop.eup %686  ;;  %v397_v10 = vadd.f32 1.0, %v685_v3  ;;  %v410_v23 = vmul.f32 %v394_v9, %v282_v55  ;;  %692 = vtanh.f32 %v368_v42  ;;  %v342_v38 = vmul.f32 %v326_v46, %v879_v47 }
 0x108   :  { %v405_v11 = vadd.f32 1.0, %v687_v7  ;;  %v689_v17 = vpop.eup %688  ;;  %v337_v36 = vmul.f32 %v321_v21, %v891_v26  ;;  %v345_v39 = vmul.f32 %v329_v28, %v896_v32  ;;  %v303_v45 = vmul.f32 0.044715, %v910_v29 }
 0x109   :  { %v413_v18 = vmul.f32 %v397_v10, %v285_v2  ;;  %v395_v20 = vadd.f32 1.0, %v689_v17  ;;  %v691_v30 = vpop.eup %690  ;;  %v256_v48 = vmul.f32 %v783_v14, %v841_v0  ;;  %v418_v49 = vmul.f32 %v402_v19, %v290_v59 }
 0x10a   :  { %v421_v63 = vmul.f32 %v405_v11, %v293_v4  ;;  %v403_v37 = vadd.f32 1.0, %v691_v30  ;;  %v353_v44 = vadd.f32 %v337_v36, %v891_v26  ;;  %694 = vtanh.f32 %v376_v12 }
 0x10b   :  { %v573_v24 = vpack.c.bf16 %v413_v18, %v412_v8  ;;  %v411_v34 = vmul.f32 %v395_v20, %v283_v33  ;;  %v361_v51 = vadd.f32 %v345_v39, %v896_v32  ;;  %v366_v52 = vmul.f32 0.7978846, %v350_v35 }
 0x10c   :  { %v593_v31 = vpack.c.bf16 %v421_v63, %v420_v43  ;;  %v419_v50 = vmul.f32 %v403_v37, %v291_v5  ;;  %v369_v53 = vmul.f32 0.7978846, %v353_v44  ;;  %v319_v54 = vmul.f32 %v303_v45, %v910_v29 }
 0x10d   :  { %605 = vst [vmem:[%s961_s4 + $0x8] sm:$0xff] %v573_v24   ;;  %v568_v40 = vpack.c.bf16 %v411_v34, %v410_v23  ;;  %v279_v55 = vadd.f32 %v788_v16, %v256_v48  ;;  %v358_v57 = vadd.f32 %v342_v38, %v879_v47  ;;  %v377_v60 = vmul.f32 0.7978846, %v361_v51 }
 0x10e   :  { %609 = vst [vmem:[%s961_s4 + $0x28] sm:$0xff] %v593_v31   ;;  %v588_v56 = vpack.c.bf16 %v419_v50, %v418_v49  ;;  %696 = vtanh.f32 %v369_v53  ;;  %v335_v14 = vmul.f32 %v319_v54, %v910_v29  ;;  %v288_v8 = vmul.f32 0.5, %v858_v22 }
 0x10f   :  { %569 = vst [vmem:[%s961_s4] sm:$0xff] %v568_v40   ;;  %698 = vtanh.f32 %v377_v60  ;;  %v311_v0 = vmul.f32 0.044715, %v279_v55  ;;  %v374_v58 = vmul.f32 0.7978846, %v358_v57  ;;  %v289_v9 = vmul.f32 0.5, %v891_v26 }
 0x110   :  { %608 = vst [vmem:[%s961_s4 + $0x20] sm:$0xff] %v588_v56   ;;  %700 = vtanh.f32 %v366_v52  ;;  %v351_v59 = vadd.f32 %v335_v14, %v910_v29  ;;  %v296_v11 = vmul.f32 0.5, %v862_v25  ;;  %v297_v12 = vmul.f32 0.5, %v896_v32 }
 0x111   :  { %v327_v61 = vmul.f32 %v311_v0, %v279_v55  ;;  %v693_v16 = vpop.eup %692  ;;  %v286_v22 = vmul.f32 0.5, %v874_v41  ;;  %v287_v25 = vmul.f32 0.5, %v910_v29  ;;  %v294_v30 = vmul.f32 0.5, %v879_v47 }
 0x112   :  { %v367_v1 = vmul.f32 0.7978846, %v351_v59  ;;  %v400_v4 = vadd.f32 1.0, %v693_v16  ;;  %v295_v31 = vmul.f32 0.5, %v279_v55 }
 0x113   :  { %v343_v2 = vmul.f32 %v327_v61, %v279_v55 }
 0x114   :  { %702 = vtanh.f32 %v367_v1  ;;  %v695_v27 = vpop.eup %694  ;;  %v416_v15 = vmul.f32 %v400_v4, %v288_v8 }
 0x115   :  { %704 = vtanh.f32 %v374_v58  ;;  %v359_v3 = vadd.f32 %v343_v2, %v279_v55  ;;  %v408_v6 = vadd.f32 1.0, %v695_v27 }
 0x117   :  { %v375_v33 = vmul.f32 0.7978846, %v359_v3  ;;  %v424_v43 = vmul.f32 %v408_v6, %v296_v11 }
 0x118   :  { %v697_v5 = vpop.eup %696 }
 0x119   :  { %v699_v7 = vpop.eup %698  ;;  %v401_v10 = vadd.f32 1.0, %v697_v5  ;;  %706 = vtanh.f32 %v375_v33 }
 0x11a   :  { %v701_v42 = vpop.eup %700  ;;  %v409_v13 = vadd.f32 1.0, %v699_v7 }
 0x11b   :  { %v417_v17 = vmul.f32 %v401_v10, %v289_v9  ;;  %v398_v46 = vadd.f32 1.0, %v701_v42 }
 0x11c   :  { %v425_v18 = vmul.f32 %v409_v13, %v297_v12 }
 0x11d   :  { %v583_v62 = vpack.c.bf16 %v417_v17, %v416_v15  ;;  %v414_v32 = vmul.f32 %v398_v46, %v286_v22 }
 0x11e   :  { %v703_v19 = vpop.eup %702  ;;  %v603_v63 = vpack.c.bf16 %v425_v18, %v424_v43 }
 0x11f   :  { %v705_v20 = vpop.eup %704  ;;  %607 = vst [vmem:[%s961_s4 + $0x18] sm:$0xff] %v583_v62   ;;  %v399_v26 = vadd.f32 1.0, %v703_v19 }
 0x120   :  { %611 = vst [vmem:[%s961_s4 + $0x38] sm:$0xff] %v603_v63   ;;  %v406_v23 = vadd.f32 1.0, %v705_v20 }
 0x121   :  { %v415_v21 = vmul.f32 %v399_v26, %v287_v25 }
 0x122   :  { %v422_v34 = vmul.f32 %v406_v23, %v294_v30 }
 0x123   :  { %v707_v24 = vpop.eup %706  ;;  %v578_v28 = vpack.c.bf16 %v415_v21, %v414_v32 }
 0x124   :  { %v407_v41 = vadd.f32 1.0, %v707_v24 }
 0x125   :  { %606 = vst [vmem:[%s961_s4 + $0x10] sm:$0xff] %v578_v28  }
 0x126   :  { %v423_v29 = vmul.f32 %v407_v41, %v295_v31 }
 0x128   :  { %v598_v35 = vpack.c.bf16 %v423_v29, %v422_v34 }
 0x12a   :  { %610 = vst [vmem:[%s961_s4 + $0x30] sm:$0xff] %v598_v35  }

// kernel: _lambda_.7
= control target key start
LH: loop header
LB: loop body
LE: loop exit
PB: predicated region body
PF: predicated region fallthrough
CT: control target
= control target key end

     0   :  { %v289_v1 = vmov 0   ;;  %vm113_vm0 = vcmask 130048   ;;  %s375_s0 = inlined_call_operand.vmem [shape: bf16[32,144], index: 0, kind: input, shape index: {}]   ;;  %s376_s1 = inlined_call_operand.vmem [shape: bf16[144,128], index: 1, kind: input, shape index: {}]   ;;  %s377_s2 = inlined_call_operand.vmem [shape: f32[1,128], index: 2, kind: input, shape index: {}]   ;;  %s378_s3 = inlined_call_operand.vmem [shape: f32[1,128], index: 3, kind: input, shape index: {}]   ;;  %s379_s4 = inlined_call_operand.hbm [shape: f32[32,128], index: 4, kind: output, shape index: {}]  }
   0x1   :  { %v250_v0 = vld [vmem:[%s376_s1] sm:$0xff]   ;;  %120 = vmatprep.subr.bf16.mxu0 %v289_v1  ;;  %228 = vmatprep.subr.bf16.mxu1 %v289_v1  ;;  %v251_v2 = vld [vmem:[%s376_s1 + $0x8] sm:$0xff]   ;;  %v252_v3 = vld [vmem:[%s376_s1 + $0x10] sm:$0xff]  }
   0x2   :  { %121 = vmatpush1.bf16.msra.mxu0 %v250_v0  ;;  %237 = vmatpush1.bf16.msra.mxu1 %v250_v0  ;;  %v253_v4 = vld [vmem:[%s376_s1 + $0x18] sm:$0xff]   ;;  %v261_v5 = vld [vmem:[%s375_s0 + $0x4] ss:$8 sps:$4 sm:$0xff]  }
   0x3   :  { %122 = vmatprep.subr.bf16.mxu0 %v289_v1  ;;  %229 = vmatprep.subr.bf16.mxu1 %v289_v1  ;;  %v264_v6 = vld [vmem:[%s375_s0 + $0x14] ss:$8 sps:$4 sm:$0xff]  }
   0x6   :  { %123 = vmatpush1.bf16.msra.mxu0 %v251_v2  ;;  %238 = vmatpush1.bf16.msra.mxu1 %v251_v2 }
   0x7   :  { %124 = vmatprep.subr.bf16.mxu0 %v289_v1  ;;  %230 = vmatprep.subr.bf16.mxu1 %v289_v1 }
   0xa   :  { %125 = vmatpush1.bf16.msra.mxu0 %v252_v3  ;;  %239 = vmatpush1.bf16.msra.mxu1 %v252_v3 }
   0xb   :  { %126 = vmatprep.subr.bf16.mxu0 %v289_v1  ;;  %231 = vmatprep.subr.bf16.mxu1 %v289_v1 }
   0xc   :  { %9 = vsyncpa [#allocation3], 0  ;;  %224 = vmatprep.mubr.msk.bf16.mxu0 %vm113_vm0, %v261_v5  ;;  %225 = vmatprep.mubr.msk.bf16.mxu1 %vm113_vm0, %v264_v6  ;;  %v254_v7 = vld [vmem:[%s376_s1 + $0x20] sm:$0xff]   ;;  %v255_v8 = vld [vmem:[%s376_s1 + $0x28] sm:$0xff]   ;;  %s290_s18 = smov [#allocation2]  }
   0xd   :  { %v256_v9 = vld [vmem:[%s376_s1 + $0x30] sm:$0xff]   ;;  %v257_v10 = vld [vmem:[%s376_s1 + $0x38] sm:$0xff]   ;;  %v258_v11 = vld [vmem:[%s376_s1 + $0x40] sm:$0xff]  }
   0xe   :  { %127 = vmatpush1.bf16.msra.mxu0 %v253_v4  ;;  %240 = vmatpush1.bf16.msra.mxu1 %v253_v4  ;;  %v259_v12 = vld [vmem:[%s375_s0] ss:$8 sps:$4 sm:$0xff]   ;;  %v262_v13 = vld [vmem:[%s375_s0 + $0x10] ss:$8 sps:$4 sm:$0xff]   ;;  %s200_s0 = sshll.u32 %s290_s18, 4  ;;  %s201_s0 = int_to_ptr.vmem [resolvable:$true] %s200_s0 }
   0xf   :  { %128 = vmatprep.subr.bf16.mxu0 %v289_v1  ;;  %232 = vmatprep.subr.bf16.mxu1 %v289_v1  ;;  %v226_v14 = vld [vmem:[%s377_s2] ss:$0 sm:$0xff]  ;;  %s265_s2 = scalar_lea.vmem %s201_s0, 512  ;;  %p270_p1 = scmp.lt.s32.totalorder %s201_s0, %s201_s0 }
  0x10   :  { %v227_v16 = vld [vmem:[%s378_s3] ss:$0 sm:$0xff]  ;;  %p266_p0 = scmp.ne.s32.totalorder %s201_s0, %s265_s2  ;;  %p271_p2 = scmp.lt.s32.totalorder %s265_s2, %s265_s2 }
  0x12   :  { %129 = vmatpush1.bf16.msra.mxu0 %v254_v7  ;;  %241 = vmatpush1.bf16.msra.mxu1 %v254_v7  ;;  %p272_p3 = por %p271_p2, %p270_p1 }
  0x13   :  { %130 = vmatprep.subr.bf16.mxu0 %v289_v1  ;;  %233 = vmatprep.subr.bf16.mxu1 %v289_v1 }
  0x14   :  { %p273_p4 = pnand %p272_p3, %p266_p0 }
  0x16   :  { %131 = vmatpush1.bf16.msra.mxu0 %v255_v8  ;;  %242 = vmatpush1.bf16.msra.mxu1 %v255_v8 }
  0x17   :  { %132 = vmatprep.subr.bf16.mxu0 %v289_v1  ;;  %234 = vmatprep.subr.bf16.mxu1 %v289_v1 }
  0x1a   :  { %133 = vmatpush1.bf16.msra.mxu0 %v256_v9  ;;  %243 = vmatpush1.bf16.msra.mxu1 %v256_v9 }
  0x1b   :  { %134 = vmatprep.subr.bf16.mxu0 %v289_v1  ;;  %235 = vmatprep.subr.bf16.mxu1 %v289_v1 }
  0x1e   :  { %135 = vmatpush1.bf16.msra.mxu0 %v257_v10  ;;  %244 = vmatpush1.bf16.msra.mxu1 %v257_v10 }
  0x1f   :  { %136 = vmatprep.subr.bf16.mxu0 %v289_v1  ;;  %236 = vmatprep.subr.bf16.mxu1 %v289_v1 }
  0x22   :  { %137 = vmatpush1.bf16.msra.mxu0 %v258_v11  ;;  %245 = vmatpush1.bf16.msra.mxu1 %v258_v11 }
  0x25   :  { %153 = vmatmul.mubr.bf16.vlgmr.msra.gmra.mrb[0].mxu0 %v259_v12  ;;  %161 = vmatmul.mubr.bf16.vlgmr.msra.gmra.mrb[0].mxu1 %v262_v13 }
  0xf8   :  { %v154_v15 = vpop.f32.mrb[0].mxu0  ;;  %v162_v17 = vpop.f32.mrb[0].mxu1 }
  0xf9   :  { %v176_v18 = vmul.f32 %v226_v14, %v154_v15  ;;  %v178_v19 = vmul.f32 %v226_v14, %v162_v17  ;;  %v156_v20 = vpop.f32.mrb[1].mxu0  ;;  %v164_v21 = vpop.f32.mrb[1].mxu1 }
  0xfa   :  { %v157_v22 = vpop.f32.mrb[2].mxu0  ;;  %v165_v23 = vpop.f32.mrb[2].mxu1 }
  0xfb   :  { %v187_v24 = vadd.f32 %v227_v16, %v176_v18  ;;  %v189_v25 = vadd.f32 %v227_v16, %v178_v19  ;;  %v177_v26 = vmul.f32 %v226_v14, %v157_v22  ;;  %v179_v27 = vmul.f32 %v226_v14, %v165_v23  ;;  %v159_v28 = vpop.f32.mrb[3].mxu0  ;;  %v167_v29 = vpop.f32.mrb[3].mxu1 }
  0xfd   :  { %191 = vst [vmem:[#allocation2] sm:$0xff] %v187_v24  ;;  %193 = vst [vmem:[#allocation2 + $0x10] sm:$0xff] %v189_v25  ;;  %v188_v30 = vadd.f32 %v227_v16, %v177_v26  ;;  %v190_v31 = vadd.f32 %v227_v16, %v179_v27 }
  0xff   :  { %192 = vst [vmem:[#allocation2 + $0x8] sm:$0xff] %v188_v30  ;;  %194 = vst [vmem:[#allocation2 + $0x18] sm:$0xff] %v190_v31 }
 0x100   :  { %276 = shalt.err (!%p273_p4)
}
 0x101   :  { %s277_s20 = scalar_lea.hbm %s379_s4, 512 }
 0x102   :  { %p278_p5 = scmp.ne.s32.totalorder %s379_s4, %s277_s20  ;;  %p281_p6 = scmp.lt.u32.totalorder %s277_s20, %s379_s4 }
 0x104   :  { %p283_p7 = pnand %p281_p6, %p278_p5 }
 0x106   :  { %286 = shalt.err (!%p283_p7)
}
 0x107   :  { %s291_s25 = smov 128   ;;  %s292_s26 = smov 8  }
 0x108   :  { %206 = dma.vmem_to_hbm [thread:$0]  %s201_s0, 512, %s379_s4, [#allocation3], %s291_s25, %s291_s25, %s292_s26  }
 0x109   :  { %287 = dma.done.wait [#allocation3], 512  }
 0x10a   :  { %288 = vsyncadd [#allocation3], 4294966784 }
 0x10b   :  { %210 = vsyncpa [#allocation3], 1 }

</bundles_post_ra>
